<compile_context>
chip_gen: v7x
topology: tpu7x:2x2x1
jax: 0.10.0
libtpu: 0.0.40
codegen_flags: <defaults>
</compile_context>

<pallas_src>
import functools

import jax
import jax.numpy as jnp
from jax.experimental import pallas as pl
from jax.experimental.pallas import tpu as pltpu

_NEG_BIG = -1e30  # finite "minus infinity" for padded vocab lanes (avoids NaN)


def _round_up(x, m):
    return (x + m - 1) // m * m


def _grid_splits():
    """Preferred number of balanced grid steps: 2 on v7x (2 TCs), else 1."""
    try:
        kind = jax.devices()[0].device_kind.lower()
    except Exception:
        return 1
    return 2 if "v7" in kind else 1


def cbow_kernel(off_ref, m1_ref, b1_ref, w2_ref, b2_ref, out_ref, *,
                context_size):
    """Fused CBOW forward for one batch tile.

    off_ref : (bt, C)    int32  token index + c*V (disjoint per-context ranges)
    m1_ref  : (CVp, Hp)  f32    stack_c(E @ W1[c]), zero-padded rows/cols
    b1_ref  : (1, Hp)    f32
    w2_ref  : (Hp, Vp)   f32
    b2_ref  : (1, Vp)    f32    padded vocab lanes carry -1e30
    out_ref : (bt, Vp)   f32    log-probabilities
    """
    bt = off_ref.shape[0]
    cvp = m1_ref.shape[0]

    off = off_ref[...]                                          # (bt, C)
    lane = jax.lax.broadcasted_iota(jnp.int32, (bt, cvp), 1)

    # Combined one-hot over all contexts: each row has exactly C ones, each in
    # its own disjoint V-range, so the single K=C*V matmul below computes
    # sum_c E[idx_c] @ W1[c]  ==  fc1(concat_c E[idx_c])  (minus bias).
    onehot = (lane == off[:, 0:1]).astype(jnp.float32)
    for c in range(1, context_size):
        onehot = onehot + (lane == off[:, c:c + 1]).astype(jnp.float32)

    h = jnp.maximum(
        jnp.dot(onehot, m1_ref[...], preferred_element_type=jnp.float32)
        + b1_ref[...], 0.0)                                     # (bt, Hp)

    y = jnp.dot(h, w2_ref[...],
                preferred_element_type=jnp.float32) + b2_ref[...]   # (bt, Vp)

    # log_softmax over (padded) vocab lanes: padded logits are -1e30 -> exp 0,
    # and the row max always comes from a real lane.
    m = jnp.max(y, axis=1, keepdims=True)
    lse = m + jnp.log(jnp.sum(jnp.exp(y - m), axis=1, keepdims=True))
    out_ref[...] = (y - lse).astype(out_ref.dtype)


def cbow_forward(indices, weights_matrix, fc1_w, fc1_b, fc2_w, fc2_b, *,
                 max_block_b=1024):
    """Batched CBOW forward.

    indices: int32[B, C] (or int32[C] for the module's single-context case).
    Weights are in PyTorch layouts: weights_matrix (V, D), fc1_w (H, C*D),
    fc1_b (H,), fc2_w (V, H), fc2_b (V,).  Returns f32[B, V] log-probabilities
    (f32[1, V] for a single context); each row equals CBOW.forward on that row.
    """
    indices = jnp.asarray(indices, jnp.int32)
    if indices.ndim == 1:
        indices = indices[None, :]
    B, C = indices.shape
    V, D = weights_matrix.shape
    H = fc1_b.shape[0]

    H_pad = _round_up(H, 128)
    V_pad = _round_up(V, 128)
    CV = C * V
    CV_pad = _round_up(CV, 128)

    # Host-side weight prep (gather+fc1 fusion): M1[c*V + v, :] = E[v] @ W1[c].
    w1 = fc1_w.T.reshape(C, D, H)                                # (C, D, H)
    m1 = jnp.einsum("vd,cdh->cvh", weights_matrix, w1).reshape(CV, H)
    m1 = jnp.pad(m1, ((0, CV_pad - CV), (0, H_pad - H)))
    b1 = jnp.pad(fc1_b, (0, H_pad - H)).reshape(1, H_pad)
    w2 = jnp.pad(fc2_w.T, ((0, H_pad - H), (0, V_pad - V)))
    b2 = jnp.pad(fc2_b, (0, V_pad - V),
                 constant_values=_NEG_BIG).reshape(1, V_pad)

    # Grid shaping: one big tile per TensorCore (2 balanced steps on v7x,
    # 1 step on v5e/v6e) until tiles would exceed max_block_b rows.
    splits = _grid_splits()
    B8 = _round_up(B, 8)
    steps = _round_up(max(splits, pl.cdiv(B8, max_block_b)), splits)
    bt = _round_up(pl.cdiv(B8, steps), 8)
    B_pad = bt * steps

    # Per-context offsets precomputed on the host; padded rows compute on
    # token 0 and are sliced off below.
    idx_p = jnp.pad(indices, ((0, B_pad - B), (0, 0)))
    off = idx_p + (jnp.arange(C, dtype=jnp.int32) * V)[None, :]

    flops = 2 * B_pad * (CV_pad * H_pad + H_pad * V_pad)
    transcendentals = B_pad * (V_pad + 1)
    bytes_accessed = 4 * (B_pad * C + CV_pad * H_pad + H_pad
                          + H_pad * V_pad + V_pad + B_pad * V_pad)

    out = pl.pallas_call(
        functools.partial(cbow_kernel, context_size=C),
        out_shape=jax.ShapeDtypeStruct((B_pad, V_pad), jnp.float32),
        grid=(steps,),
        in_specs=[
            pl.BlockSpec((bt, C), lambda i: (i, 0)),             # offset indices
            pl.BlockSpec((CV_pad, H_pad), lambda i: (0, 0)),     # fused E @ W1
            pl.BlockSpec((1, H_pad), lambda i: (0, 0)),          # fc1 bias
            pl.BlockSpec((H_pad, V_pad), lambda i: (0, 0)),      # fc2 weight
            pl.BlockSpec((1, V_pad), lambda i: (0, 0)),          # fc2 bias
        ],
        out_specs=pl.BlockSpec((bt, V_pad), lambda i: (i, 0)),
        compiler_params=pltpu.CompilerParams(
            dimension_semantics=("parallel",)),
        cost_estimate=pl.CostEstimate(
            flops=int(flops), transcendentals=int(transcendentals),
            bytes_accessed=int(bytes_accessed)),
    )(off, m1, b1, w2, b2)

    # TODO(synk): for realistic vocabularies (V >> 1k) do NOT keep (C*V, H) /
    # (H, V) resident or build a (bt, C*V) one-hot: tile fc2 over 128-lane V
    # tiles with an online logsumexp accumulator and DMA-gather embedding rows
    # via scalar-prefetched indices (this is the first thing to break on v7x's
    # smaller VMEM).
    return out[:B, :V]


if __name__ == "__main__":
    # Shapes consistent with the module: vocab=64, embed=16, context=4, hidden=100.
    VOCAB, EMBED, CONTEXT, HIDDEN = 64, 16, 4, 100
    BATCH = 256

    key = jax.random.PRNGKey(0)
    k_emb, k_w1, k_b1, k_w2, k_b2, k_idx = jax.random.split(key, 6)

    weights_matrix = jax.random.normal(k_emb, (VOCAB, EMBED), dtype=jnp.float32)
    fc1_w = jax.random.normal(k_w1, (HIDDEN, CONTEXT * EMBED),
                              dtype=jnp.float32) * 0.1          # PyTorch layout
    fc1_b = jax.random.normal(k_b1, (HIDDEN,), dtype=jnp.float32) * 0.1
    fc2_w = jax.random.normal(k_w2, (VOCAB, HIDDEN), dtype=jnp.float32) * 0.1
    fc2_b = jax.random.normal(k_b2, (VOCAB,), dtype=jnp.float32) * 0.1
    indices = jax.random.randint(k_idx, (BATCH, CONTEXT), 0, VOCAB,
                                 dtype=jnp.int32)

    out = jax.block_until_ready(
        cbow_forward(indices, weights_matrix, fc1_w, fc1_b, fc2_w, fc2_b))

    # Pure-JAX reference: row b == PyTorch CBOW.forward(indices[b]).
    x_ref = weights_matrix[indices].reshape(BATCH, -1)
    h_ref = jnp.maximum(x_ref @ fc1_w.T + fc1_b, 0.0)
    y_ref = h_ref @ fc2_w.T + fc2_b
    logp_ref = y_ref - jax.scipy.special.logsumexp(y_ref, axis=1, keepdims=True)

    assert out.shape == (BATCH, VOCAB)
    assert jnp.allclose(out, logp_ref, atol=1e-4, rtol=1e-4), \
        "batched mismatch vs reference"

    # Single-context path == original module signature: (context,) -> (1, vocab).
    out1 = jax.block_until_ready(
        cbow_forward(indices[0], weights_matrix, fc1_w, fc1_b, fc2_w, fc2_b))
    assert out1.shape == (1, VOCAB)
    assert jnp.allclose(out1, logp_ref[:1], atol=1e-4, rtol=1e-4), \
        "single-context mismatch vs reference"

    print("KERNEL_OK")
</pallas_src>

<mosaic_0001>
module attributes {stable_mosaic.version = 11 : i64} {
  func.func @cbow_kernel(%arg0: i32, %arg1: memref<256x4xi32, #tpu.memory_space<vmem>>, %arg2: memref<256x128xf32, #tpu.memory_space<vmem>>, %arg3: memref<1x128xf32, #tpu.memory_space<vmem>>, %arg4: memref<128x128xf32, #tpu.memory_space<vmem>>, %arg5: memref<1x128xf32, #tpu.memory_space<vmem>>, %arg6: memref<256x128xf32, #tpu.memory_space<vmem>>) attributes {dimension_semantics = [#tpu.dimension_semantics<parallel>], iteration_bounds = array<i64: 1>, scalar_prefetch = 0 : i64, scratch_operands = 0 : i64, tpu.core_type = #tpu.core_type<tc>, window_params = [{transform_indices = @transform_0, window_bounds = array<i64: 256, 4>}, {pipeline_mode = #tpu.pipeline_mode<synchronous>, transform_indices = @transform_1, window_bounds = array<i64: 256, 128>}, {pipeline_mode = #tpu.pipeline_mode<synchronous>, transform_indices = @transform_2, window_bounds = array<i64: 1, 128>}, {pipeline_mode = #tpu.pipeline_mode<synchronous>, transform_indices = @transform_3, window_bounds = array<i64: 128, 128>}, {pipeline_mode = #tpu.pipeline_mode<synchronous>, transform_indices = @transform_4, window_bounds = array<i64: 1, 128>}, {transform_indices = @transform_5, window_bounds = array<i64: 256, 128>}]} {
    %c0 = arith.constant 0 : index
    %c0_0 = arith.constant 0 : index
    %0 = vector.load %arg1[%c0, %c0_0] : memref<256x4xi32, #tpu.memory_space<vmem>>, vector<256x4xi32>
    %1 = tpu.iota {dimensions = array<i32: 1>} : vector<256x256xi32>
    %2 = vector.extract_strided_slice %0 {offsets = [0, 0], sizes = [256, 1], strides = [1, 1]} : vector<256x4xi32> to vector<256x1xi32>
    %3 = vector.broadcast %2 : vector<256x1xi32> to vector<256x256xi32>
    %4 = arith.cmpi eq, %1, %3 : vector<256x256xi32>
    %5 = arith.extui %4 : vector<256x256xi1> to vector<256x256xi32>
    %6 = arith.sitofp %5 : vector<256x256xi32> to vector<256x256xf32>
    %7 = vector.extract_strided_slice %0 {offsets = [0, 1], sizes = [256, 1], strides = [1, 1]} : vector<256x4xi32> to vector<256x1xi32>
    %8 = vector.broadcast %7 : vector<256x1xi32> to vector<256x256xi32>
    %9 = arith.cmpi eq, %1, %8 : vector<256x256xi32>
    %10 = arith.extui %9 : vector<256x256xi1> to vector<256x256xi32>
    %11 = arith.sitofp %10 : vector<256x256xi32> to vector<256x256xf32>
    %12 = arith.addf %6, %11 : vector<256x256xf32>
    %13 = vector.extract_strided_slice %0 {offsets = [0, 2], sizes = [256, 1], strides = [1, 1]} : vector<256x4xi32> to vector<256x1xi32>
    %14 = vector.broadcast %13 : vector<256x1xi32> to vector<256x256xi32>
    %15 = arith.cmpi eq, %1, %14 : vector<256x256xi32>
    %16 = arith.extui %15 : vector<256x256xi1> to vector<256x256xi32>
    %17 = arith.sitofp %16 : vector<256x256xi32> to vector<256x256xf32>
    %18 = arith.addf %12, %17 : vector<256x256xf32>
    %19 = vector.extract_strided_slice %0 {offsets = [0, 3], sizes = [256, 1], strides = [1, 1]} : vector<256x4xi32> to vector<256x1xi32>
    %20 = vector.broadcast %19 : vector<256x1xi32> to vector<256x256xi32>
    %21 = arith.cmpi eq, %1, %20 : vector<256x256xi32>
    %22 = arith.extui %21 : vector<256x256xi1> to vector<256x256xi32>
    %23 = arith.sitofp %22 : vector<256x256xi32> to vector<256x256xf32>
    %24 = arith.addf %18, %23 : vector<256x256xf32>
    %c0_1 = arith.constant 0 : index
    %c0_2 = arith.constant 0 : index
    %25 = vector.load %arg2[%c0_1, %c0_2] : memref<256x128xf32, #tpu.memory_space<vmem>>, vector<256x128xf32>
    %cst = arith.constant dense<0.000000e+00> : vector<256x128xf32>
    %26 = tpu.matmul %24, %25, %cst {dimension_numbers = #tpu.dot_dimension_numbers<[1], [0], [0], [1], [0, 0, 1, 1], [], []>} : vector<256x256xf32>, vector<256x128xf32>, vector<256x128xf32> -> vector<256x128xf32>
    %c0_3 = arith.constant 0 : index
    %c0_4 = arith.constant 0 : index
    %27 = vector.load %arg3[%c0_3, %c0_4] : memref<1x128xf32, #tpu.memory_space<vmem>>, vector<1x128xf32>
    %28 = vector.broadcast %27 : vector<1x128xf32> to vector<256x128xf32>
    %29 = arith.addf %26, %28 : vector<256x128xf32>
    %cst_5 = arith.constant 0.000000e+00 : f32
    %30 = vector.broadcast %cst_5 : f32 to vector<256x128xf32>
    %31 = arith.maximumf %29, %30 : vector<256x128xf32>
    %c0_6 = arith.constant 0 : index
    %c0_7 = arith.constant 0 : index
    %32 = vector.load %arg4[%c0_6, %c0_7] : memref<128x128xf32, #tpu.memory_space<vmem>>, vector<128x128xf32>
    %cst_8 = arith.constant dense<0.000000e+00> : vector<256x128xf32>
    %33 = tpu.matmul %31, %32, %cst_8 {dimension_numbers = #tpu.dot_dimension_numbers<[1], [0], [0], [1], [0, 0, 1, 1], [], []>} : vector<256x128xf32>, vector<128x128xf32>, vector<256x128xf32> -> vector<256x128xf32>
    %c0_9 = arith.constant 0 : index
    %c0_10 = arith.constant 0 : index
    %34 = vector.load %arg5[%c0_9, %c0_10] : memref<1x128xf32, #tpu.memory_space<vmem>>, vector<1x128xf32>
    %35 = vector.broadcast %34 : vector<1x128xf32> to vector<256x128xf32>
    %36 = arith.addf %33, %35 : vector<256x128xf32>
    %cst_11 = arith.constant dense<0xFF800000> : vector<256xf32>
    %37 = vector.multi_reduction <maximumf>, %36, %cst_11 [1] : vector<256x128xf32> to vector<256xf32>
    %38 = vector.shape_cast %37 : vector<256xf32> to vector<256x1xf32>
    %39 = vector.broadcast %38 : vector<256x1xf32> to vector<256x128xf32>
    %40 = arith.subf %36, %39 : vector<256x128xf32>
    %41 = math.exp %40 : vector<256x128xf32>
    %cst_12 = arith.constant dense<0.000000e+00> : vector<256xf32>
    %42 = vector.multi_reduction <add>, %41, %cst_12 [1] : vector<256x128xf32> to vector<256xf32>
    %43 = vector.shape_cast %42 : vector<256xf32> to vector<256x1xf32>
    %44 = math.log %43 : vector<256x1xf32>
    %45 = arith.addf %38, %44 : vector<256x1xf32>
    %46 = vector.broadcast %45 : vector<256x1xf32> to vector<256x128xf32>
    %47 = arith.subf %36, %46 : vector<256x128xf32>
    %c0_13 = arith.constant 0 : index
    %c0_14 = arith.constant 0 : index
    %48 = vector.load %arg6[%c0_13, %c0_14] : memref<256x128xf32, #tpu.memory_space<vmem>>, vector<256x128xf32>
    tpu.vector_store %arg6[%c0_13, %c0_14], %47 {strides = array<i32>} : memref<256x128xf32, #tpu.memory_space<vmem>>, vector<256x128xf32>,
    return
  }
  func.func @transform_0(%arg0: i32) -> (i32, i32) {
    %c0_i32 = arith.constant 0 : i32
    %c0_i32_0 = arith.constant 0 : i32
    return %arg0, %c0_i32 : i32, i32
  }
  func.func @transform_1(%arg0: i32) -> (i32, i32) {
    %c0_i32 = arith.constant 0 : i32
    %c0_i32_0 = arith.constant 0 : i32
    %c0_i32_1 = arith.constant 0 : i32
    return %c0_i32, %c0_i32_0 : i32, i32
  }
  func.func @transform_2(%arg0: i32) -> (i32, i32) {
    %c0_i32 = arith.constant 0 : i32
    %c0_i32_0 = arith.constant 0 : i32
    %c0_i32_1 = arith.constant 0 : i32
    return %c0_i32, %c0_i32_0 : i32, i32
  }
  func.func @transform_3(%arg0: i32) -> (i32, i32) {
    %c0_i32 = arith.constant 0 : i32
    %c0_i32_0 = arith.constant 0 : i32
    %c0_i32_1 = arith.constant 0 : i32
    return %c0_i32, %c0_i32_0 : i32, i32
  }
  func.func @transform_4(%arg0: i32) -> (i32, i32) {
    %c0_i32 = arith.constant 0 : i32
    %c0_i32_0 = arith.constant 0 : i32
    %c0_i32_1 = arith.constant 0 : i32
    return %c0_i32, %c0_i32_0 : i32, i32
  }
  func.func @transform_5(%arg0: i32) -> (i32, i32) {
    %c0_i32 = arith.constant 0 : i32
    %c0_i32_0 = arith.constant 0 : i32
    return %arg0, %c0_i32 : i32, i32
  }
}

</mosaic_0001>

<bundles_post_ra>
// kernel: tpu_custom_call.1
= control target key start
LH: loop header
LB: loop body
LE: loop exit
PB: predicated region body
PF: predicated region fallthrough
CT: control target
= control target key end

     0   :  { %10 = vsyncpa [#allocation3], 0  ;;  %s4903_s0 = inlined_call_operand.vmem [shape: s32[256,4], index: 0, kind: input, shape index: {}]   ;;  %s4904_s1 = inlined_call_operand.vmem [shape: f32[256,128], index: 1, kind: input, shape index: {}]   ;;  %s4905_s2 = inlined_call_operand.vmem [shape: f32[1,128], index: 2, kind: input, shape index: {}]   ;;  %s4906_s3 = inlined_call_operand.hbm [shape: f32[128,128], index: 3, kind: input, shape index: {}]   ;;  %s4907_s4 = inlined_call_operand.vmem [shape: f32[1,128], index: 4, kind: input, shape index: {}]   ;;  %s4908_s5 = inlined_call_operand.hbm [shape: f32[256,128], index: 5, kind: output, shape index: {}]  }
   0x1   :  { %11 = vsyncpa [#allocation4], 0  ;;  %s3136_s18 = smov [#allocation2]   ;;  %s3088_s22 = scalar_lea.hbm %s4906_s3, 2048 }
   0x2   :  { %s23_s19 = sshll.u32 %s3136_s18, 4  ;;  %p3089_p0 = scmp.ne.s32.totalorder %s4906_s3, %s3088_s22  ;;  %s24_s19 = int_to_ptr.vmem [resolvable:$true] %s23_s19 }
   0x3   :  { %p3092_p1 = scmp.lt.u32.totalorder %s3088_s22, %s4906_s3 }
   0x5   :  { %p3094_p2 = pnand %p3092_p1, %p3089_p0 }
   0x7   :  { %3097 = shalt.err (!%p3094_p2)
}
   0x8   :  { %s3098_s27 = scalar_lea.vmem %s24_s19, 2048  ;;  %p3103_p4 = scmp.lt.s32.totalorder %s24_s19, %s24_s19 }
   0x9   :  { %p3099_p3 = scmp.ne.s32.totalorder %s24_s19, %s3098_s27  ;;  %p3104_p5 = scmp.lt.s32.totalorder %s3098_s27, %s3098_s27 }
   0xb   :  { %p3105_p6 = por %p3104_p5, %p3103_p4 }
   0xd   :  { %p3106_p7 = pnand %p3105_p6, %p3099_p3 }
   0xf   :  { %3109 = shalt.err (!%p3106_p7)
}
  0x10   :  { %s3137_s28 = smov 128   ;;  %s3138_s29 = smov 8  }
  0x11   :  { %29 = dma.hbm_to_vmem [thread:$0]  %s4906_s3, 2048, %s24_s19, [#allocation3], %s3137_s28, %s3137_s28, %s3138_s29  }
  0x12   :  { %3132 = dma.done.wait [#allocation3], 2048  }
  0x13   :  { %3133 = vsyncadd [#allocation3], 4294965248  ;;  %v3139_v0 = vmov 2   ;;  %v3140_v1 = vmov 1   ;;  %v3196_v2 = vld [vmem:[%s4903_s0] sm:$0xff]  ;;  %v3203_v3 = vld [vmem:[%s4903_s0 + $0x10] sm:$0xff] }
  0x14   :  { %2868 = vset.pattern.permute.xlu1 %v3139_v0  ;;  %2867 = vset.pattern.permute.xlu0 %v3140_v1  ;;  %v36_v4 = vld [vmem:[%s4903_s0 + $0x8] sm:$0xff]  ;;  %v3141_v5 = vmov 0   ;;  %v3220_v7 = vld [vmem:[%s4903_s0 + $0x40] sm:$0xff]  ;;  %v3142_v11 = vmov 0.0|0.0   ;;  %v3236_v12 = vld [vmem:[%s4903_s0 + $0x18] sm:$0xff]  ;;  %v3143_v20 = vmov 3  }
  0x15   :  { %711 = vperm.xlu1 %2868, %v3196_v2   ;;  %359 = vperm.xlu0 %2867, %v3196_v2   ;;  %v3213_v6 = vld [vmem:[%s4903_s0 + $0x28] sm:$0xff]  ;;  %v1414_v8 = vld [vmem:[%s4904_s1] sm:$0xff]  ;;  %v1416_v13 = vld [vmem:[%s4904_s1 + $0x10] sm:$0xff] }
  0x16   :  { %v1415_v9 = vld [vmem:[%s4904_s1 + $0x8] sm:$0xff]  ;;  %2745 = vmatprep.subr.bf16.mxu0 %v3142_v11  ;;  %v1417_v14 = vld [vmem:[%s4904_s1 + $0x18] sm:$0xff]  ;;  %2825 = vmatprep.subr.bf16.mxu1 %v3142_v11  ;;  %v3253_v16 = vld [vmem:[%s4903_s0 + $0x30] sm:$0xff] }
  0x17   :  { %v2746_v10 = vpack.c.bf16 %v1415_v9, %v1414_v8  ;;  %v2749_v15 = vpack.c.bf16 %v1417_v14, %v1416_v13  ;;  %v1418_v17 = vld [vmem:[%s4904_s1 + $0x20] sm:$0xff]  ;;  %v1419_v18 = vld [vmem:[%s4904_s1 + $0x28] sm:$0xff]  ;;  %v1420_v22 = vld [vmem:[%s4904_s1 + $0x30] sm:$0xff] }
  0x18   :  { %v2752_v19 = vpack.c.bf16 %v1419_v18, %v1418_v17  ;;  %v3268_v21 = vld [vmem:[%s4903_s0 + $0x48] sm:$0xff]  ;;  %v1421_v23 = vld [vmem:[%s4904_s1 + $0x38] sm:$0xff]  ;;  %v3284_v25 = vld [vmem:[%s4903_s0 + $0x60] sm:$0xff] }
  0x19   :  { %2869 = vset.pattern.permute.xlu1 %v3141_v5  ;;  %365 = vperm.xlu0 %2867, %v3203_v3   ;;  %v2755_v24 = vpack.c.bf16 %v1421_v23, %v1420_v22  ;;  %v1422_v26 = vld [vmem:[%s4904_s1 + $0x40] sm:$0xff]  ;;  %v1423_v27 = vld [vmem:[%s4904_s1 + $0x48] sm:$0xff]  ;;  %v3299_v29 = vld [vmem:[%s4903_s0 + $0x78] sm:$0xff] }
  0x1a   :  { %74 = vperm.xlu1 %2869, %v36_v4   ;;  %2747 = vmatpush1.bf16.msra.mxu0 %v2746_v10  ;;  %v2758_v28 = vpack.c.bf16 %v1423_v27, %v1422_v26  ;;  %v1424_v30 = vld [vmem:[%s4904_s1 + $0x50] sm:$0xff]  ;;  %v1425_v31 = vld [vmem:[%s4904_s1 + $0x58] sm:$0xff]  ;;  %v1426_v33 = vld [vmem:[%s4904_s1 + $0x60] sm:$0xff] }
  0x1b   :  { %2748 = vmatprep.subr.bf16.mxu0 %v3142_v11  ;;  %2841 = vmatpush1.bf16.msra.mxu1 %v2746_v10  ;;  %v2761_v32 = vpack.c.bf16 %v1425_v31, %v1424_v30  ;;  %v1427_v34 = vld [vmem:[%s4904_s1 + $0x68] sm:$0xff]  ;;  %v39_v36 = vld [vmem:[%s4903_s0 + $0x20] sm:$0xff]  ;;  %v1428_v37 = vld [vmem:[%s4904_s1 + $0x70] sm:$0xff] }
  0x1c   :  { %2826 = vmatprep.subr.bf16.mxu1 %v3142_v11  ;;  %v2764_v35 = vpack.c.bf16 %v1427_v34, %v1426_v33  ;;  %v1429_v38 = vld [vmem:[%s4904_s1 + $0x78] sm:$0xff]  ;;  %v1430_v40 = vld [vmem:[%s4904_s1 + $0x80] sm:$0xff]  ;;  %v1431_v41 = vld [vmem:[%s4904_s1 + $0x88] sm:$0xff] }
  0x1d   :  { %374 = vperm.xlu0 %2867, %v3213_v6   ;;  %v2767_v39 = vpack.c.bf16 %v1429_v38, %v1428_v37  ;;  %v2770_v42 = vpack.c.bf16 %v1431_v41, %v1430_v40  ;;  %v1432_v43 = vld [vmem:[%s4904_s1 + $0x90] sm:$0xff]  ;;  %v1433_v44 = vld [vmem:[%s4904_s1 + $0x98] sm:$0xff]  ;;  %v1434_v46 = vld [vmem:[%s4904_s1 + $0xa0] sm:$0xff] }
  0x1e   :  { %2870 = vset.pattern.permute.xlu1 %v3140_v1  ;;  %2750 = vmatpush1.bf16.msra.mxu0 %v2749_v15  ;;  %v2773_v45 = vpack.c.bf16 %v1433_v44, %v1432_v43  ;;  %v1435_v47 = vld [vmem:[%s4904_s1 + $0xa8] sm:$0xff]  ;;  %v1436_v49 = vld [vmem:[%s4904_s1 + $0xb0] sm:$0xff]  ;;  %v1437_v50 = vld [vmem:[%s4904_s1 + $0xb8] sm:$0xff] }
  0x1f   :  { %362 = vperm.xlu1 %2870, %v36_v4   ;;  %2751 = vmatprep.subr.bf16.mxu0 %v3142_v11  ;;  %v2776_v48 = vpack.c.bf16 %v1435_v47, %v1434_v46  ;;  %v3375_v51 = vld [vmem:[%s4903_s0 + $0x90] sm:$0xff]  ;;  %v2779_v52 = vpack.c.bf16 %v1437_v50, %v1436_v49  ;;  %v1438_v53 = vld [vmem:[%s4904_s1 + $0xc0] sm:$0xff]  ;;  %v1439_v54 = vld [vmem:[%s4904_s1 + $0xc8] sm:$0xff] }
  0x20   :  { %2842 = vmatpush1.bf16.msra.mxu1 %v2749_v15  ;;  %v3390_v55 = vld [vmem:[%s4903_s0 + $0xa8] sm:$0xff]  ;;  %v2782_v56 = vpack.c.bf16 %v1439_v54, %v1438_v53  ;;  %v1440_v57 = vld [vmem:[%s4904_s1 + $0xd0] sm:$0xff]  ;;  %v1441_v58 = vld [vmem:[%s4904_s1 + $0xd8] sm:$0xff] }
  0x21   :  { %383 = vperm.xlu0 %2867, %v3220_v7   ;;  %2827 = vmatprep.subr.bf16.mxu1 %v3142_v11  ;;  %v3405_v59 = vld [vmem:[%s4903_s0 + $0xd0] sm:$0xff]  ;;  %v2785_v60 = vpack.c.bf16 %v1441_v58, %v1440_v57  ;;  %v1442_v61 = vld [vmem:[%s4904_s1 + $0xe0] sm:$0xff]  ;;  %v1443_v62 = vld [vmem:[%s4904_s1 + $0xe8] sm:$0xff] }
  0x22   :  { %2753 = vmatpush1.bf16.msra.mxu0 %v2752_v19  ;;  %v2788_v63 = vpack.c.bf16 %v1443_v62, %v1442_v61  ;;  %v62_v9 = vld [vmem:[%s4903_s0 + $0xd8] sm:$0xff]  ;;  %v3483_v13 = vld [vmem:[%s4903_s0 + $0x88] sm:$0xff]  ;;  %v3529_v30 = vld [vmem:[%s4903_s0 + $0xc0] sm:$0xff] }
  0x23   :  { %2871 = vset.pattern.permute.xlu1 %v3139_v0  ;;  %2754 = vmatprep.subr.bf16.mxu0 %v3142_v11  ;;  %v46_v10 = vld [vmem:[%s4903_s0 + $0x58] sm:$0xff]  ;;  %v3494_v15 = vld [vmem:[%s4903_s0 + $0xc8] sm:$0xff] }
  0x24   :  { %714 = vperm.xlu1 %2871, %v36_v4   ;;  %2843 = vmatpush1.bf16.msra.mxu1 %v2752_v19  ;;  %v58_v18 = vld [vmem:[%s4903_s0 + $0xb8] sm:$0xff]  ;;  %v64_v22 = vld [vmem:[%s4903_s0 + $0xe8] sm:$0xff] }
  0x25   :  { %2889 = vset.pattern.permute.xlu0 %v3141_v5  ;;  %2828 = vmatprep.subr.bf16.mxu1 %v3142_v11  ;;  %v48_v37 = vld [vmem:[%s4903_s0 + $0x68] sm:$0xff] }
  0x26   :  { %71 = vperm.xlu0 %2889, %v3196_v2   ;;  %2756 = vmatpush1.bf16.msra.mxu0 %v2755_v24 }
  0x27   :  { %2757 = vmatprep.subr.bf16.mxu0 %v3142_v11 }
  0x28   :  { %2872 = vset.pattern.permute.xlu1 %v3141_v5  ;;  %2844 = vmatpush1.bf16.msra.mxu1 %v2755_v24 }
  0x29   :  { %77 = vperm.xlu1 %2872, %v3203_v3   ;;  %2829 = vmatprep.subr.bf16.mxu1 %v3142_v11 }
  0x2a   :  { %80 = vperm.xlu0 %2889, %v3236_v12   ;;  %2759 = vmatpush1.bf16.msra.mxu0 %v2758_v28 }
  0x2b   :  { %2760 = vmatprep.subr.bf16.mxu0 %v3142_v11 }
  0x2c   :  { %2845 = vmatpush1.bf16.msra.mxu1 %v2758_v28 }
  0x2d   :  { %2873 = vset.pattern.permute.xlu1 %v3143_v20  ;;  %2830 = vmatprep.subr.bf16.mxu1 %v3142_v11 }
  0x2e   :  { %1066 = vperm.xlu1 %2873, %v36_v4   ;;  %89 = vperm.xlu0 %2889, %v3253_v16   ;;  %v1445_v4 = vld [vmem:[%s4904_s1 + $0xf8] sm:$0xff] }
  0x2f   :  { %2762 = vmatpush1.bf16.msra.mxu0 %v2761_v32 }
  0x30   :  { %2763 = vmatprep.subr.bf16.mxu0 %v3142_v11  ;;  %2846 = vmatpush1.bf16.msra.mxu1 %v2761_v32 }
  0x31   :  { %2831 = vmatprep.subr.bf16.mxu1 %v3142_v11 }
  0x32   :  { %2874 = vset.pattern.permute.xlu1 %v3139_v0  ;;  %98 = vperm.xlu0 %2889, %v3268_v21  }
  0x33   :  { %717 = vperm.xlu1 %2874, %v3203_v3   ;;  %2765 = vmatpush1.bf16.msra.mxu0 %v2764_v35 }
  0x34   :  { %2766 = vmatprep.subr.bf16.mxu0 %v3142_v11  ;;  %2847 = vmatpush1.bf16.msra.mxu1 %v2764_v35 }
  0x35   :  { %2832 = vmatprep.subr.bf16.mxu1 %v3142_v11 }
  0x36   :  { %107 = vperm.xlu0 %2889, %v3284_v25  }
  0x37   :  { %2875 = vset.pattern.permute.xlu1 %v3140_v1  ;;  %2768 = vmatpush1.bf16.msra.mxu0 %v2767_v39 }
  0x38   :  { %368 = vperm.xlu1 %2875, %v3236_v12   ;;  %2769 = vmatprep.subr.bf16.mxu0 %v3142_v11 }
  0x39   :  { %2848 = vmatpush1.bf16.msra.mxu1 %v2767_v39 }
  0x3a   :  { %116 = vperm.xlu0 %2889, %v3299_v29   ;;  %2833 = vmatprep.subr.bf16.mxu1 %v3142_v11 }
  0x3b   :  { %2771 = vmatpush1.bf16.msra.mxu0 %v2770_v42 }
  0x3c   :  { %2876 = vset.pattern.permute.xlu1 %v3143_v20  ;;  %2772 = vmatprep.subr.bf16.mxu0 %v3142_v11 }
  0x3d   :  { %1069 = vperm.xlu1 %2876, %v3203_v3   ;;  %2849 = vmatpush1.bf16.msra.mxu1 %v2770_v42  ;;  %v1444_v3 = vld [vmem:[%s4904_s1 + $0xf0] sm:$0xff]  ;;  %v67_v42 = vlaneseq }
  0x3e   :  { %2908 = vset.pattern.permute.xlu0 %v3139_v0  ;;  %2834 = vmatprep.subr.bf16.mxu1 %v3142_v11  ;;  %v2791_v8 = vpack.c.bf16 %v1445_v4, %v1444_v3 }
  0x3f   :  { %720 = vperm.xlu0 %2908, %v3236_v12   ;;  %2774 = vmatpush1.bf16.msra.mxu0 %v2773_v45 }
  0x40   :  { %2775 = vmatprep.subr.bf16.mxu0 %v3142_v11 }
  0x41   :  { %2877 = vset.pattern.permute.xlu1 %v3141_v5  ;;  %2850 = vmatpush1.bf16.msra.mxu1 %v2773_v45  ;;  %v3570_v45 = vand.u32 127, %v67_v42 }
  0x42   :  { %83 = vperm.xlu1 %2877, %v39_v36   ;;  %2835 = vmatprep.subr.bf16.mxu1 %v3142_v11 }
  0x43   :  { %729 = vperm.xlu0 %2908, %v3253_v16   ;;  %2777 = vmatpush1.bf16.msra.mxu0 %v2776_v48  ;;  %v3577_v47 = vadd.s32 128, %v3570_v45 }
  0x44   :  { %2778 = vmatprep.subr.bf16.mxu0 %v3142_v11 }
  0x45   :  { %2851 = vmatpush1.bf16.msra.mxu1 %v2776_v48 }
  0x46   :  { %2878 = vset.pattern.permute.xlu1 %v3140_v1  ;;  %2836 = vmatprep.subr.bf16.mxu1 %v3142_v11 }
  0x47   :  { %371 = vperm.xlu1 %2878, %v39_v36   ;;  %738 = vperm.xlu0 %2908, %v3268_v21  }
  0x48   :  { %2780 = vmatpush1.bf16.msra.mxu0 %v2779_v52 }
  0x49   :  { %2781 = vmatprep.subr.bf16.mxu0 %v3142_v11  ;;  %2852 = vmatpush1.bf16.msra.mxu1 %v2779_v52  ;;  %v3144_v52 = vmov 0.0  }
  0x4a   :  { %2837 = vmatprep.subr.bf16.mxu1 %v3142_v11 }
  0x4b   :  { %2879 = vset.pattern.permute.xlu1 %v3139_v0  ;;  %747 = vperm.xlu0 %2908, %v3284_v25  }
  0x4c   :  { %723 = vperm.xlu1 %2879, %v39_v36   ;;  %2783 = vmatpush1.bf16.msra.mxu0 %v2782_v56 }
  0x4d   :  { %2784 = vmatprep.subr.bf16.mxu0 %v3142_v11  ;;  %2853 = vmatpush1.bf16.msra.mxu1 %v2782_v56 }
  0x4e   :  { %2838 = vmatprep.subr.bf16.mxu1 %v3142_v11 }
  0x4f   :  { %756 = vperm.xlu0 %2908, %v3299_v29  }
  0x50   :  { %2880 = vset.pattern.permute.xlu1 %v3141_v5  ;;  %2786 = vmatpush1.bf16.msra.mxu0 %v2785_v60 }
  0x51   :  { %86 = vperm.xlu1 %2880, %v3213_v6   ;;  %2787 = vmatprep.subr.bf16.mxu0 %v3142_v11 }
  0x52   :  { %2854 = vmatpush1.bf16.msra.mxu1 %v2785_v60 }
  0x53   :  { %765 = vperm.xlu0 %2908, %v3375_v51   ;;  %2839 = vmatprep.subr.bf16.mxu1 %v3142_v11 }
  0x54   :  { %2789 = vmatpush1.bf16.msra.mxu0 %v2788_v63 }
  0x55   :  { %2881 = vset.pattern.permute.xlu1 %v3143_v20  ;;  %2790 = vmatprep.subr.bf16.mxu0 %v3142_v11 }
  0x56   :  { %1075 = vperm.xlu1 %2881, %v39_v36   ;;  %2855 = vmatpush1.bf16.msra.mxu1 %v2788_v63 }
  0x57   :  { %774 = vperm.xlu0 %2908, %v3390_v55   ;;  %2840 = vmatprep.subr.bf16.mxu1 %v3142_v11  ;;  %v3473_v11 = vld [vmem:[%s4903_s0 + $0x70] sm:$0xff] }
  0x58   :  { %2792 = vmatpush1.bf16.msra.mxu0 %v2791_v8 }
  0x5a   :  { %2882 = vset.pattern.permute.xlu1 %v3139_v0  ;;  %2856 = vmatpush1.bf16.msra.mxu1 %v2791_v8 }
  0x5b   :  { %726 = vperm.xlu1 %2882, %v3213_v6   ;;  %789 = vperm.xlu0 %2908, %v3405_v59  }
  0x5f   :  { %2883 = vset.pattern.permute.xlu1 %v3140_v1  ;;  %2933 = vset.pattern.permute.xlu0 %v3143_v20 }
  0x60   :  { %377 = vperm.xlu1 %2883, %v3253_v16   ;;  %1063 = vperm.xlu0 %2933, %v3196_v2   ;;  %v42_v2 = vld [vmem:[%s4903_s0 + $0x38] sm:$0xff] }
  0x64   :  { %2884 = vset.pattern.permute.xlu1 %v3143_v20  ;;  %1072 = vperm.xlu0 %2933, %v3236_v12   ;;  %v45_v12 = vld [vmem:[%s4903_s0 + $0x50] sm:$0xff] }
  0x65   :  { %1078 = vperm.xlu1 %2884, %v3213_v6   ;;  %v3451_v6 = vld [vmem:[%s4903_s0 + $0x98] sm:$0xff] }
  0x68   :  { %1081 = vperm.xlu0 %2933, %v3253_v16  }
  0x69   :  { %2885 = vset.pattern.permute.xlu1 %v3141_v5 }
  0x6a   :  { %92 = vperm.xlu1 %2885, %v42_v2  }
  0x6c   :  { %1090 = vperm.xlu0 %2933, %v3268_v21  }
  0x6e   :  { %2886 = vset.pattern.permute.xlu1 %v3140_v1 }
  0x6f   :  { %380 = vperm.xlu1 %2886, %v42_v2  }
  0x70   :  { %1099 = vperm.xlu0 %2933, %v3284_v25  }
  0x73   :  { %2887 = vset.pattern.permute.xlu1 %v3139_v0 }
  0x74   :  { %732 = vperm.xlu1 %2887, %v42_v2   ;;  %1108 = vperm.xlu0 %2933, %v3299_v29  }
  0x78   :  { %2888 = vset.pattern.permute.xlu1 %v3141_v5  ;;  %1117 = vperm.xlu0 %2933, %v3375_v51  }
  0x79   :  { %95 = vperm.xlu1 %2888, %v3220_v7  }
  0x7c   :  { %1120 = vperm.xlu0 %2933, %v3451_v6  }
  0x7d   :  { %2890 = vset.pattern.permute.xlu1 %v3143_v20 }
  0x7e   :  { %1084 = vperm.xlu1 %2890, %v42_v2  }
  0x80   :  { %1126 = vperm.xlu0 %2933, %v3390_v55  }
  0x82   :  { %2891 = vset.pattern.permute.xlu1 %v3139_v0 }
  0x83   :  { %735 = vperm.xlu1 %2891, %v3220_v7  }
  0x84   :  { %1141 = vperm.xlu0 %2933, %v3405_v59  }
  0x87   :  { %2892 = vset.pattern.permute.xlu1 %v3140_v1 }
  0x88   :  { %386 = vperm.xlu1 %2892, %v3268_v21   ;;  %1144 = vperm.xlu0 %2933, %v62_v9  }
  0x8c   :  { %2893 = vset.pattern.permute.xlu1 %v3143_v20  ;;  %2940 = vset.pattern.permute.xlu0 %v3140_v1 }
  0x8d   :  { %1087 = vperm.xlu1 %2893, %v3220_v7   ;;  %392 = vperm.xlu0 %2940, %v46_v10  }
  0x91   :  { %2894 = vset.pattern.permute.xlu1 %v3141_v5  ;;  %401 = vperm.xlu0 %2940, %v3473_v11  }
  0x92   :  { %101 = vperm.xlu1 %2894, %v45_v12  }
  0x94   :  { %v3485_v7 = vpop.permute.xlu1 %711  ;;  %v3487_v14 = vpop.permute.xlu0 %359 }
  0x95   :  { %410 = vperm.xlu0 %2940, %v3483_v13   ;;  %vm806_vm0 = vcmp.eq.s32.totalorder %v3570_v45, %v3485_v7  ;;  %vm807_vm1 = vcmp.eq.s32.totalorder %v3577_v47, %v3485_v7  ;;  %vm454_vm2 = vcmp.eq.s32.totalorder %v3570_v45, %v3487_v14  ;;  %vm455_vm3 = vcmp.eq.s32.totalorder %v3577_v47, %v3487_v14 }
  0x96   :  { %2895 = vset.pattern.permute.xlu1 %v3140_v1  ;;  %v2487_v53 = vsel %vm806_vm0, 1.0, %v3144_v52  ;;  %v2423_v54 = vsel %vm454_vm2, 1.0, %v3144_v52  ;;  %v2488_v57 = vsel %vm807_vm1, 1.0, %v3144_v52 }
  0x97   :  { %389 = vperm.xlu1 %2895, %v45_v12  }
  0x98   :  { %v3496_v16 = vpop.permute.xlu0 %365 }
  0x99   :  { %v3498_v17 = vpop.permute.xlu1 %74  ;;  %434 = vperm.xlu0 %2940, %v3494_v15   ;;  %vm458_vm4 = vcmp.eq.s32.totalorder %v3570_v45, %v3496_v16  ;;  %vm459_vm5 = vcmp.eq.s32.totalorder %v3577_v47, %v3496_v16 }
  0x9a   :  { %vm168_vm6 = vcmp.eq.s32.totalorder %v3570_v45, %v3498_v17  ;;  %vm169_vm7 = vcmp.eq.s32.totalorder %v3577_v47, %v3498_v17  ;;  %v2427_v58 = vsel %vm458_vm4, 1.0, %v3144_v52 }
  0x9b   :  { %2896 = vset.pattern.permute.xlu1 %v3139_v0  ;;  %v2361_v3 = vsel %vm168_vm6, 1.0, %v3144_v52  ;;  %v2362_v4 = vsel %vm169_vm7, 1.0, %v3144_v52 }
  0x9c   :  { %741 = vperm.xlu1 %2896, %v45_v12   ;;  %v3505_v19 = vpop.permute.xlu0 %374 }
  0x9d   :  { %428 = vperm.xlu0 %2940, %v58_v18   ;;  %vm464_vm0 = vcmp.eq.s32.totalorder %v3570_v45, %v3505_v19  ;;  %vm465_vm1 = vcmp.eq.s32.totalorder %v3577_v47, %v3505_v19 }
  0x9e   :  { %v3507_v21 = vpop.permute.xlu1 %362  ;;  %v3655_v14 = vsel %vm464_vm0, 1.0, %v3144_v52  ;;  %v3658_v16 = vsel %vm465_vm1, 1.0, %v3144_v52 }
  0x9f   :  { %vm456_vm8 = vcmp.eq.s32.totalorder %v3570_v45, %v3507_v21  ;;  %vm457_vm9 = vcmp.eq.s32.totalorder %v3577_v47, %v3507_v21 }
  0xa0   :  { %2897 = vset.pattern.permute.xlu1 %v3141_v5  ;;  %v3513_v23 = vpop.permute.xlu0 %383  ;;  %v2425_v61 = vsel %vm456_vm8, 1.0, %v3144_v52  ;;  %v2426_v62 = vsel %vm457_vm9, 1.0, %v3144_v52 }
  0xa1   :  { %104 = vperm.xlu1 %2897, %v46_v10   ;;  %446 = vperm.xlu0 %2940, %v64_v22   ;;  %v648_v17 = vadd.f32 %v2425_v61, %v2361_v3  ;;  %v649_v18 = vadd.f32 %v2426_v62, %v2362_v4 }
  0xa3   :  { %v3515_v24 = vpop.permute.xlu1 %714 }
  0xa4   :  { %vm808_vm12 = vcmp.eq.s32.totalorder %v3570_v45, %v3515_v24  ;;  %vm809_vm13 = vcmp.eq.s32.totalorder %v3577_v47, %v3515_v24 }
  0xa5   :  { %2898 = vset.pattern.permute.xlu1 %v3143_v20  ;;  %v3518_v26 = vpop.permute.xlu0 %71  ;;  %2943 = vset.pattern.permute.xlu0 %v3141_v5  ;;  %v2489_v9 = vsel %vm808_vm12, 1.0, %v3144_v52 }
  0xa6   :  { %1093 = vperm.xlu1 %2898, %v45_v12   ;;  %125 = vperm.xlu0 %2943, %v3375_v51   ;;  %vm166_vm10 = vcmp.eq.s32.totalorder %v3570_v45, %v3518_v26  ;;  %vm167_vm11 = vcmp.eq.s32.totalorder %v3577_v47, %v3518_v26  ;;  %v3668_v24 = vadd.f32 %v2489_v9, %v648_v17 }
  0xa7   :  { %v2359_v8 = vsel %vm166_vm10, 1.0, %v3144_v52  ;;  %v2360_v2 = vsel %vm167_vm11, 1.0, %v3144_v52 }
  0xa8   :  { %v3521_v27 = vpop.permute.xlu1 %77  ;;  %v646_v19 = vadd.f32 %v2423_v54, %v2359_v8 }
  0xa9   :  { %v3524_v28 = vpop.permute.xlu0 %80  ;;  %vm170_vm14 = vcmp.eq.s32.totalorder %v3570_v45, %v3521_v27  ;;  %vm171_vm15 = vcmp.eq.s32.totalorder %v3577_v47, %v3521_v27 }
  0xaa   :  { %2899 = vset.pattern.permute.xlu1 %v3139_v0  ;;  %143 = vperm.xlu0 %2943, %v3529_v30   ;;  %v2363_v12 = vsel %vm170_vm14, 1.0, %v3144_v52  ;;  %v2364_v7 = vsel %vm171_vm15, 1.0, %v3144_v52  ;;  %vm172_vm2 = vcmp.eq.s32.totalorder %v3570_v45, %v3524_v28 }
  0xab   :  { %744 = vperm.xlu1 %2899, %v46_v10   ;;  %v650_v27 = vadd.f32 %v2427_v58, %v2363_v12 }
  0xad   :  { %v3533_v31 = vpop.permute.xlu1 %1066  ;;  %v3535_v32 = vpop.permute.xlu0 %89 }
  0xae   :  { %134 = vperm.xlu0 %2943, %v3390_v55   ;;  %v2424_v55 = vsel %vm455_vm3, 1.0, %v3144_v52  ;;  %vm173_vm3 = vcmp.eq.s32.totalorder %v3577_v47, %v3524_v28  ;;  %vm1160_vm4 = vcmp.eq.s32.totalorder %v3570_v45, %v3533_v31  ;;  %v2365_v28 = vsel %vm172_vm2, 1.0, %v3144_v52 }
  0xaf   :  { %2900 = vset.pattern.permute.xlu1 %v3140_v1  ;;  %v2366_v42 = vsel %vm173_vm3, 1.0, %v3144_v52  ;;  %vm178_vm10 = vcmp.eq.s32.totalorder %v3570_v45, %v3535_v32  ;;  %vm179_vm11 = vcmp.eq.s32.totalorder %v3577_v47, %v3535_v32  ;;  %v2553_v54 = vsel %vm1160_vm4, 1.0, %v3144_v52 }
  0xb0   :  { %395 = vperm.xlu1 %2900, %v3284_v25  }
  0xb1   :  { %v3540_v33 = vpop.permute.xlu0 %98 }
  0xb2   :  { %v3542_v34 = vpop.permute.xlu1 %717  ;;  %149 = vperm.xlu0 %2943, %v3405_v59   ;;  %v2428_v59 = vsel %vm459_vm5, 1.0, %v3144_v52  ;;  %vm1161_vm5 = vcmp.eq.s32.totalorder %v3577_v47, %v3533_v31 }
  0xb3   :  { %vm810_vm6 = vcmp.eq.s32.totalorder %v3570_v45, %v3542_v34  ;;  %vm811_vm7 = vcmp.eq.s32.totalorder %v3577_v47, %v3542_v34  ;;  %v998_v34 = vadd.f32 %v2487_v53, %v646_v19 }
  0xb4   :  { %2901 = vset.pattern.permute.xlu1 %v3143_v20  ;;  %v2491_v58 = vsel %vm810_vm6, 1.0, %v3144_v52 }
  0xb5   :  { %1096 = vperm.xlu1 %2901, %v46_v10   ;;  %v3546_v35 = vpop.permute.xlu0 %107  ;;  %v2490_v10 = vsel %vm809_vm13, 1.0, %v3144_v52  ;;  %v1002_v9 = vadd.f32 %v2491_v58, %v650_v27 }
  0xb6   :  { %v1001_v26 = vadd.f32 %v2490_v10, %v649_v18 }
  0xb7   :  { %v3548_v36 = vpop.permute.xlu1 %368 }
  0xb8   :  { %vm460_vm8 = vcmp.eq.s32.totalorder %v3570_v45, %v3548_v36  ;;  %vm461_vm9 = vcmp.eq.s32.totalorder %v3577_v47, %v3548_v36 }
  0xb9   :  { %2902 = vset.pattern.permute.xlu1 %v3141_v5  ;;  %v3554_v25 = vpop.permute.xlu0 %116  ;;  %v2429_v62 = vsel %vm460_vm8, 1.0, %v3144_v52  ;;  %v2430_v53 = vsel %vm461_vm9, 1.0, %v3144_v52 }
  0xba   :  { %110 = vperm.xlu1 %2902, %v48_v37   ;;  %v652_v17 = vadd.f32 %v2429_v62, %v2365_v28  ;;  %v653_v27 = vadd.f32 %v2430_v53, %v2366_v42 }
  0xbc   :  { %v3556_v38 = vpop.permute.xlu1 %1069 }
  0xbd   :  { %vm1162_vm14 = vcmp.eq.s32.totalorder %v3570_v45, %v3556_v38  ;;  %vm1163_vm15 = vcmp.eq.s32.totalorder %v3577_v47, %v3556_v38  ;;  %v3749_v38 = vsel %vm179_vm11, 1.0, %v3144_v52 }
  0xbe   :  { %2903 = vset.pattern.permute.xlu1 %v3140_v1  ;;  %v3559_v39 = vpop.permute.xlu0 %720  ;;  %v2555_v18 = vsel %vm1162_vm14, 1.0, %v3144_v52  ;;  %v2556_v19 = vsel %vm1163_vm15, 1.0, %v3144_v52 }
  0xbf   :  { %398 = vperm.xlu1 %2903, %v48_v37   ;;  %vm812_vm0 = vcmp.eq.s32.totalorder %v3570_v45, %v3559_v39  ;;  %vm813_vm1 = vcmp.eq.s32.totalorder %v3577_v47, %v3559_v39  ;;  %v1354_v28 = vadd.f32 %v2555_v18, %v1002_v9 }
  0xc1   :  { %v3561_v40 = vpop.permute.xlu1 %83 }
  0xc2   :  { %v3563_v41 = vpop.permute.xlu0 %729  ;;  %vm174_vm4 = vcmp.eq.s32.totalorder %v3570_v45, %v3561_v40 }
  0xc3   :  { %2904 = vset.pattern.permute.xlu1 %v3139_v0  ;;  %vm819_vm9 = vcmp.eq.s32.totalorder %v3577_v47, %v3563_v41 }
  0xc4   :  { %750 = vperm.xlu1 %2904, %v48_v37  }
  0xc6   :  { %v3566_v43 = vpop.permute.xlu1 %371  ;;  %v3568_v44 = vpop.permute.xlu0 %738 }
  0xc7   :  { %vm462_vm2 = vcmp.eq.s32.totalorder %v3570_v45, %v3566_v43  ;;  %vm463_vm3 = vcmp.eq.s32.totalorder %v3577_v47, %v3566_v43  ;;  %v1352_v43 = vadd.f32 %v2553_v54, %v3668_v24 }
  0xc8   :  { %2905 = vset.pattern.permute.xlu1 %v3141_v5  ;;  %v2431_v39 = vsel %vm462_vm2, 1.0, %v3144_v52 }
  0xc9   :  { %113 = vperm.xlu1 %2905, %v3473_v11  }
  0xca   :  { %v3574_v46 = vpop.permute.xlu0 %747 }
  0xcb   :  { %v3579_v48 = vpop.permute.xlu1 %723 }
  0xcd   :  { %2906 = vset.pattern.permute.xlu1 %v3143_v20 }
  0xce   :  { %1102 = vperm.xlu1 %2906, %v48_v37   ;;  %v3582_v49 = vpop.permute.xlu0 %756  ;;  %v651_v37 = vadd.f32 %v2428_v59, %v2364_v7  ;;  %v2492_v59 = vsel %vm811_vm7, 1.0, %v3144_v52  ;;  %vm815_vm7 = vcmp.eq.s32.totalorder %v3577_v47, %v3579_v48 }
  0xd0   :  { %v3592_v50 = vpop.permute.xlu1 %86  ;;  %v1003_v10 = vadd.f32 %v2492_v59, %v651_v37  ;;  %v2494_v37 = vsel %vm813_vm1, 1.0, %v3144_v52 }
  0xd2   :  { %2907 = vset.pattern.permute.xlu1 %v3139_v0  ;;  %v3602_v56 = vpop.permute.xlu0 %765  ;;  %v1355_v32 = vadd.f32 %v2556_v19, %v1003_v10 }
  0xd3   :  { %753 = vperm.xlu1 %2907, %v3473_v11  }
  0xd5   :  { %v3628_v60 = vpop.permute.xlu1 %1075 }
  0xd6   :  { %v3636_v63 = vpop.permute.xlu0 %774  ;;  %vm1167_vm11 = vcmp.eq.s32.totalorder %v3577_v47, %v3628_v60 }
  0xd7   :  { %2909 = vset.pattern.permute.xlu1 %v3140_v1 }
  0xd8   :  { %404 = vperm.xlu1 %2909, %v3299_v29   ;;  %v647_v29 = vadd.f32 %v2424_v55, %v2360_v2  ;;  %v2554_v55 = vsel %vm1161_vm5, 1.0, %v3144_v52  ;;  %v3721_v2 = vsel %vm178_vm10, 1.0, %v3144_v52  ;;  %vm175_vm5 = vcmp.eq.s32.totalorder %v3577_v47, %v3561_v40 }
  0xd9   :  { %v1353_v7 = vadd.f32 %v2554_v55, %v1001_v26  ;;  %v2493_v26 = vsel %vm812_vm0, 1.0, %v3144_v52  ;;  %v2367_v40 = vsel %vm174_vm4, 1.0, %v3144_v52  ;;  %v2368_v55 = vsel %vm175_vm5, 1.0, %v3144_v52 }
  0xda   :  { %v3664_v21 = vpop.permute.xlu1 %726  ;;  %v3666_v22 = vpop.permute.xlu0 %789  ;;  %v999_v31 = vadd.f32 %v2488_v57, %v647_v29  ;;  %v1004_v42 = vadd.f32 %v2493_v26, %v652_v17  ;;  %v654_v24 = vadd.f32 %v2431_v39, %v2367_v40  ;;  %vm177_vm10 = vcmp.eq.s32.totalorder %v3577_v47, %v3592_v50 }
  0xdb   :  { %vm817_vm14 = vcmp.eq.s32.totalorder %v3577_v47, %v3664_v21  ;;  %v2370_v53 = vsel %vm177_vm10, 1.0, %v3144_v52  ;;  %vm1166_vm0 = vcmp.eq.s32.totalorder %v3570_v45, %v3628_v60  ;;  %vm818_vm4 = vcmp.eq.s32.totalorder %v3570_v45, %v3563_v41 }
  0xdc   :  { %2910 = vset.pattern.permute.xlu1 %v3143_v20  ;;  %v2498_v9 = vsel %vm817_vm14, 1.0, %v3144_v52  ;;  %v657_v17 = vadd.f32 %v3658_v16, %v2370_v53  ;;  %v2559_v18 = vsel %vm1166_vm0, 1.0, %v3144_v52  ;;  %vm470_vm0 = vcmp.eq.s32.totalorder %v3570_v45, %v3513_v23 }
  0xdd   :  { %1105 = vperm.xlu1 %2910, %v3473_v11   ;;  %v3699_v11 = vld [vmem:[%s4903_s0 + $0x80] sm:$0xff] }
  0xdf   :  { %v3694_v61 = vpop.permute.xlu1 %377  ;;  %v1064_v36 = vpop.permute.xlu0 %1063 }
  0xe0   :  { %vm1158_vm12 = vcmp.eq.s32.totalorder %v3570_v45, %v1064_v36  ;;  %vm1159_vm13 = vcmp.eq.s32.totalorder %v3577_v47, %v1064_v36  ;;  %v2496_v36 = vsel %vm815_vm7, 1.0, %v3144_v52  ;;  %vm467_vm15 = vcmp.eq.s32.totalorder %v3577_v47, %v3694_v61 }
  0xe1   :  { %v2551_v57 = vsel %vm1158_vm12, 1.0, %v3144_v52  ;;  %2911 = vset.pattern.permute.xlu1 %v3141_v5  ;;  %v2552_v3 = vsel %vm1159_vm13, 1.0, %v3144_v52  ;;  %vm814_vm12 = vcmp.eq.s32.totalorder %v3570_v45, %v3579_v48  ;;  %vm176_vm13 = vcmp.eq.s32.totalorder %v3570_v45, %v3592_v50 }
  0xe2   :  { %119 = vperm.xlu1 %2911, %v3699_v11   ;;  %v1351_v4 = vadd.f32 %v2552_v3, %v999_v31  ;;  %v1350_v8 = vadd.f32 %v2551_v57, %v998_v34  ;;  %v1005_v31 = vadd.f32 %v2494_v37, %v653_v27  ;;  %v2432_v34 = vsel %vm463_vm3, 1.0, %v3144_v52 }
  0xe3   :  { %v1073_v12 = vpop.permute.xlu0 %1072  ;;  %v655_v54 = vadd.f32 %v2432_v34, %v2368_v55  ;;  %v2560_v50 = vsel %vm1167_vm11, 1.0, %v3144_v52  ;;  %vm466_vm1 = vcmp.eq.s32.totalorder %v3570_v45, %v3694_v61  ;;  %v2495_v57 = vsel %vm814_vm12, 1.0, %v3144_v52 }
  0xe4   :  { %v3733_v29 = vpop.permute.xlu1 %1078  ;;  %1517 = vmatprep.mubr.f32.mxu0 %v1351_v4  ;;  %vm1165_vm6 = vcmp.eq.s32.totalorder %v3577_v47, %v1073_v12  ;;  %vm1164_vm8 = vcmp.eq.s32.totalorder %v3570_v45, %v1073_v12  ;;  %v2369_v4 = vsel %vm176_vm13, 1.0, %v3144_v52  ;;  %vm816_vm3 = vcmp.eq.s32.totalorder %v3570_v45, %v3664_v21 }
  0xe5   :  { %1518 = vmatmul.mubr.f32.vlgmr.msra.gmra.mrb[0].mxu0 %v1350_v8  ;;  %v2558_v58 = vsel %vm1165_vm6, 1.0, %v3144_v52  ;;  %v2557_v62 = vsel %vm1164_vm8, 1.0, %v3144_v52  ;;  %v1007_v3 = vadd.f32 %v2496_v36, %v655_v54  ;;  %vm1169_vm2 = vcmp.eq.s32.totalorder %v3577_v47, %v3733_v29 }
  0xe6   :  { %2912 = vset.pattern.permute.xlu1 %v3140_v1  ;;  %1522 = vmatprep.mubr.f32.mxu0 %v1353_v7  ;;  %v1357_v48 = vadd.f32 %v2558_v58, %v1005_v31  ;;  %v2436_v10 = vsel %vm467_vm15, 1.0, %v3144_v52  ;;  %v1356_v7 = vadd.f32 %v2557_v62, %v1004_v42  ;;  %v2435_v19 = vsel %vm466_vm1, 1.0, %v3144_v52 }
  0xe7   :  { %407 = vperm.xlu1 %2912, %v3699_v11   ;;  %v1082_v12 = vpop.permute.xlu0 %1081  ;;  %v1359_v27 = vadd.f32 %v2560_v50, %v1007_v3  ;;  %v1006_v26 = vadd.f32 %v2495_v57, %v654_v24  ;;  %vm1168_vm5 = vcmp.eq.s32.totalorder %v3570_v45, %v3733_v29  ;;  %v2562_v16 = vsel %vm1169_vm2, 1.0, %v3144_v52 }
  0xe8   :  { %v2497_v60 = vsel %vm816_vm3, 1.0, %v3144_v52  ;;  %v1009_v61 = vadd.f32 %v2498_v9, %v657_v17  ;;  %v659_v37 = vadd.f32 %v2436_v10, %v3749_v38  ;;  %vm1171_vm6 = vcmp.eq.s32.totalorder %v3577_v47, %v1082_v12 }
  0xe9   :  { %v3767_v59 = vpop.permute.xlu1 %92  ;;  %1523 = vmatmul.mubr.f32.gmra.mrb[2].mxu0 %v1352_v43  ;;  %v2500_v29 = vsel %vm819_vm9, 1.0, %v3144_v52  ;;  %v656_v39 = vadd.f32 %v3655_v14, %v2369_v4  ;;  %v658_v43 = vadd.f32 %v2435_v19, %v3721_v2  ;;  %v2499_v21 = vsel %vm818_vm4, 1.0, %v3144_v52  ;;  %v3868_v4 = vld [vmem:[%s4903_s0 + $0xe0] sm:$0xff] }
  0xea   :  { %1527 = vmatprep.mubr.f32.mxu0 %v1355_v32  ;;  %v2561_v38 = vsel %vm1168_vm5, 1.0, %v3144_v52  ;;  %vm1170_vm7 = vcmp.eq.s32.totalorder %v3570_v45, %v1082_v12  ;;  %v1361_v42 = vadd.f32 %v2562_v16, %v1009_v61  ;;  %v2564_v34 = vsel %vm1171_vm6, 1.0, %v3144_v52  ;;  %155 = vperm.xlu0 %2943, %v3868_v4  }
  0xeb   :  { %2913 = vset.pattern.permute.xlu1 %v3139_v0  ;;  %v1008_v31 = vadd.f32 %v2497_v60, %v656_v39  ;;  %v1011_v41 = vadd.f32 %v2500_v29, %v659_v37  ;;  %v2563_v14 = vsel %vm1170_vm7, 1.0, %v3144_v52  ;;  %vm180_vm10 = vcmp.eq.s32.totalorder %v3570_v45, %v3767_v59  ;;  %v3857_v54 = vpop.permute.xlu0 %1090 }
  0xec   :  { %759 = vperm.xlu1 %2913, %v3699_v11   ;;  %v1010_v40 = vadd.f32 %v2499_v21, %v658_v43  ;;  %vm181_vm11 = vcmp.eq.s32.totalorder %v3577_v47, %v3767_v59  ;;  %v2373_v62 = vsel %vm180_vm10, 1.0, %v3144_v52  ;;  %vm471_vm1 = vcmp.eq.s32.totalorder %v3577_v47, %v3513_v23 }
  0xed   :  { %1528 = vmatmul.mubr.f32.gmra.mrb[4].mxu0 %v1354_v28  ;;  %v1358_v28 = vadd.f32 %v2559_v18, %v1006_v26  ;;  %v1360_v2 = vadd.f32 %v2561_v38, %v1008_v31  ;;  %v1363_v58 = vadd.f32 %v2564_v34, %v1011_v41  ;;  %v2374_v59 = vsel %vm181_vm11, 1.0, %v3144_v52  ;;  %v3921_v38 = vld [vmem:[%s4903_s0 + $0xf0] sm:$0xff] }
  0xee   :  { %v381_v8 = vpop.permute.xlu1 %380  ;;  %1532 = vmatprep.mubr.f32.mxu0 %v1357_v48  ;;  %v1362_v36 = vadd.f32 %v2563_v14, %v1010_v40  ;;  %vm185_vm2 = vcmp.eq.s32.totalorder %v3577_v47, %v3540_v33  ;;  %vm184_vm4 = vcmp.eq.s32.totalorder %v3570_v45, %v3540_v33  ;;  %v2440_v23 = vsel %vm471_vm1, 1.0, %v3144_v52  ;;  %161 = vperm.xlu0 %2943, %v3921_v38  }
  0xef   :  { %vm468_vm8 = vcmp.eq.s32.totalorder %v3570_v45, %v381_v8  ;;  %vm469_vm9 = vcmp.eq.s32.totalorder %v3577_v47, %v381_v8  ;;  %v2378_v26 = vsel %vm185_vm2, 1.0, %v3144_v52  ;;  %vm825_vm7 = vcmp.eq.s32.totalorder %v3577_v47, %v3568_v44 }
  0xf0   :  { %2914 = vset.pattern.permute.xlu1 %v3141_v5  ;;  %v2438_v24 = vsel %vm469_vm9, 1.0, %v3144_v52  ;;  %vm824_vm11 = vcmp.eq.s32.totalorder %v3570_v45, %v3568_v44  ;;  %v2506_v39 = vsel %vm825_vm7, 1.0, %v3144_v52 }
  0xf1   :  { %122 = vperm.xlu1 %2914, %v3483_v13   ;;  %1533 = vmatmul.mubr.f32.gmra.mrb[6].mxu0 %v1356_v7  ;;  %v661_v57 = vadd.f32 %v2438_v24, %v2374_v59  ;;  %v3876_v7 = vpop.permute.xlu0 %1099 }
  0xf2   :  { %1537 = vmatprep.mubr.f32.mxu0 %v1359_v27  ;;  %v2439_v27 = vsel %vm470_vm0, 1.0, %v3144_v52  ;;  %2948 = vset.pattern.permute.xlu0 %v3139_v0 }
  0xf3   :  { %v733_v32 = vpop.permute.xlu1 %732  ;;  %801 = vperm.xlu0 %2948, %v3921_v38  }
  0xf4   :  { %vm820_vm12 = vcmp.eq.s32.totalorder %v3570_v45, %v733_v32  ;;  %vm821_vm13 = vcmp.eq.s32.totalorder %v3577_v47, %v733_v32 }
  0xf5   :  { %2915 = vset.pattern.permute.xlu1 %v3143_v20  ;;  %1538 = vmatmul.mubr.f32.gmra.mrb[8].mxu0 %v1358_v28  ;;  %v2501_v48 = vsel %vm820_vm12, 1.0, %v3144_v52  ;;  %v2502_v53 = vsel %vm821_vm13, 1.0, %v3144_v52  ;;  %vm1177_vm12 = vcmp.eq.s32.totalorder %v3577_v47, %v3857_v54 }
  0xf6   :  { %1111 = vperm.xlu1 %2915, %v3699_v11   ;;  %1542 = vmatprep.mubr.f32.mxu0 %v1361_v42  ;;  %v2437_v11 = vsel %vm468_vm8, 1.0, %v3144_v52  ;;  %v1013_v9 = vadd.f32 %v2502_v53, %v661_v57  ;;  %v2505_v42 = vsel %vm824_vm11, 1.0, %v3144_v52  ;;  %v2570_v40 = vsel %vm1177_vm12, 1.0, %v3144_v52  ;;  %v3945_v57 = vld [vmem:[%s4903_s0 + $0xa0] sm:$0xff] }
  0xf7   :  { %v660_v50 = vadd.f32 %v2437_v11, %v2373_v62  ;;  %2951 = vset.pattern.permute.xlu0 %v3143_v20 }
  0xf8   :  { %v96_v55 = vpop.permute.xlu1 %95  ;;  %1153 = vperm.xlu0 %2951, %v3921_v38  }
  0xf9   :  { %1543 = vmatmul.mubr.f32.gmra.mrb[10].mxu0 %v1360_v2  ;;  %v1012_v8 = vadd.f32 %v2501_v48, %v660_v50  ;;  %vm182_vm3 = vcmp.eq.s32.totalorder %v3570_v45, %v96_v55  ;;  %vm183_vm5 = vcmp.eq.s32.totalorder %v3577_v47, %v96_v55 }
  0xfa   :  { %2916 = vset.pattern.permute.xlu1 %v3139_v0  ;;  %1547 = vmatprep.mubr.f32.mxu0 %v1363_v58  ;;  %v2375_v16 = vsel %vm182_vm3, 1.0, %v3144_v52  ;;  %v2376_v60 = vsel %vm183_vm5, 1.0, %v3144_v52 }
  0xfb   :  { %762 = vperm.xlu1 %2916, %v3483_v13   ;;  %v662_v43 = vadd.f32 %v2439_v27, %v2375_v16  ;;  %v663_v21 = vadd.f32 %v2440_v23, %v2376_v60 }
  0xfd   :  { %v1085_v3 = vpop.permute.xlu1 %1084  ;;  %1548 = vmatmul.mubr.f32.gmra.mrb[12].mxu0 %v1362_v36 }
  0xfe   :  { %vm1172_vm14 = vcmp.eq.s32.totalorder %v3570_v45, %v1085_v3  ;;  %vm1173_vm15 = vcmp.eq.s32.totalorder %v3577_v47, %v1085_v3 }
  0xff   :  { %v2565_v10 = vsel %vm1172_vm14, 1.0, %v3144_v52  ;;  %v2566_v12 = vsel %vm1173_vm15, 1.0, %v3144_v52  ;;  %2917 = vset.pattern.permute.xlu1 %v3140_v1  ;;  %vm1176_vm15 = vcmp.eq.s32.totalorder %v3570_v45, %v3857_v54 }
 0x100   :  { %413 = vperm.xlu1 %2917, %v3375_v51   ;;  %v1365_v17 = vadd.f32 %v2566_v12, %v1013_v9  ;;  %v1364_v18 = vadd.f32 %v2565_v10, %v1012_v8  ;;  %v3891_v51 = vpop.permute.xlu0 %1108  ;;  %v2569_v62 = vsel %vm1176_vm15, 1.0, %v3144_v52  ;;  %vm831_vm15 = vcmp.eq.s32.totalorder %v3577_v47, %v3574_v46 }
 0x102   :  { %v736_v19 = vpop.permute.xlu1 %735  ;;  %1552 = vmatprep.mubr.f32.mxu0 %v1365_v17 }
 0x103   :  { %1553 = vmatmul.mubr.f32.gmra.mrb[14].mxu0 %v1364_v18  ;;  %vm822_vm6 = vcmp.eq.s32.totalorder %v3570_v45, %v736_v19  ;;  %vm823_vm8 = vcmp.eq.s32.totalorder %v3577_v47, %v736_v19 }
 0x104   :  { %2918 = vset.pattern.permute.xlu1 %v3143_v20  ;;  %v2503_v61 = vsel %vm822_vm6, 1.0, %v3144_v52  ;;  %v2504_v32 = vsel %vm823_vm8, 1.0, %v3144_v52  ;;  %v3916_v44 = vpop.permute.xlu0 %1117  ;;  %vm190_vm8 = vcmp.eq.s32.totalorder %v3570_v45, %v3546_v35 }
 0x105   :  { %1114 = vperm.xlu1 %2918, %v3483_v13   ;;  %v2377_v13 = vsel %vm184_vm4, 1.0, %v3144_v52  ;;  %v1014_v31 = vadd.f32 %v2503_v61, %v662_v43  ;;  %v1015_v14 = vadd.f32 %v2504_v32, %v663_v21 }
 0x107   :  { %v387_v33 = vpop.permute.xlu1 %386 }
 0x108   :  { %vm472_vm9 = vcmp.eq.s32.totalorder %v3570_v45, %v387_v33  ;;  %vm473_vm10 = vcmp.eq.s32.totalorder %v3577_v47, %v387_v33  ;;  %v3936_v59 = vpop.permute.xlu0 %1120 }
 0x109   :  { %v2441_v37 = vsel %vm472_vm9, 1.0, %v3144_v52  ;;  %v2442_v29 = vsel %vm473_vm10, 1.0, %v3144_v52  ;;  %2919 = vset.pattern.permute.xlu1 %v3141_v5  ;;  %vm191_vm9 = vcmp.eq.s32.totalorder %v3577_v47, %v3546_v35 }
 0x10a   :  { %v665_v28 = vadd.f32 %v2442_v29, %v2378_v26  ;;  %128 = vperm.xlu1 %2919, %v3451_v6   ;;  %v664_v34 = vadd.f32 %v2441_v37, %v2377_v13  ;;  %v2384_v21 = vsel %vm191_vm9, 1.0, %v3144_v52 }
 0x10c   :  { %v1088_v41 = vpop.permute.xlu1 %1087  ;;  %v1017_v2 = vadd.f32 %v2506_v39, %v665_v28  ;;  %v1016_v36 = vadd.f32 %v2505_v42, %v664_v34  ;;  %v3948_v3 = vpop.permute.xlu0 %1126  ;;  %v2383_v28 = vsel %vm190_vm8, 1.0, %v3144_v52 }
 0x10d   :  { %vm1174_vm13 = vcmp.eq.s32.totalorder %v3570_v45, %v1088_v41  ;;  %vm1175_vm14 = vcmp.eq.s32.totalorder %v3577_v47, %v1088_v41 }
 0x10e   :  { %v2567_v55 = vsel %vm1174_vm13, 1.0, %v3144_v52  ;;  %v2568_v58 = vsel %vm1175_vm14, 1.0, %v3144_v52  ;;  %2920 = vset.pattern.permute.xlu1 %v3140_v1  ;;  %v1369_v48 = vadd.f32 %v2570_v40, %v1017_v2  ;;  %v1368_v53 = vadd.f32 %v2569_v62, %v1016_v36 }
 0x10f   :  { %416 = vperm.xlu1 %2920, %v3451_v6   ;;  %v1367_v11 = vadd.f32 %v2568_v58, %v1015_v14  ;;  %v1366_v24 = vadd.f32 %v2567_v55, %v1014_v31  ;;  %v2512_v55 = vsel %vm831_vm15, 1.0, %v3144_v52 }
 0x111   :  { %v102_v54 = vpop.permute.xlu1 %101  ;;  %1557 = vmatprep.mubr.f32.mxu0 %v1367_v11 }
 0x112   :  { %1558 = vmatmul.mubr.f32.gmra.mrb[16].mxu0 %v1366_v24  ;;  %vm186_vm2 = vcmp.eq.s32.totalorder %v3570_v45, %v102_v54  ;;  %vm187_vm3 = vcmp.eq.s32.totalorder %v3577_v47, %v102_v54 }
 0x113   :  { %2921 = vset.pattern.permute.xlu1 %v3139_v0  ;;  %1562 = vmatprep.mubr.f32.mxu0 %v1369_v48  ;;  %v2379_v17 = vsel %vm186_vm2, 1.0, %v3144_v52  ;;  %v2380_v18 = vsel %vm187_vm3, 1.0, %v3144_v52  ;;  %vm830_vm3 = vcmp.eq.s32.totalorder %v3570_v45, %v3574_v46 }
 0x114   :  { %768 = vperm.xlu1 %2921, %v3451_v6   ;;  %v3952_v6 = vpop.permute.xlu0 %1141  ;;  %v2511_v62 = vsel %vm830_vm3, 1.0, %v3144_v52 }
 0x116   :  { %v390_v50 = vpop.permute.xlu1 %389  ;;  %1563 = vmatmul.mubr.f32.gmra.mrb[18].mxu0 %v1368_v53 }
 0x117   :  { %vm474_vm0 = vcmp.eq.s32.totalorder %v3570_v45, %v390_v50  ;;  %vm475_vm1 = vcmp.eq.s32.totalorder %v3577_v47, %v390_v50  ;;  %v3082_v50 = vld [vmem:[%s4903_s0 + $0xa8] sm:$0xff] }
 0x118   :  { %2922 = vset.pattern.permute.xlu1 %v3141_v5  ;;  %v2443_v10 = vsel %vm474_vm0, 1.0, %v3144_v52  ;;  %v2444_v12 = vsel %vm475_vm1, 1.0, %v3144_v52  ;;  %v3969_v23 = vpop.permute.xlu0 %1144 }
 0x119   :  { %131 = vperm.xlu1 %2922, %v3945_v57   ;;  %v666_v26 = vadd.f32 %v2443_v10, %v2379_v17  ;;  %v667_v16 = vadd.f32 %v2444_v12, %v2380_v18 }
 0x11b   :  { %v742_v8 = vpop.permute.xlu1 %741 }
 0x11c   :  { %vm826_vm4 = vcmp.eq.s32.totalorder %v3570_v45, %v742_v8  ;;  %vm827_vm5 = vcmp.eq.s32.totalorder %v3577_v47, %v742_v8  ;;  %v393_v43 = vpop.permute.xlu0 %392 }
 0x11d   :  { %2923 = vset.pattern.permute.xlu1 %v3140_v1  ;;  %v2507_v19 = vsel %vm826_vm4, 1.0, %v3144_v52  ;;  %v2508_v27 = vsel %vm827_vm5, 1.0, %v3144_v52  ;;  %vm476_vm11 = vcmp.eq.s32.totalorder %v3570_v45, %v393_v43  ;;  %vm477_vm13 = vcmp.eq.s32.totalorder %v3577_v47, %v393_v43 }
 0x11e   :  { %419 = vperm.xlu1 %2923, %v3945_v57   ;;  %v1018_v13 = vadd.f32 %v2507_v19, %v666_v26  ;;  %v1019_v60 = vadd.f32 %v2508_v27, %v667_v16  ;;  %v2445_v42 = vsel %vm476_vm11, 1.0, %v3144_v52  ;;  %v2446_v41 = vsel %vm477_vm13, 1.0, %v3144_v52 }
 0x11f   :  { %vm1183_vm4 = vcmp.eq.s32.totalorder %v3577_v47, %v3876_v7 }
 0x120   :  { %v105_v9 = vpop.permute.xlu1 %104 }
 0x121   :  { %vm188_vm10 = vcmp.eq.s32.totalorder %v3570_v45, %v105_v9  ;;  %vm189_vm12 = vcmp.eq.s32.totalorder %v3577_v47, %v105_v9  ;;  %v2576_v9 = vsel %vm1183_vm4, 1.0, %v3144_v52 }
 0x122   :  { %431 = vperm.xlu1 %2923, %v3529_v30   ;;  %v2381_v35 = vsel %vm188_vm10, 1.0, %v3144_v52  ;;  %v2382_v34 = vsel %vm189_vm12, 1.0, %v3144_v52 }
 0x123   :  { %v668_v58 = vadd.f32 %v2445_v42, %v2381_v35  ;;  %v669_v36 = vadd.f32 %v2446_v41, %v2382_v34 }
 0x125   :  { %v1094_v33 = vpop.permute.xlu1 %1093 }
 0x126   :  { %vm1178_vm6 = vcmp.eq.s32.totalorder %v3570_v45, %v1094_v33  ;;  %vm1179_vm7 = vcmp.eq.s32.totalorder %v3577_v47, %v1094_v33  ;;  %2924 = vset.pattern.permute.xlu1 %v3139_v0 }
 0x127   :  { %v2571_v61 = vsel %vm1178_vm6, 1.0, %v3144_v52  ;;  %v2572_v37 = vsel %vm1179_vm7, 1.0, %v3144_v52  ;;  %771 = vperm.xlu1 %2924, %v3945_v57   ;;  %vm1182_vm7 = vcmp.eq.s32.totalorder %v3570_v45, %v3876_v7 }
 0x128   :  { %v1371_v29 = vadd.f32 %v2572_v37, %v1019_v60  ;;  %v1370_v39 = vadd.f32 %v2571_v61, %v1018_v13  ;;  %v2575_v27 = vsel %vm1182_vm7, 1.0, %v3144_v52  ;;  %v4030_v60 = vld [vmem:[%s4903_s0 + $0xb0] sm:$0xff]  ;;  %vm837_vm7 = vcmp.eq.s32.totalorder %v3577_v47, %v3582_v49 }
 0x12a   :  { %v745_v32 = vpop.permute.xlu1 %744  ;;  %1567 = vmatprep.mubr.f32.mxu0 %v1371_v29 }
 0x12b   :  { %783 = vperm.xlu1 %2924, %v3529_v30   ;;  %1568 = vmatmul.mubr.f32.gmra.mrb[20].mxu0 %v1370_v39  ;;  %vm828_vm14 = vcmp.eq.s32.totalorder %v3570_v45, %v745_v32  ;;  %vm829_vm0 = vcmp.eq.s32.totalorder %v3577_v47, %v745_v32 }
 0x12c   :  { %v2509_v14 = vsel %vm828_vm14, 1.0, %v3144_v52  ;;  %v2510_v11 = vsel %vm829_vm0, 1.0, %v3144_v52  ;;  %vm196_vm0 = vcmp.eq.s32.totalorder %v3570_v45, %v3554_v25 }
 0x12d   :  { %v1020_v54 = vadd.f32 %v2509_v14, %v668_v58  ;;  %v1021_v53 = vadd.f32 %v2510_v11, %v669_v36  ;;  %v402_v14 = vpop.permute.xlu0 %401 }
 0x12e   :  { %vm482_vm3 = vcmp.eq.s32.totalorder %v3570_v45, %v402_v14 }
 0x12f   :  { %2925 = vset.pattern.permute.xlu1 %v3141_v5  ;;  %v396_v31 = vpop.permute.xlu1 %395 }
 0x130   :  { %vm478_vm1 = vcmp.eq.s32.totalorder %v3570_v45, %v396_v31  ;;  %vm479_vm2 = vcmp.eq.s32.totalorder %v3577_v47, %v396_v31  ;;  %146 = vperm.xlu1 %2925, %v3494_v15  }
 0x131   :  { %v2447_v2 = vsel %vm478_vm1, 1.0, %v3144_v52  ;;  %v2448_v40 = vsel %vm479_vm2, 1.0, %v3144_v52  ;;  %vm197_vm1 = vcmp.eq.s32.totalorder %v3577_v47, %v3554_v25  ;;  %v3084_v25 = vld [vmem:[%s4903_s0 + $0xc8] sm:$0xff] }
 0x132   :  { %v671_v24 = vadd.f32 %v2448_v40, %v2384_v21  ;;  %v670_v46 = vadd.f32 %v2447_v2, %v2383_v28  ;;  %v3083_v2 = vld [vmem:[%s4903_s0 + $0xd0] sm:$0xff]  ;;  %v2390_v58 = vsel %vm197_vm1, 1.0, %v3144_v52 }
 0x134   :  { %2926 = vset.pattern.permute.xlu1 %v3140_v1  ;;  %v1097_v48 = vpop.permute.xlu1 %1096  ;;  %v1023_v8 = vadd.f32 %v2512_v55, %v671_v24  ;;  %v1022_v19 = vadd.f32 %v2511_v62, %v670_v46  ;;  %v2389_v55 = vsel %vm196_vm0, 1.0, %v3144_v52  ;;  %v2451_v24 = vsel %vm482_vm3, 1.0, %v3144_v52 }
 0x135   :  { %vm1180_vm5 = vcmp.eq.s32.totalorder %v3570_v45, %v1097_v48  ;;  %vm1181_vm6 = vcmp.eq.s32.totalorder %v3577_v47, %v1097_v48  ;;  %422 = vperm.xlu1 %2926, %v3082_v50   ;;  %v2518_v50 = vsel %vm837_vm7, 1.0, %v3144_v52 }
 0x136   :  { %v2573_v10 = vsel %vm1180_vm5, 1.0, %v3144_v52  ;;  %v2574_v12 = vsel %vm1181_vm6, 1.0, %v3144_v52  ;;  %v1375_v16 = vadd.f32 %v2576_v9, %v1023_v8  ;;  %v1374_v7 = vadd.f32 %v2575_v27, %v1022_v19 }
 0x137   :  { %v1373_v17 = vadd.f32 %v2574_v12, %v1021_v53  ;;  %v1372_v18 = vadd.f32 %v2573_v10, %v1020_v54  ;;  %vm483_vm5 = vcmp.eq.s32.totalorder %v3577_v47, %v402_v14 }
 0x138   :  { %v2452_v54 = vsel %vm483_vm5, 1.0, %v3144_v52 }
 0x139   :  { %2927 = vset.pattern.permute.xlu1 %v3143_v20  ;;  %v111_v26 = vpop.permute.xlu1 %110  ;;  %1572 = vmatprep.mubr.f32.mxu0 %v1373_v17 }
 0x13a   :  { %1123 = vperm.xlu1 %2927, %v3945_v57   ;;  %1573 = vmatmul.mubr.f32.gmra.mrb[22].mxu0 %v1372_v18  ;;  %vm192_vm10 = vcmp.eq.s32.totalorder %v3570_v45, %v111_v26  ;;  %vm193_vm11 = vcmp.eq.s32.totalorder %v3577_v47, %v111_v26 }
 0x13b   :  { %1577 = vmatprep.mubr.f32.mxu0 %v1375_v16  ;;  %v2385_v61 = vsel %vm192_vm10, 1.0, %v3144_v52  ;;  %v2386_v37 = vsel %vm193_vm11, 1.0, %v3144_v52  ;;  %vm836_vm11 = vcmp.eq.s32.totalorder %v3570_v45, %v3582_v49 }
 0x13c   :  { %v2517_v49 = vsel %vm836_vm11, 1.0, %v3144_v52 }
 0x13e   :  { %1135 = vperm.xlu1 %2927, %v3529_v30   ;;  %v399_v33 = vpop.permute.xlu1 %398  ;;  %1578 = vmatmul.mubr.f32.gmra.mrb[24].mxu0 %v1374_v7 }
 0x13f   :  { %vm480_vm8 = vcmp.eq.s32.totalorder %v3570_v45, %v399_v33  ;;  %vm481_vm9 = vcmp.eq.s32.totalorder %v3577_v47, %v399_v33 }
 0x140   :  { %v2449_v30 = vsel %vm480_vm8, 1.0, %v3144_v52  ;;  %v2450_v57 = vsel %vm481_vm9, 1.0, %v3144_v52 }
 0x141   :  { %v672_v43 = vadd.f32 %v2449_v30, %v2385_v61  ;;  %v673_v32 = vadd.f32 %v2450_v57, %v2386_v37  ;;  %v4102_v30 = vld [vmem:[%s4903_s0 + $0xb8] sm:$0xff] }
 0x142   :  { %2928 = vset.pattern.permute.xlu1 %v3139_v0 }
 0x143   :  { %786 = vperm.xlu1 %2928, %v3494_v15   ;;  %v751_v13 = vpop.permute.xlu1 %750 }
 0x144   :  { %vm832_vm12 = vcmp.eq.s32.totalorder %v3570_v45, %v751_v13  ;;  %vm833_vm13 = vcmp.eq.s32.totalorder %v3577_v47, %v751_v13 }
 0x145   :  { %v2513_v29 = vsel %vm832_vm12, 1.0, %v3144_v52  ;;  %v2514_v39 = vsel %vm833_vm13, 1.0, %v3144_v52  ;;  %vm1189_vm12 = vcmp.eq.s32.totalorder %v3577_v47, %v3891_v51 }
 0x146   :  { %v1024_v21 = vadd.f32 %v2513_v29, %v672_v43  ;;  %v1025_v35 = vadd.f32 %v2514_v39, %v673_v32  ;;  %v2582_v16 = vsel %vm1189_vm12, 1.0, %v3144_v52  ;;  %v4106_v29 = vpop.permute.xlu0 %410  ;;  %v3086_v39 = vld [vmem:[%s4903_s0 + $0xd8] sm:$0xff] }
 0x147   :  { %2929 = vset.pattern.permute.xlu1 %v3141_v5  ;;  %vm489_vm11 = vcmp.eq.s32.totalorder %v3577_v47, %v4106_v29 }
 0x148   :  { %137 = vperm.xlu1 %2929, %v4030_v60   ;;  %v114_v15 = vpop.permute.xlu1 %113 }
 0x149   :  { %vm194_vm2 = vcmp.eq.s32.totalorder %v3570_v45, %v114_v15  ;;  %vm195_vm4 = vcmp.eq.s32.totalorder %v3577_v47, %v114_v15 }
 0x14a   :  { %v2387_v11 = vsel %vm194_vm2, 1.0, %v3144_v52  ;;  %v2388_v62 = vsel %vm195_vm4, 1.0, %v3144_v52 }
 0x14b   :  { %v674_v8 = vadd.f32 %v2451_v24, %v2387_v11  ;;  %v675_v12 = vadd.f32 %v2452_v54, %v2388_v62 }
 0x14c   :  { %2930 = vset.pattern.permute.xlu1 %v3140_v1 }
 0x14d   :  { %425 = vperm.xlu1 %2930, %v4030_v60   ;;  %v1103_v28 = vpop.permute.xlu1 %1102 }
 0x14e   :  { %vm1184_vm14 = vcmp.eq.s32.totalorder %v3570_v45, %v1103_v28  ;;  %vm1185_vm15 = vcmp.eq.s32.totalorder %v3577_v47, %v1103_v28  ;;  %v4111_v28 = vpop.permute.xlu0 %434 }
 0x14f   :  { %v2577_v42 = vsel %vm1184_vm14, 1.0, %v3144_v52  ;;  %v2578_v31 = vsel %vm1185_vm15, 1.0, %v3144_v52  ;;  %vm1188_vm15 = vcmp.eq.s32.totalorder %v3570_v45, %v3891_v51 }
 0x150   :  { %v1377_v34 = vadd.f32 %v2578_v31, %v1025_v35  ;;  %v1376_v41 = vadd.f32 %v2577_v42, %v1024_v21  ;;  %v2581_v51 = vsel %vm1188_vm15, 1.0, %v3144_v52 }
 0x151   :  { %437 = vperm.xlu1 %2930, %v3083_v2  }
 0x152   :  { %v754_v40 = vpop.permute.xlu1 %753  ;;  %1582 = vmatprep.mubr.f32.mxu0 %v1377_v34  ;;  %v4115_v35 = vpop.permute.xlu0 %428 }
 0x153   :  { %1583 = vmatmul.mubr.f32.gmra.mrb[26].mxu0 %v1376_v41  ;;  %vm834_vm6 = vcmp.eq.s32.totalorder %v3570_v45, %v754_v40  ;;  %vm835_vm8 = vcmp.eq.s32.totalorder %v3577_v47, %v754_v40 }
 0x154   :  { %v2515_v46 = vsel %vm834_vm6, 1.0, %v3144_v52  ;;  %v2516_v9 = vsel %vm835_vm8, 1.0, %v3144_v52  ;;  %vm488_vm8 = vcmp.eq.s32.totalorder %v3570_v45, %v4106_v29 }
 0x155   :  { %2931 = vset.pattern.permute.xlu1 %v3143_v20  ;;  %v1026_v17 = vadd.f32 %v2515_v46, %v674_v8  ;;  %v1027_v27 = vadd.f32 %v2516_v9, %v675_v12  ;;  %v2458_v12 = vsel %vm489_vm11, 1.0, %v3144_v52 }
 0x156   :  { %1138 = vperm.xlu1 %2931, %v3084_v25   ;;  %v4132_v40 = vpop.permute.xlu0 %446 }
 0x157   :  { %v405_v36 = vpop.permute.xlu1 %404 }
 0x158   :  { %vm484_vm9 = vcmp.eq.s32.totalorder %v3570_v45, %v405_v36  ;;  %vm485_vm10 = vcmp.eq.s32.totalorder %v3577_v47, %v405_v36 }
 0x159   :  { %v2453_v48 = vsel %vm484_vm9, 1.0, %v3144_v52  ;;  %v2454_v53 = vsel %vm485_vm10, 1.0, %v3144_v52 }
 0x15a   :  { %v677_v10 = vadd.f32 %v2454_v53, %v2390_v58  ;;  %2932 = vset.pattern.permute.xlu1 %v3139_v0  ;;  %v676_v18 = vadd.f32 %v2453_v48, %v2389_v55  ;;  %v126_v48 = vpop.permute.xlu0 %125 }
 0x15b   :  { %777 = vperm.xlu1 %2932, %v4030_v60   ;;  %vm203_vm10 = vcmp.eq.s32.totalorder %v3577_v47, %v126_v48 }
 0x15c   :  { %v1106_v19 = vpop.permute.xlu1 %1105  ;;  %v1029_v26 = vadd.f32 %v2518_v50, %v677_v10  ;;  %v1028_v57 = vadd.f32 %v2517_v49, %v676_v18  ;;  %v2457_v50 = vsel %vm488_vm8, 1.0, %v3144_v52  ;;  %v2396_v10 = vsel %vm203_vm10, 1.0, %v3144_v52 }
 0x15d   :  { %vm1186_vm13 = vcmp.eq.s32.totalorder %v3570_v45, %v1106_v19  ;;  %vm1187_vm14 = vcmp.eq.s32.totalorder %v3577_v47, %v1106_v19 }
 0x15e   :  { %v2579_v7 = vsel %vm1186_vm13, 1.0, %v3144_v52  ;;  %v2580_v33 = vsel %vm1187_vm14, 1.0, %v3144_v52  ;;  %v1381_v37 = vadd.f32 %v2582_v16, %v1029_v26  ;;  %v1380_v43 = vadd.f32 %v2581_v51, %v1028_v57 }
 0x15f   :  { %2934 = vset.pattern.permute.xlu1 %v3141_v5  ;;  %v1379_v13 = vadd.f32 %v2580_v33, %v1027_v27  ;;  %v1378_v15 = vadd.f32 %v2579_v7, %v1026_v17  ;;  %vm842_vm13 = vcmp.eq.s32.totalorder %v3570_v45, %v3602_v56  ;;  %vm843_vm14 = vcmp.eq.s32.totalorder %v3577_v47, %v3602_v56 }
 0x160   :  { %140 = vperm.xlu1 %2934, %v4102_v30   ;;  %v2524_v26 = vsel %vm843_vm14, 1.0, %v3144_v52 }
 0x161   :  { %v120_v61 = vpop.permute.xlu1 %119  ;;  %1587 = vmatprep.mubr.f32.mxu0 %v1379_v13 }
 0x162   :  { %1588 = vmatmul.mubr.f32.gmra.mrb[28].mxu0 %v1378_v15  ;;  %vm198_vm2 = vcmp.eq.s32.totalorder %v3570_v45, %v120_v61  ;;  %vm199_vm3 = vcmp.eq.s32.totalorder %v3577_v47, %v120_v61  ;;  %v2523_v15 = vsel %vm842_vm13, 1.0, %v3144_v52  ;;  %vm1197_vm13 = vcmp.eq.s32.totalorder %v3577_v47, %v3936_v59 }
 0x163   :  { %1592 = vmatprep.mubr.f32.mxu0 %v1381_v37  ;;  %v2391_v41 = vsel %vm198_vm2, 1.0, %v3144_v52  ;;  %v2392_v14 = vsel %vm199_vm3, 1.0, %v3144_v52 }
 0x164   :  { %152 = vperm.xlu1 %2934, %v3086_v39  }
 0x166   :  { %v408_v32 = vpop.permute.xlu1 %407  ;;  %1593 = vmatmul.mubr.f32.gmra.mrb[30].mxu0 %v1380_v43 }
 0x167   :  { %vm486_vm0 = vcmp.eq.s32.totalorder %v3570_v45, %v408_v32  ;;  %vm487_vm1 = vcmp.eq.s32.totalorder %v3577_v47, %v408_v32 }
 0x168   :  { %2935 = vset.pattern.permute.xlu1 %v3140_v1  ;;  %v2455_v31 = vsel %vm486_vm0, 1.0, %v3144_v52  ;;  %v2456_v34 = vsel %vm487_vm1, 1.0, %v3144_v52  ;;  %vm202_vm0 = vcmp.eq.s32.totalorder %v3570_v45, %v126_v48 }
 0x169   :  { %440 = vperm.xlu1 %2935, %v3086_v39   ;;  %v678_v55 = vadd.f32 %v2455_v31, %v2391_v41  ;;  %v679_v58 = vadd.f32 %v2456_v34, %v2392_v14  ;;  %v2395_v27 = vsel %vm202_vm0, 1.0, %v3144_v52  ;;  %vm849_vm0 = vcmp.eq.s32.totalorder %v3577_v47, %v3636_v63 }
 0x16b   :  { %v760_v21 = vpop.permute.xlu1 %759 }
 0x16c   :  { %vm838_vm4 = vcmp.eq.s32.totalorder %v3570_v45, %v760_v21  ;;  %vm839_vm5 = vcmp.eq.s32.totalorder %v3577_v47, %v760_v21 }
 0x16d   :  { %2936 = vset.pattern.permute.xlu1 %v3143_v20  ;;  %v2520_v2 = vsel %vm839_vm5, 1.0, %v3144_v52 }
 0x16e   :  { %1129 = vperm.xlu1 %2936, %v4030_v60   ;;  %v2519_v60 = vsel %vm838_vm4, 1.0, %v3144_v52  ;;  %v1031_v24 = vadd.f32 %v2520_v2, %v679_v58  ;;  %vm1195_vm4 = vcmp.eq.s32.totalorder %v3577_v47, %v3916_v44 }
 0x16f   :  { %v1030_v11 = vadd.f32 %v2519_v60, %v678_v55  ;;  %v2588_v29 = vsel %vm1195_vm4, 1.0, %v3144_v52  ;;  %vm848_vm4 = vcmp.eq.s32.totalorder %v3570_v45, %v3636_v63 }
 0x170   :  { %v123_v42 = vpop.permute.xlu1 %122 }
 0x171   :  { %vm200_vm9 = vcmp.eq.s32.totalorder %v3570_v45, %v123_v42  ;;  %vm201_vm12 = vcmp.eq.s32.totalorder %v3577_v47, %v123_v42 }
 0x172   :  { %2937 = vset.pattern.permute.xlu1 %v3139_v0  ;;  %v2393_v8 = vsel %vm200_vm9, 1.0, %v3144_v52  ;;  %v2394_v49 = vsel %vm201_vm12, 1.0, %v3144_v52  ;;  %vm1196_vm12 = vcmp.eq.s32.totalorder %v3570_v45, %v3936_v59 }
 0x173   :  { %780 = vperm.xlu1 %2937, %v4102_v30   ;;  %v680_v16 = vadd.f32 %v2457_v50, %v2393_v8  ;;  %v681_v13 = vadd.f32 %v2458_v12, %v2394_v49  ;;  %v1710_v8 = vld [vmem:[#allocation2] sm:$0xff] }
 0x175   :  { %v1112_v25 = vpop.permute.xlu1 %1111 }
 0x176   :  { %vm1190_vm6 = vcmp.eq.s32.totalorder %v3570_v45, %v1112_v25  ;;  %vm1191_vm7 = vcmp.eq.s32.totalorder %v3577_v47, %v1112_v25 }
 0x177   :  { %v2583_v36 = vsel %vm1190_vm6, 1.0, %v3144_v52  ;;  %v2584_v62 = vsel %vm1191_vm7, 1.0, %v3144_v52  ;;  %792 = vperm.xlu1 %2937, %v3086_v39   ;;  %vm1194_vm7 = vcmp.eq.s32.totalorder %v3570_v45, %v3916_v44  ;;  %v3087_v44 = vld [vmem:[%s4903_s0 + $0xe8] sm:$0xff] }
 0x178   :  { %v1383_v54 = vadd.f32 %v2584_v62, %v1031_v24  ;;  %v1382_v46 = vadd.f32 %v2583_v36, %v1030_v11  ;;  %v2587_v42 = vsel %vm1194_vm7, 1.0, %v3144_v52  ;;  %v2590_v36 = vsel %vm1197_vm13, 1.0, %v3144_v52 }
 0x17a   :  { %v763_v53 = vpop.permute.xlu1 %762  ;;  %1597 = vmatprep.mubr.f32.mxu0 %v1383_v54 }
 0x17b   :  { %2938 = vset.pattern.permute.xlu1 %v3140_v1  ;;  %1598 = vmatmul.mubr.f32.gmra.mrb[32].mxu0 %v1382_v46  ;;  %vm840_vm15 = vcmp.eq.s32.totalorder %v3570_v45, %v763_v53  ;;  %vm841_vm1 = vcmp.eq.s32.totalorder %v3577_v47, %v763_v53 }
 0x17c   :  { %443 = vperm.xlu1 %2938, %v3868_v4   ;;  %v2521_v17 = vsel %vm840_vm15, 1.0, %v3144_v52  ;;  %v2522_v7 = vsel %vm841_vm1, 1.0, %v3144_v52  ;;  %vm1201_vm1 = vcmp.eq.s32.totalorder %v3577_v47, %v3948_v3 }
 0x17d   :  { %v1032_v57 = vadd.f32 %v2521_v17, %v680_v16  ;;  %v1033_v61 = vadd.f32 %v2522_v7, %v681_v13  ;;  %v66_v17 = vld [vmem:[%s4903_s0 + $0xf8] sm:$0xff] }
 0x17f   :  { %v414_v9 = vpop.permute.xlu1 %413 }
 0x180   :  { %vm490_vm2 = vcmp.eq.s32.totalorder %v3570_v45, %v414_v9  ;;  %vm491_vm3 = vcmp.eq.s32.totalorder %v3577_v47, %v414_v9  ;;  %2939 = vset.pattern.permute.xlu1 %v3143_v20  ;;  %v1711_v9 = vld [vmem:[#allocation2 + $0x8] sm:$0xff] }
 0x181   :  { %v2459_v18 = vsel %vm490_vm2, 1.0, %v3144_v52  ;;  %v2460_v19 = vsel %vm491_vm3, 1.0, %v3144_v52  ;;  %1132 = vperm.xlu1 %2939, %v4102_v30  }
 0x182   :  { %v683_v33 = vadd.f32 %v2460_v19, %v2396_v10  ;;  %v682_v30 = vadd.f32 %v2459_v18, %v2395_v27  ;;  %v4215_v10 = vpack.c.bf16 %v1711_v9, %v1710_v8  ;;  %v144_v18 = vpop.permute.xlu0 %143  ;;  %v1712_v9 = vld [vmem:[#allocation2 + $0x10] sm:$0xff] }
 0x184   :  { %v1115_v51 = vpop.permute.xlu1 %1114  ;;  %v1035_v37 = vadd.f32 %v2524_v26, %v683_v33  ;;  %v1034_v21 = vadd.f32 %v2523_v15, %v682_v30  ;;  %2794 = vmatprep.subr.bf16.mxu1 %v4215_v10 }
 0x185   :  { %vm1192_vm5 = vcmp.eq.s32.totalorder %v3570_v45, %v1115_v51  ;;  %vm1193_vm6 = vcmp.eq.s32.totalorder %v3577_v47, %v1115_v51  ;;  %2941 = vset.pattern.permute.xlu1 %v3139_v0 }
 0x186   :  { %v2585_v39 = vsel %vm1192_vm5, 1.0, %v3144_v52  ;;  %v2586_v56 = vsel %vm1193_vm6, 1.0, %v3144_v52  ;;  %795 = vperm.xlu1 %2941, %v3868_v4   ;;  %v1387_v34 = vadd.f32 %v2588_v29, %v1035_v37  ;;  %v1386_v41 = vadd.f32 %v2587_v42, %v1034_v21  ;;  %v135_v27 = vpop.permute.xlu0 %134 }
 0x187   :  { %v1385_v43 = vadd.f32 %v2586_v56, %v1033_v61  ;;  %v1384_v32 = vadd.f32 %v2585_v39, %v1032_v57  ;;  %vm208_vm2 = vcmp.eq.s32.totalorder %v3570_v45, %v135_v27  ;;  %vm209_vm3 = vcmp.eq.s32.totalorder %v3577_v47, %v135_v27 }
 0x188   :  { %v2402_v16 = vsel %vm209_vm3, 1.0, %v3144_v52 }
 0x189   :  { %v129_v31 = vpop.permute.xlu1 %128  ;;  %1602 = vmatprep.mubr.f32.mxu0 %v1385_v43 }
 0x18a   :  { %2942 = vset.pattern.permute.xlu1 %v3141_v5  ;;  %1603 = vmatmul.mubr.f32.gmra.mrb[34].mxu0 %v1384_v32  ;;  %vm204_vm10 = vcmp.eq.s32.totalorder %v3570_v45, %v129_v31  ;;  %vm205_vm11 = vcmp.eq.s32.totalorder %v3577_v47, %v129_v31 }
 0x18b   :  { %158 = vperm.xlu1 %2942, %v3087_v44   ;;  %1607 = vmatprep.mubr.f32.mxu0 %v1387_v34  ;;  %v2397_v55 = vsel %vm204_vm10, 1.0, %v3144_v52  ;;  %v2398_v58 = vsel %vm205_vm11, 1.0, %v3144_v52  ;;  %vm214_vm10 = vcmp.eq.s32.totalorder %v3570_v45, %v144_v18  ;;  %vm215_vm11 = vcmp.eq.s32.totalorder %v3577_v47, %v144_v18 }
 0x18c   :  { %v2407_v43 = vsel %vm214_vm10, 1.0, %v3144_v52  ;;  %v2408_v32 = vsel %vm215_vm11, 1.0, %v3144_v52 }
 0x18e   :  { %v417_v14 = vpop.permute.xlu1 %416  ;;  %1608 = vmatmul.mubr.f32.gmra.mrb[36].mxu0 %v1386_v41 }
 0x18f   :  { %vm492_vm8 = vcmp.eq.s32.totalorder %v3570_v45, %v417_v14  ;;  %vm493_vm9 = vcmp.eq.s32.totalorder %v3577_v47, %v417_v14  ;;  %2944 = vset.pattern.permute.xlu1 %v3143_v20 }
 0x190   :  { %1147 = vperm.xlu1 %2944, %v3868_v4   ;;  %v2461_v60 = vsel %vm492_vm8, 1.0, %v3144_v52  ;;  %v2462_v2 = vsel %vm493_vm9, 1.0, %v3144_v52  ;;  %v2589_v4 = vsel %vm1196_vm12, 1.0, %v3144_v52  ;;  %vm1200_vm9 = vcmp.eq.s32.totalorder %v3570_v45, %v3948_v3 }
 0x191   :  { %v684_v11 = vadd.f32 %v2461_v60, %v2397_v55  ;;  %v685_v24 = vadd.f32 %v2462_v2, %v2398_v58 }
 0x193   :  { %v769_v25 = vpop.permute.xlu1 %768 }
 0x194   :  { %vm844_vm14 = vcmp.eq.s32.totalorder %v3570_v45, %v769_v25  ;;  %vm845_vm15 = vcmp.eq.s32.totalorder %v3577_v47, %v769_v25  ;;  %2945 = vset.pattern.permute.xlu1 %v3139_v0 }
 0x195   :  { %v2525_v62 = vsel %vm844_vm14, 1.0, %v3144_v52  ;;  %v2526_v59 = vsel %vm845_vm15, 1.0, %v3144_v52  ;;  %798 = vperm.xlu1 %2945, %v3087_v44  }
 0x196   :  { %v1036_v54 = vadd.f32 %v2525_v62, %v684_v11  ;;  %v1037_v46 = vadd.f32 %v2526_v59, %v685_v24  ;;  %v2529_v24 = vsel %vm848_vm4, 1.0, %v3144_v52 }
 0x198   :  { %v132_v48 = vpop.permute.xlu1 %131  ;;  %v1389_v53 = vadd.f32 %v2590_v36, %v1037_v46  ;;  %v1388_v50 = vadd.f32 %v2589_v4, %v1036_v54  ;;  %v2593_v54 = vsel %vm1200_vm9, 1.0, %v3144_v52  ;;  %vm505_vm9 = vcmp.eq.s32.totalorder %v3577_v47, %v4111_v28 }
 0x199   :  { %2946 = vset.pattern.permute.xlu1 %v3140_v1  ;;  %vm206_vm5 = vcmp.eq.s32.totalorder %v3570_v45, %v132_v48  ;;  %vm207_vm6 = vcmp.eq.s32.totalorder %v3577_v47, %v132_v48 }
 0x19a   :  { %449 = vperm.xlu1 %2946, %v3921_v38   ;;  %1612 = vmatprep.mubr.f32.mxu0 %v1389_v53  ;;  %v2399_v7 = vsel %vm206_vm5, 1.0, %v3144_v52  ;;  %v2400_v33 = vsel %vm207_vm6, 1.0, %v3144_v52 }
 0x19b   :  { %1613 = vmatmul.mubr.f32.gmra.mrb[38].mxu0 %v1388_v50 }
 0x19d   :  { %v420_v12 = vpop.permute.xlu1 %419 }
 0x19e   :  { %2947 = vset.pattern.permute.xlu1 %v3143_v20  ;;  %vm494_vm7 = vcmp.eq.s32.totalorder %v3570_v45, %v420_v12  ;;  %vm495_vm8 = vcmp.eq.s32.totalorder %v3577_v47, %v420_v12  ;;  %v1713_v12 = vld [vmem:[#allocation2 + $0x18] sm:$0xff] }
 0x19f   :  { %1150 = vperm.xlu1 %2947, %v3087_v44   ;;  %v2463_v13 = vsel %vm494_vm7, 1.0, %v3144_v52  ;;  %v2464_v15 = vsel %vm495_vm8, 1.0, %v3144_v52  ;;  %vm504_vm8 = vcmp.eq.s32.totalorder %v3570_v45, %v4111_v28  ;;  %v2474_v28 = vsel %vm505_vm9, 1.0, %v3144_v52 }
 0x1a0   :  { %v686_v37 = vadd.f32 %v2463_v13, %v2399_v7  ;;  %v687_v29 = vadd.f32 %v2464_v15, %v2400_v33  ;;  %v1716_v15 = vld [vmem:[#allocation2 + $0x30] sm:$0xff] }
 0x1a1   :  { %v432_v49 = vpop.permute.xlu1 %431 }
 0x1a2   :  { %vm502_vm14 = vcmp.eq.s32.totalorder %v3570_v45, %v432_v49  ;;  %vm503_vm15 = vcmp.eq.s32.totalorder %v3577_v47, %v432_v49 }
 0x1a3   :  { %2949 = vset.pattern.permute.xlu1 %v3141_v5  ;;  %v2530_v5 = vsel %vm849_vm0, 1.0, %v3144_v52  ;;  %v2471_v56 = vsel %vm502_vm14, 1.0, %v3144_v52  ;;  %v2472_v42 = vsel %vm503_vm15, 1.0, %v3144_v52 }
 0x1a4   :  { %164 = vperm.xlu1 %2949, %v66_v17   ;;  %v694_v55 = vadd.f32 %v2471_v56, %v2407_v43  ;;  %v695_v4 = vadd.f32 %v2472_v42, %v2408_v32  ;;  %v1720_v42 = vld [vmem:[#allocation2 + $0x50] sm:$0xff] }
 0x1a6   :  { %v772_v38 = vpop.permute.xlu1 %771 }
 0x1a7   :  { %vm846_vm12 = vcmp.eq.s32.totalorder %v3570_v45, %v772_v38  ;;  %vm847_vm13 = vcmp.eq.s32.totalorder %v3577_v47, %v772_v38 }
 0x1a8   :  { %2950 = vset.pattern.permute.xlu1 %v3140_v1  ;;  %v2401_v1 = vsel %vm208_vm2, 1.0, %v3144_v52  ;;  %v2528_v30 = vsel %vm847_vm13, 1.0, %v3144_v52  ;;  %vm859_vm13 = vcmp.eq.s32.totalorder %v3577_v47, %v3666_v22 }
 0x1a9   :  { %452 = vperm.xlu1 %2950, %v66_v17   ;;  %v1039_v34 = vadd.f32 %v2528_v30, %v687_v29  ;;  %v1718_v29 = vld [vmem:[#allocation2 + $0x40] sm:$0xff] }
 0x1aa   :  { %v784_v19 = vpop.permute.xlu1 %783 }
 0x1ab   :  { %vm854_vm2 = vcmp.eq.s32.totalorder %v3570_v45, %v784_v19  ;;  %vm855_vm3 = vcmp.eq.s32.totalorder %v3577_v47, %v784_v19 }
 0x1ac   :  { %v2535_v60 = vsel %vm854_vm2, 1.0, %v3144_v52  ;;  %v2536_v11 = vsel %vm855_vm3, 1.0, %v3144_v52  ;;  %vm858_vm3 = vcmp.eq.s32.totalorder %v3570_v45, %v3666_v22 }
 0x1ad   :  { %2952 = vset.pattern.permute.xlu1 %v3139_v0  ;;  %v2594_v0 = vsel %vm1201_vm1, 1.0, %v3144_v52  ;;  %v1046_v46 = vadd.f32 %v2535_v60, %v694_v55  ;;  %v1047_v63 = vadd.f32 %v2536_v11, %v695_v4  ;;  %v1722_v4 = vld [vmem:[#allocation2 + $0x60] sm:$0xff] }
 0x1ae   :  { %804 = vperm.xlu1 %2952, %v66_v17  }
 0x1af   :  { %v4229_v26 = vpop.permute.xlu1 %146 }
 0x1b0   :  { %vm216_vm10 = vcmp.eq.s32.totalorder %v3570_v45, %v4229_v26 }
 0x1b2   :  { %2953 = vset.pattern.permute.xlu1 %v3143_v20  ;;  %v2527_v20 = vsel %vm846_vm12, 1.0, %v3144_v52  ;;  %vm217_vm12 = vcmp.eq.s32.totalorder %v3577_v47, %v4229_v26 }
 0x1b3   :  { %1156 = vperm.xlu1 %2953, %v66_v17   ;;  %v1038_v31 = vadd.f32 %v2527_v20, %v686_v37  ;;  %v150_v37 = vpop.permute.xlu0 %149  ;;  %v2410_v60 = vsel %vm217_vm12, 1.0, %v3144_v52 }
 0x1b4   :  { %v423_v57 = vpop.permute.xlu1 %422  ;;  %vm219_vm11 = vcmp.eq.s32.totalorder %v3577_v47, %v150_v37  ;;  %vm218_vm15 = vcmp.eq.s32.totalorder %v3570_v45, %v150_v37 }
 0x1b5   :  { %vm496_vm0 = vcmp.eq.s32.totalorder %v3570_v45, %v423_v57  ;;  %vm497_vm1 = vcmp.eq.s32.totalorder %v3577_v47, %v423_v57  ;;  %v1717_v57 = vld [vmem:[#allocation2 + $0x38] sm:$0xff]  ;;  %v2412_v26 = vsel %vm219_vm11, 1.0, %v3144_v52 }
 0x1b6   :  { %v2465_v51 = vsel %vm496_vm0, 1.0, %v3144_v52  ;;  %v2466_v61 = vsel %vm497_vm1, 1.0, %v3144_v52 }
 0x1b7   :  { %v689_v39 = vadd.f32 %v2466_v61, %v2402_v16  ;;  %v688_v44 = vadd.f32 %v2465_v51, %v2401_v1  ;;  %v1715_v16 = vld [vmem:[#allocation2 + $0x28] sm:$0xff]  ;;  %v2805_v61 = vpack.c.bf16 %v1717_v57, %v1716_v15 }
 0x1b8   :  { %v4271_v21 = vpop.f32.mrb[0].mxu0 }
 0x1b9   :  { %v1124_v41 = vpop.permute.xlu1 %1123  ;;  %v1521_v14 = vpop.f32.mrb[1].mxu0  ;;  %v1041_v2 = vadd.f32 %v2530_v5, %v689_v39  ;;  %v1040_v48 = vadd.f32 %v2529_v24, %v688_v44  ;;  %v2797_v5 = vpack.c.bf16 %v1713_v12, %v1712_v9  ;;  %v1719_v39 = vld [vmem:[#allocation2 + $0x48] sm:$0xff]  ;;  %v2409_v44 = vsel %vm216_vm10, 1.0, %v3144_v52 }
 0x1ba   :  { %vm1198_vm5 = vcmp.eq.s32.totalorder %v3570_v45, %v1124_v41  ;;  %vm1199_vm6 = vcmp.eq.s32.totalorder %v3577_v47, %v1124_v41  ;;  %v2809_v32 = vpack.c.bf16 %v1719_v39, %v1718_v29  ;;  %v2411_v24 = vsel %vm218_vm15, 1.0, %v3144_v52 }
 0x1bb   :  { %v2591_v58 = vsel %vm1198_vm5, 1.0, %v3144_v52  ;;  %v2592_v25 = vsel %vm1199_vm6, 1.0, %v3144_v52  ;;  %v1393_v8 = vadd.f32 %v2594_v0, %v1041_v2  ;;  %v1392_v27 = vadd.f32 %v2593_v54, %v1040_v48  ;;  %v1714_v0 = vld [vmem:[#allocation2 + $0x20] sm:$0xff] }
 0x1bc   :  { %v4286_v36 = vpop.f32.mrb[2].mxu0  ;;  %v1391_v62 = vadd.f32 %v2592_v25, %v1039_v34  ;;  %v1390_v59 = vadd.f32 %v2591_v58, %v1038_v31  ;;  %v2801_v13 = vpack.c.bf16 %v1715_v16, %v1714_v0  ;;  %v1721_v31 = vld [vmem:[#allocation2 + $0x58] sm:$0xff]  ;;  %v2473_v34 = vsel %vm504_vm8, 1.0, %v3144_v52 }
 0x1bd   :  { %v1136_v53 = vpop.permute.xlu1 %1135  ;;  %v1526_v50 = vpop.f32.mrb[3].mxu0  ;;  %v2813_v55 = vpack.c.bf16 %v1721_v31, %v1720_v42  ;;  %v2540_v48 = vsel %vm859_vm13, 1.0, %v3144_v52  ;;  %vm1211_vm5 = vcmp.eq.s32.totalorder %v3577_v47, %v3952_v6 }
 0x1be   :  { %vm1206_vm7 = vcmp.eq.s32.totalorder %v3570_v45, %v1136_v53  ;;  %1617 = vmatprep.mubr.f32.mxu0 %v1391_v62  ;;  %vm1207_vm4 = vcmp.eq.s32.totalorder %v3577_v47, %v1136_v53  ;;  %v1723_v62 = vld [vmem:[#allocation2 + $0x68] sm:$0xff]  ;;  %v697_v53 = vadd.f32 %v2474_v28, %v2410_v60 }
 0x1bf   :  { %v2599_v49 = vsel %vm1206_vm7, 1.0, %v3144_v52  ;;  %1618 = vmatmul.mubr.f32.gmra.mrb[40].mxu0 %v1390_v59  ;;  %v2600_v17 = vsel %vm1207_vm4, 1.0, %v3144_v52  ;;  %v696_v59 = vadd.f32 %v2473_v34, %v2409_v44  ;;  %v2817_v9 = vpack.c.bf16 %v1723_v62, %v1722_v4 }
 0x1c0   :  { %v4296_v3 = vpop.f32.mrb[4].mxu0  ;;  %1622 = vmatprep.mubr.f32.mxu0 %v1393_v8  ;;  %v1399_v38 = vadd.f32 %v2600_v17, %v1047_v63  ;;  %v1398_v18 = vadd.f32 %v2599_v49, %v1046_v46  ;;  %vm1210_vm4 = vcmp.eq.s32.totalorder %v3570_v45, %v3952_v6 }
 0x1c1   :  { %v1531_v19 = vpop.f32.mrb[5].mxu0  ;;  %v2603_v22 = vsel %vm1210_vm4, 1.0, %v3144_v52 }
 0x1c2   :  { %v787_v1 = vpop.permute.xlu1 %786  ;;  %1637 = vmatprep.mubr.f32.mxu1 %v1399_v38  ;;  %v1724_v38 = vld [vmem:[#allocation2 + $0x70] sm:$0xff] }
 0x1c3   :  { %1623 = vmatmul.mubr.f32.gmra.mrb[42].mxu0 %v1392_v27  ;;  %1638 = vmatmul.mubr.f32.vlgmr.msra.gmra.mrb[0].mxu1 %v1398_v18  ;;  %vm856_vm14 = vcmp.eq.s32.totalorder %v3570_v45, %v787_v1  ;;  %vm857_vm0 = vcmp.eq.s32.totalorder %v3577_v47, %v787_v1  ;;  %v1725_v18 = vld [vmem:[#allocation2 + $0x78] sm:$0xff]  ;;  %v2539_v1 = vsel %vm858_vm3, 1.0, %v3144_v52 }
 0x1c4   :  { %v4298_v7 = vpop.f32.mrb[6].mxu0  ;;  %2796 = vmatpush3.bf16.msra.mxu1 %v4215_v10  ;;  %v2537_v58 = vsel %vm856_vm14, 1.0, %v3144_v52  ;;  %v2538_v54 = vsel %vm857_vm0, 1.0, %v3144_v52  ;;  %v2821_v15 = vpack.c.bf16 %v1725_v18, %v1724_v38 }
 0x1c5   :  { %v1536_v33 = vpop.f32.mrb[7].mxu0  ;;  %2798 = vmatprep.subr.bf16.mxu1 %v2797_v5  ;;  %v1048_v50 = vadd.f32 %v2537_v58, %v696_v59  ;;  %v1049_v12 = vadd.f32 %v2538_v54, %v697_v53 }
 0x1c6   :  { %v2604_v33 = vsel %vm1211_vm5, 1.0, %v3144_v52  ;;  %vm1212_vm5 = vcmp.eq.s32.totalorder %v3570_v45, %v3969_v23 }
 0x1c7   :  { %v4301_v20 = vpop.permute.xlu1 %137 }
 0x1c8   :  { %v4303_v30 = vpop.f32.mrb[8].mxu0  ;;  %2800 = vmatpush3.bf16.msra.mxu1 %v2797_v5  ;;  %vm210_vm10 = vcmp.eq.s32.totalorder %v3570_v45, %v4301_v20  ;;  %vm211_vm11 = vcmp.eq.s32.totalorder %v3577_v47, %v4301_v20 }
 0x1c9   :  { %v1541_v51 = vpop.f32.mrb[9].mxu0  ;;  %2802 = vmatprep.subr.bf16.mxu1 %v2801_v13  ;;  %v2404_v28 = vsel %vm211_vm11, 1.0, %v3144_v52 }
 0x1cc   :  { %v4307_v10 = vpop.permute.xlu1 %425  ;;  %v4309_v56 = vpop.f32.mrb[10].mxu0  ;;  %2804 = vmatpush3.bf16.msra.mxu1 %v2801_v13 }
 0x1cd   :  { %v1546_v43 = vpop.f32.mrb[11].mxu0  ;;  %2806 = vmatprep.subr.bf16.mxu1 %v2805_v61  ;;  %vm498_vm8 = vcmp.eq.s32.totalorder %v3570_v45, %v4307_v10  ;;  %vm499_vm9 = vcmp.eq.s32.totalorder %v3577_v47, %v4307_v10  ;;  %v2403_v10 = vsel %vm210_vm10, 1.0, %v3144_v52 }
 0x1ce   :  { %v2468_v42 = vsel %vm499_vm9, 1.0, %v3144_v52  ;;  %vm501_vm9 = vcmp.eq.s32.totalorder %v3577_v47, %v4115_v35 }
 0x1d0   :  { %v438_v41 = vpop.permute.xlu1 %437  ;;  %v4326_v14 = vpop.f32.mrb[12].mxu0  ;;  %2808 = vmatpush3.bf16.msra.mxu1 %v2805_v61 }
 0x1d1   :  { %vm506_vm1 = vcmp.eq.s32.totalorder %v3570_v45, %v438_v41  ;;  %vm507_vm2 = vcmp.eq.s32.totalorder %v3577_v47, %v438_v41  ;;  %v1551_v2 = vpop.f32.mrb[13].mxu0  ;;  %2810 = vmatprep.subr.bf16.mxu1 %v2809_v32 }
 0x1d2   :  { %v2475_v25 = vsel %vm506_vm1, 1.0, %v3144_v52  ;;  %v2476_v11 = vsel %vm507_vm2, 1.0, %v3144_v52 }
 0x1d3   :  { %v699_v46 = vadd.f32 %v2476_v11, %v2412_v26  ;;  %v698_v8 = vadd.f32 %v2475_v25, %v2411_v24  ;;  %v691_v26 = vadd.f32 %v2468_v42, %v2404_v28 }
 0x1d4   :  { %2812 = vmatpush3.bf16.msra.mxu1 %v2809_v32  ;;  %v2467_v32 = vsel %vm498_vm8, 1.0, %v3144_v52  ;;  %vm500_vm8 = vcmp.eq.s32.totalorder %v3570_v45, %v4115_v35 }
 0x1d5   :  { %v1139_v63 = vpop.permute.xlu1 %1138  ;;  %2814 = vmatprep.subr.bf16.mxu1 %v2813_v55  ;;  %v1051_v49 = vadd.f32 %v2540_v48, %v699_v46  ;;  %v1050_v13 = vadd.f32 %v2539_v1, %v698_v8  ;;  %v690_v41 = vadd.f32 %v2467_v32, %v2403_v10  ;;  %v156_v32 = vpop.permute.xlu0 %155 }
 0x1d6   :  { %vm1208_vm6 = vcmp.eq.s32.totalorder %v3570_v45, %v1139_v63  ;;  %vm1209_vm7 = vcmp.eq.s32.totalorder %v3577_v47, %v1139_v63  ;;  %v4351_v17 = vpop.f32.mrb[14].mxu0 }
 0x1d7   :  { %v2601_v19 = vsel %vm1208_vm6, 1.0, %v3144_v52  ;;  %v2602_v27 = vsel %vm1209_vm7, 1.0, %v3144_v52  ;;  %v1556_v5 = vpop.f32.mrb[15].mxu0  ;;  %v1403_v51 = vadd.f32 %v2604_v33, %v1051_v49  ;;  %v1402_v61 = vadd.f32 %v2603_v22, %v1050_v13 }
 0x1d8   :  { %v1401_v0 = vadd.f32 %v2602_v27, %v1049_v12  ;;  %v1400_v16 = vadd.f32 %v2601_v19, %v1048_v50  ;;  %2816 = vmatpush3.bf16.msra.mxu1 %v2813_v55  ;;  %vm1213_vm6 = vcmp.eq.s32.totalorder %v3577_v47, %v3969_v23  ;;  %v2605_v49 = vsel %vm1212_vm5, 1.0, %v3144_v52 }
 0x1d9   :  { %2818 = vmatprep.subr.bf16.mxu1 %v2817_v9  ;;  %v2606_v35 = vsel %vm1213_vm6, 1.0, %v3144_v52  ;;  %v2469_v27 = vsel %vm500_vm8, 1.0, %v3144_v52  ;;  %v2470_v5 = vsel %vm501_vm9, 1.0, %v3144_v52  ;;  %vm512_vm8 = vcmp.eq.s32.totalorder %v3570_v45, %v4132_v40 }
 0x1da   :  { %v778_v57 = vpop.permute.xlu1 %777  ;;  %1642 = vmatprep.mubr.f32.mxu1 %v1401_v0  ;;  %vm513_vm9 = vcmp.eq.s32.totalorder %v3577_v47, %v4132_v40 }
 0x1db   :  { %1643 = vmatmul.mubr.f32.gmra.mrb[2].mxu1 %v1400_v16  ;;  %vm850_vm12 = vcmp.eq.s32.totalorder %v3570_v45, %v778_v57  ;;  %vm851_vm13 = vcmp.eq.s32.totalorder %v3577_v47, %v778_v57 }
 0x1dc   :  { %1647 = vmatprep.mubr.f32.mxu1 %v1403_v51  ;;  %2820 = vmatpush3.bf16.msra.mxu1 %v2817_v9  ;;  %v2531_v44 = vsel %vm850_vm12, 1.0, %v3144_v52  ;;  %v2532_v20 = vsel %vm851_vm13, 1.0, %v3144_v52 }
 0x1dd   :  { %2822 = vmatprep.subr.bf16.mxu1 %v2821_v15  ;;  %v1042_v2 = vadd.f32 %v2531_v44, %v690_v41  ;;  %v1043_v55 = vadd.f32 %v2532_v20, %v691_v26 }
 0x1df   :  { %v4366_v37 = vpop.permute.xlu1 %140  ;;  %1648 = vmatmul.mubr.f32.gmra.mrb[4].mxu1 %v1402_v61 }
 0x1e0   :  { %2824 = vmatpush3.bf16.msra.mxu1 %v2821_v15  ;;  %vm212_vm10 = vcmp.eq.s32.totalorder %v3570_v45, %v4366_v37  ;;  %vm213_vm11 = vcmp.eq.s32.totalorder %v3577_v47, %v4366_v37 }
 0x1e1   :  { %v2405_v1 = vsel %vm212_vm10, 1.0, %v3144_v52  ;;  %v2406_v0 = vsel %vm213_vm11, 1.0, %v3144_v52 }
 0x1e2   :  { %v692_v13 = vadd.f32 %v2469_v27, %v2405_v1  ;;  %v693_v15 = vadd.f32 %v2470_v5, %v2406_v0 }
 0x1e3   :  { %v153_v29 = vpop.permute.xlu1 %152 }
 0x1e4   :  { %vm220_vm2 = vcmp.eq.s32.totalorder %v3570_v45, %v153_v29  ;;  %vm221_vm3 = vcmp.eq.s32.totalorder %v3577_v47, %v153_v29 }
 0x1e5   :  { %v4368_v6 = vpop.f32.mrb[16].mxu0  ;;  %v2413_v54 = vsel %vm220_vm2, 1.0, %v3144_v52  ;;  %v2414_v46 = vsel %vm221_vm3, 1.0, %v3144_v52  ;;  %vm222_vm2 = vcmp.eq.s32.totalorder %v3570_v45, %v156_v32  ;;  %vm223_vm3 = vcmp.eq.s32.totalorder %v3577_v47, %v156_v32 }
 0x1e6   :  { %v1561_v39 = vpop.f32.mrb[17].mxu0  ;;  %v2415_v44 = vsel %vm222_vm2, 1.0, %v3144_v52  ;;  %v2416_v20 = vsel %vm223_vm3, 1.0, %v3144_v52 }
 0x1e8   :  { %v441_v43 = vpop.permute.xlu1 %440 }
 0x1e9   :  { %v4382_v31 = vpop.f32.mrb[18].mxu0  ;;  %vm508_vm0 = vcmp.eq.s32.totalorder %v3570_v45, %v441_v43  ;;  %vm509_vm1 = vcmp.eq.s32.totalorder %v3577_v47, %v441_v43 }
 0x1ea   :  { %v1566_v34 = vpop.f32.mrb[19].mxu0  ;;  %v2477_v62 = vsel %vm508_vm0, 1.0, %v3144_v52  ;;  %v2478_v59 = vsel %vm509_vm1, 1.0, %v3144_v52 }
 0x1eb   :  { %v700_v53 = vadd.f32 %v2477_v62, %v2413_v54  ;;  %v701_v50 = vadd.f32 %v2478_v59, %v2414_v46 }
 0x1ed   :  { %v1130_v60 = vpop.permute.xlu1 %1129 }
 0x1ee   :  { %vm1202_vm14 = vcmp.eq.s32.totalorder %v3570_v45, %v1130_v60  ;;  %vm1203_vm15 = vcmp.eq.s32.totalorder %v3577_v47, %v1130_v60 }
 0x1ef   :  { %v2595_v58 = vsel %vm1202_vm14, 1.0, %v3144_v52  ;;  %v2596_v25 = vsel %vm1203_vm15, 1.0, %v3144_v52 }
 0x1f0   :  { %v1394_v11 = vadd.f32 %v2595_v58, %v1042_v2  ;;  %v1395_v24 = vadd.f32 %v2596_v25, %v1043_v55 }
 0x1f2   :  { %v781_v4 = vpop.permute.xlu1 %780  ;;  %1627 = vmatprep.mubr.f32.mxu0 %v1395_v24 }
 0x1f3   :  { %1628 = vmatmul.mubr.f32.gmra.mrb[44].mxu0 %v1394_v11  ;;  %vm852_vm12 = vcmp.eq.s32.totalorder %v3570_v45, %v781_v4  ;;  %vm853_vm13 = vcmp.eq.s32.totalorder %v3577_v47, %v781_v4  ;;  %v162_v4 = vpop.permute.xlu0 %161 }
 0x1f4   :  { %v2533_v16 = vsel %vm852_vm12, 1.0, %v3144_v52  ;;  %v2534_v23 = vsel %vm853_vm13, 1.0, %v3144_v52  ;;  %vm227_vm12 = vcmp.eq.s32.totalorder %v3577_v47, %v162_v4 }
 0x1f5   :  { %v1044_v22 = vadd.f32 %v2533_v16, %v692_v13  ;;  %v1045_v61 = vadd.f32 %v2534_v23, %v693_v15 }
 0x1f6   :  { %v793_v48 = vpop.permute.xlu1 %792 }
 0x1f7   :  { %vm860_vm7 = vcmp.eq.s32.totalorder %v3570_v45, %v793_v48  ;;  %vm861_vm4 = vcmp.eq.s32.totalorder %v3577_v47, %v793_v48 }
 0x1f8   :  { %v2541_v8 = vsel %vm860_vm7, 1.0, %v3144_v52  ;;  %v2542_v63 = vsel %vm861_vm4, 1.0, %v3144_v52 }
 0x1f9   :  { %v1052_v9 = vadd.f32 %v2541_v8, %v700_v53  ;;  %v1053_v12 = vadd.f32 %v2542_v63, %v701_v50  ;;  %v802_v8 = vpop.permute.xlu0 %801  ;;  %v2481_v63 = vsel %vm512_vm8, 1.0, %v3144_v52 }
 0x1fa   :  { %vm866_vm3 = vcmp.eq.s32.totalorder %v3570_v45, %v802_v8 }
 0x1fb   :  { %v444_v38 = vpop.permute.xlu1 %443  ;;  %v1405_v18 = vadd.f32 %v2606_v35, %v1053_v12  ;;  %v1404_v19 = vadd.f32 %v2605_v49, %v1052_v9  ;;  %v2482_v9 = vsel %vm513_vm9, 1.0, %v3144_v52  ;;  %v2420_v35 = vsel %vm227_vm12, 1.0, %v3144_v52 }
 0x1fc   :  { %vm510_vm0 = vcmp.eq.s32.totalorder %v3570_v45, %v444_v38  ;;  %vm511_vm1 = vcmp.eq.s32.totalorder %v3577_v47, %v444_v38 }
 0x1fd   :  { %1652 = vmatprep.mubr.f32.mxu1 %v1405_v18  ;;  %v2479_v10 = vsel %vm510_vm0, 1.0, %v3144_v52  ;;  %v2480_v28 = vsel %vm511_vm1, 1.0, %v3144_v52  ;;  %vm867_vm0 = vcmp.eq.s32.totalorder %v3577_v47, %v802_v8  ;;  %v1154_v38 = vpop.permute.xlu0 %1153 }
 0x1fe   :  { %v4432_v33 = vpop.f32.mrb[20].mxu0  ;;  %1653 = vmatmul.mubr.f32.gmra.mrb[6].mxu1 %v1404_v19  ;;  %v702_v2 = vadd.f32 %v2479_v10, %v2415_v44  ;;  %v703_v55 = vadd.f32 %v2480_v28, %v2416_v20  ;;  %v2548_v16 = vsel %vm867_vm0, 1.0, %v3144_v52 }
 0x1ff   :  { %v1571_v57 = vpop.f32.mrb[21].mxu0 }
 0x200   :  { %v1133_v51 = vpop.permute.xlu1 %1132 }
 0x201   :  { %vm1204_vm14 = vcmp.eq.s32.totalorder %v3570_v45, %v1133_v51  ;;  %vm1205_vm15 = vcmp.eq.s32.totalorder %v3577_v47, %v1133_v51  ;;  %v2547_v51 = vsel %vm866_vm3, 1.0, %v3144_v52 }
 0x202   :  { %v2597_v37 = vsel %vm1204_vm14, 1.0, %v3144_v52  ;;  %v2598_v29 = vsel %vm1205_vm15, 1.0, %v3144_v52  ;;  %vm226_vm14 = vcmp.eq.s32.totalorder %v3570_v45, %v162_v4 }
 0x203   :  { %v1396_v39 = vadd.f32 %v2597_v37, %v1044_v22  ;;  %v1397_v43 = vadd.f32 %v2598_v29, %v1045_v61  ;;  %v2419_v13 = vsel %vm226_vm14, 1.0, %v3144_v52 }
 0x205   :  { %v796_v42 = vpop.permute.xlu1 %795  ;;  %1632 = vmatprep.mubr.f32.mxu0 %v1397_v43 }
 0x206   :  { %1633 = vmatmul.mubr.f32.gmra.mrb[46].mxu0 %v1396_v39  ;;  %vm862_vm5 = vcmp.eq.s32.totalorder %v3570_v45, %v796_v42  ;;  %vm863_vm6 = vcmp.eq.s32.totalorder %v3577_v47, %v796_v42 }
 0x207   :  { %v2543_v41 = vsel %vm862_vm5, 1.0, %v3144_v52  ;;  %v2544_v26 = vsel %vm863_vm6, 1.0, %v3144_v52  ;;  %vm1219_vm5 = vcmp.eq.s32.totalorder %v3577_v47, %v1154_v38 }
 0x208   :  { %v1054_v11 = vadd.f32 %v2543_v41, %v702_v2  ;;  %v1055_v24 = vadd.f32 %v2544_v26, %v703_v55  ;;  %v2612_v29 = vsel %vm1219_vm5, 1.0, %v3144_v52 }
 0x20a   :  { %v159_v34 = vpop.permute.xlu1 %158 }
 0x20b   :  { %vm224_vm10 = vcmp.eq.s32.totalorder %v3570_v45, %v159_v34  ;;  %vm225_vm11 = vcmp.eq.s32.totalorder %v3577_v47, %v159_v34 }
 0x20c   :  { %v2417_v12 = vsel %vm224_vm10, 1.0, %v3144_v52  ;;  %v2418_v49 = vsel %vm225_vm11, 1.0, %v3144_v52 }
 0x20d   :  { %v4450_v60 = vpop.f32.mrb[22].mxu0  ;;  %v704_v5 = vadd.f32 %v2481_v63, %v2417_v12  ;;  %v705_v23 = vadd.f32 %v2482_v9, %v2418_v49 }
 0x20e   :  { %v1576_v58 = vpop.f32.mrb[23].mxu0 }
 0x20f   :  { %v1148_v25 = vpop.permute.xlu1 %1147 }
 0x210   :  { %vm1214_vm7 = vcmp.eq.s32.totalorder %v3570_v45, %v1148_v25  ;;  %vm1215_vm4 = vcmp.eq.s32.totalorder %v3577_v47, %v1148_v25 }
 0x211   :  { %v2607_v62 = vsel %vm1214_vm7, 1.0, %v3144_v52  ;;  %v2608_v59 = vsel %vm1215_vm4, 1.0, %v3144_v52  ;;  %v4456_v54 = vpop.f32.mrb[24].mxu0  ;;  %vm1218_vm4 = vcmp.eq.s32.totalorder %v3570_v45, %v1154_v38 }
 0x212   :  { %v1406_v46 = vadd.f32 %v2607_v62, %v1054_v11  ;;  %v1407_v48 = vadd.f32 %v2608_v59, %v1055_v24  ;;  %v1581_v53 = vpop.f32.mrb[25].mxu0  ;;  %v2611_v10 = vsel %vm1218_vm4, 1.0, %v3144_v52  ;;  %v4507_v11 = vld [vmem:[%s4905_s2] ss:$0 sm:$0xff] }
 0x213   :  { %v1520_v53 = vadd.f32 %v4507_v11, %v4271_v21  ;;  %v1525_v38 = vadd.f32 %v4507_v11, %v4286_v36  ;;  %v1530_v21 = vadd.f32 %v4507_v11, %v4296_v3 }
 0x214   :  { %v799_v50 = vpop.permute.xlu1 %798  ;;  %1657 = vmatprep.mubr.f32.mxu1 %v1407_v48 }
 0x215   :  { %1658 = vmatmul.mubr.f32.gmra.mrb[8].mxu1 %v1406_v46  ;;  %vm864_vm13 = vcmp.eq.s32.totalorder %v3570_v45, %v799_v50  ;;  %vm865_vm15 = vcmp.eq.s32.totalorder %v3577_v47, %v799_v50 }
 0x216   :  { %v2545_v18 = vsel %vm864_vm13, 1.0, %v3144_v52  ;;  %v2546_v1 = vsel %vm865_vm15, 1.0, %v3144_v52 }
 0x217   :  { %v1056_v15 = vadd.f32 %v2545_v18, %v704_v5  ;;  %v1057_v61 = vadd.f32 %v2546_v1, %v705_v23  ;;  %v1680_v5 = vmax.f32 %v1530_v21, 0.0  ;;  %v1540_v1 = vadd.f32 %v4507_v11, %v4303_v30 }
 0x218   :  { %v1560_v30 = vadd.f32 %v4507_v11, %v4368_v6  ;;  %v1580_v6 = vadd.f32 %v4507_v11, %v4456_v54 }
 0x219   :  { %v450_v40 = vpop.permute.xlu1 %449  ;;  %v1682_v3 = vmax.f32 %v1540_v1, 0.0 }
 0x21a   :  { %vm514_vm1 = vcmp.eq.s32.totalorder %v3570_v45, %v450_v40  ;;  %vm515_vm2 = vcmp.eq.s32.totalorder %v3577_v47, %v450_v40 }
 0x21b   :  { %v2483_v19 = vsel %vm514_vm1, 1.0, %v3144_v52  ;;  %v2484_v27 = vsel %vm515_vm2, 1.0, %v3144_v52 }
 0x21c   :  { %v707_v0 = vadd.f32 %v2484_v27, %v2420_v35  ;;  %v706_v57 = vadd.f32 %v2483_v19, %v2419_v13  ;;  %v1678_v19 = vmax.f32 %v1520_v53, 0.0  ;;  %v1535_v27 = vadd.f32 %v4507_v11, %v4298_v7 }
 0x21d   :  { %v1555_v7 = vadd.f32 %v4507_v11, %v4351_v17  ;;  %v1575_v17 = vadd.f32 %v4507_v11, %v4450_v60 }
 0x21e   :  { %v1151_v22 = vpop.permute.xlu1 %1150  ;;  %v1059_v37 = vadd.f32 %v2548_v16, %v707_v0  ;;  %v1058_v34 = vadd.f32 %v2547_v51, %v706_v57  ;;  %v1681_v36 = vmax.f32 %v1535_v27, 0.0  ;;  %v1545_v0 = vadd.f32 %v4507_v11, %v4309_v56 }
 0x21f   :  { %vm1216_vm6 = vcmp.eq.s32.totalorder %v3570_v45, %v1151_v22  ;;  %vm1217_vm7 = vcmp.eq.s32.totalorder %v3577_v47, %v1151_v22  ;;  %v1550_v16 = vadd.f32 %v4507_v11, %v4326_v14  ;;  %v1565_v56 = vadd.f32 %v4507_v11, %v4382_v31 }
 0x220   :  { %v2609_v39 = vsel %vm1216_vm6, 1.0, %v3144_v52  ;;  %v2610_v43 = vsel %vm1217_vm7, 1.0, %v3144_v52  ;;  %v1411_v28 = vadd.f32 %v2612_v29, %v1059_v37  ;;  %v1410_v20 = vadd.f32 %v2611_v10, %v1058_v34 }
 0x221   :  { %v1408_v32 = vadd.f32 %v2609_v39, %v1056_v15  ;;  %v1409_v42 = vadd.f32 %v2610_v43, %v1057_v61  ;;  %v1683_v23 = vmax.f32 %v1545_v0, 0.0  ;;  %v1684_v13 = vmax.f32 %v1550_v16, 0.0 }
 0x222   :  { %v1685_v15 = vmax.f32 %v1555_v7, 0.0  ;;  %v1686_v57 = vmax.f32 %v1560_v30, 0.0  ;;  %v1570_v14 = vadd.f32 %v4507_v11, %v4432_v33  ;;  %v1687_v51 = vmax.f32 %v1565_v56, 0.0 }
 0x223   :  { %v165_v44 = vpop.permute.xlu1 %164  ;;  %1662 = vmatprep.mubr.f32.mxu1 %v1409_v42  ;;  %v1689_v61 = vmax.f32 %v1575_v17, 0.0  ;;  %v1690_v29 = vmax.f32 %v1580_v6, 0.0 }
 0x224   :  { %1663 = vmatmul.mubr.f32.gmra.mrb[10].mxu1 %v1408_v32  ;;  %vm228_vm10 = vcmp.eq.s32.totalorder %v3570_v45, %v165_v44  ;;  %vm229_vm11 = vcmp.eq.s32.totalorder %v3577_v47, %v165_v44  ;;  %v1688_v22 = vmax.f32 %v1570_v14, 0.0 }
 0x225   :  { %1667 = vmatprep.mubr.f32.mxu1 %v1411_v28  ;;  %v2421_v24 = vsel %vm228_vm10, 1.0, %v3144_v52  ;;  %v2422_v4 = vsel %vm229_vm11, 1.0, %v3144_v52 }
 0x226   :  { %v4494_v41 = vpop.f32.mrb[26].mxu0 }
 0x227   :  { %v1586_v26 = vpop.f32.mrb[27].mxu0  ;;  %v1585_v31 = vadd.f32 %v4507_v11, %v4494_v41 }
 0x228   :  { %v453_v2 = vpop.permute.xlu1 %452  ;;  %1668 = vmatmul.mubr.f32.gmra.mrb[12].mxu1 %v1410_v20 }
 0x229   :  { %vm516_vm8 = vcmp.eq.s32.totalorder %v3570_v45, %v453_v2  ;;  %vm517_vm9 = vcmp.eq.s32.totalorder %v3577_v47, %v453_v2  ;;  %v1691_v43 = vmax.f32 %v1585_v31, 0.0 }
 0x22a   :  { %v2485_v58 = vsel %vm516_vm8, 1.0, %v3144_v52  ;;  %v2486_v25 = vsel %vm517_vm9, 1.0, %v3144_v52 }
 0x22b   :  { %v708_v46 = vadd.f32 %v2485_v58, %v2421_v24  ;;  %v709_v48 = vadd.f32 %v2486_v25, %v2422_v4 }
 0x22d   :  { %v805_v55 = vpop.permute.xlu1 %804 }
 0x22e   :  { %vm868_vm12 = vcmp.eq.s32.totalorder %v3570_v45, %v805_v55  ;;  %vm869_vm13 = vcmp.eq.s32.totalorder %v3577_v47, %v805_v55 }
 0x22f   :  { %v2549_v62 = vsel %vm868_vm12, 1.0, %v3144_v52  ;;  %v2550_v59 = vsel %vm869_vm13, 1.0, %v3144_v52 }
 0x230   :  { %v1060_v8 = vadd.f32 %v2549_v62, %v708_v46  ;;  %v1061_v63 = vadd.f32 %v2550_v59, %v709_v48 }
 0x232   :  { %v1157_v50 = vpop.permute.xlu1 %1156 }
 0x233   :  { %vm1220_vm14 = vcmp.eq.s32.totalorder %v3570_v45, %v1157_v50  ;;  %vm1221_vm15 = vcmp.eq.s32.totalorder %v3577_v47, %v1157_v50  ;;  %v1679_v47 = vmax.f32 %v1525_v38, 0.0 }
 0x234   :  { %v2613_v9 = vsel %vm1220_vm14, 1.0, %v3144_v52  ;;  %v2614_v12 = vsel %vm1221_vm15, 1.0, %v3144_v52 }
 0x235   :  { %v1412_v40 = vadd.f32 %v2613_v9, %v1060_v8  ;;  %v1413_v49 = vadd.f32 %v2614_v12, %v1061_v63  ;;  %v1589_v35 = vpop.f32.mrb[28].mxu0 }
 0x236   :  { %v1591_v18 = vpop.f32.mrb[29].mxu0  ;;  %v1590_v33 = vadd.f32 %v4507_v11, %v1589_v35 }
 0x237   :  { %1672 = vmatprep.mubr.f32.mxu1 %v1413_v49 }
 0x238   :  { %1673 = vmatmul.mubr.f32.gmra.mrb[14].mxu1 %v1412_v40  ;;  %v1692_v32 = vmax.f32 %v1590_v33, 0.0 }
 0x239   :  { %v1594_v45 = vpop.f32.mrb[30].mxu0  ;;  %2697 = vmatprep.mubr.f32.mxu1 %v1678_v19 }
 0x23a   :  { %v1596_v52 = vpop.f32.mrb[31].mxu0  ;;  %v1595_v60 = vadd.f32 %v4507_v11, %v1594_v45 }
 0x23c   :  { %2698 = vmatmul.mubr.f32.vlgmr.msra.gmra.mrb[16].mxu1 %v1679_v47  ;;  %v1693_v54 = vmax.f32 %v1595_v60, 0.0 }
 0x23d   :  { %2700 = vmatprep.mubr.f32.mxu1 %v1680_v5 }
 0x240   :  { %2701 = vmatmul.mubr.f32.gmra.mrb[18].mxu1 %v1681_v36 }
 0x241   :  { %2703 = vmatprep.mubr.f32.mxu1 %v1682_v3 }
 0x244   :  { %2704 = vmatmul.mubr.f32.gmra.mrb[20].mxu1 %v1683_v23 }
 0x245   :  { %2706 = vmatprep.mubr.f32.mxu1 %v1684_v13 }
 0x248   :  { %2707 = vmatmul.mubr.f32.gmra.mrb[22].mxu1 %v1685_v15 }
 0x249   :  { %2709 = vmatprep.mubr.f32.mxu1 %v1686_v57 }
 0x24c   :  { %2710 = vmatmul.mubr.f32.gmra.mrb[24].mxu1 %v1687_v51 }
 0x24d   :  { %2712 = vmatprep.mubr.f32.mxu1 %v1688_v22 }
 0x24e   :  { %v1599_v37 = vpop.f32.mrb[32].mxu0 }
 0x24f   :  { %v1601_v39 = vpop.f32.mrb[33].mxu0  ;;  %v1600_v42 = vadd.f32 %v4507_v11, %v1599_v37 }
 0x250   :  { %2713 = vmatmul.mubr.f32.gmra.mrb[26].mxu1 %v1689_v61 }
 0x251   :  { %2715 = vmatprep.mubr.f32.mxu1 %v1690_v29  ;;  %v1694_v34 = vmax.f32 %v1600_v42, 0.0 }
 0x254   :  { %2716 = vmatmul.mubr.f32.gmra.mrb[28].mxu1 %v1691_v43 }
 0x255   :  { %2718 = vmatprep.mubr.f32.mxu1 %v1692_v32  ;;  %v4566_v32 = vld [vmem:[%s4907_s4] ss:$0 sm:$0xff]  ;;  %s3145_s4 = smov [#allocation5]  }
 0x256   :  { %s2347_s1 = sshll.u32 %s3145_s4, 4  ;;  %s2348_s1 = int_to_ptr.vmem [resolvable:$true] %s2347_s1 }
 0x257   :  { %s3110_s26 = scalar_lea.vmem %s2348_s1, 4096  ;;  %p3115_p9 = scmp.lt.s32.totalorder %s2348_s1, %s2348_s1 }
 0x258   :  { %2719 = vmatmul.mubr.f32.gmra.mrb[30].mxu1 %v1693_v54  ;;  %p3111_p8 = scmp.ne.s32.totalorder %s2348_s1, %s3110_s26  ;;  %p3116_p10 = scmp.lt.s32.totalorder %s3110_s26, %s3110_s26 }
 0x259   :  { %2721 = vmatprep.mubr.f32.mxu1 %v1694_v34 }
 0x25a   :  { %p3117_p11 = por %p3116_p10, %p3115_p9 }
 0x25c   :  { %p3118_p12 = pnand %p3117_p11, %p3111_p8 }
 0x25d   :  { %v1604_v10 = vpop.f32.mrb[34].mxu0 }
 0x25e   :  { %v1605_v28 = vadd.f32 %v4507_v11, %v1604_v10  ;;  %v1606_v44 = vpop.f32.mrb[35].mxu0 }
 0x260   :  { %v1695_v20 = vmax.f32 %v1605_v28, 0.0 }
 0x261   :  { %v1609_v41 = vpop.f32.mrb[36].mxu0 }
 0x262   :  { %v1610_v26 = vadd.f32 %v4507_v11, %v1609_v41  ;;  %v1611_v2 = vpop.f32.mrb[37].mxu0  ;;  %2722 = vmatmul.mubr.f32.gmra.mrb[32].mxu1 %v1695_v20 }
 0x264   :  { %v1696_v55 = vmax.f32 %v1610_v26, 0.0 }
 0x266   :  { %2724 = vmatprep.mubr.f32.mxu1 %v1696_v55 }
 0x26e   :  { %v1614_v58 = vpop.f32.mrb[38].mxu0 }
 0x26f   :  { %v1615_v25 = vadd.f32 %v4507_v11, %v1614_v58  ;;  %v1616_v24 = vpop.f32.mrb[39].mxu0 }
 0x271   :  { %v1697_v4 = vmax.f32 %v1615_v25, 0.0 }
 0x273   :  { %2725 = vmatmul.mubr.f32.gmra.mrb[34].mxu1 %v1697_v4 }
 0x292   :  { %v1619_v62 = vpop.f32.mrb[40].mxu0 }
 0x293   :  { %v1620_v59 = vadd.f32 %v4507_v11, %v1619_v62  ;;  %v1621_v46 = vpop.f32.mrb[41].mxu0 }
 0x295   :  { %v1698_v48 = vmax.f32 %v1620_v59, 0.0 }
 0x296   :  { %v1624_v53 = vpop.f32.mrb[42].mxu0  ;;  %v1639_v50 = vpop.f32.mrb[0].mxu1 }
 0x297   :  { %v1625_v8 = vadd.f32 %v4507_v11, %v1624_v53  ;;  %v1626_v63 = vpop.f32.mrb[43].mxu0  ;;  %v1641_v9 = vpop.f32.mrb[1].mxu1  ;;  %2727 = vmatprep.mubr.f32.mxu1 %v1698_v48  ;;  %v1640_v52 = vadd.f32 %v4507_v11, %v1639_v50 }
 0x299   :  { %v1699_v12 = vmax.f32 %v1625_v8, 0.0  ;;  %v1702_v16 = vmax.f32 %v1640_v52, 0.0 }
 0x29b   :  { %2728 = vmatmul.mubr.f32.gmra.mrb[36].mxu1 %v1699_v12 }
 0x2ae   :  { %v1644_v40 = vpop.f32.mrb[2].mxu1 }
 0x2af   :  { %v1646_v49 = vpop.f32.mrb[3].mxu1  ;;  %v1645_v0 = vadd.f32 %v4507_v11, %v1644_v40 }
 0x2b1   :  { %v1703_v7 = vmax.f32 %v1645_v0, 0.0 }
 0x2b2   :  { %v1649_v35 = vpop.f32.mrb[4].mxu1 }
 0x2b3   :  { %v1651_v38 = vpop.f32.mrb[5].mxu1  ;;  %v1650_v23 = vadd.f32 %v4507_v11, %v1649_v35 }
 0x2b5   :  { %v1704_v30 = vmax.f32 %v1650_v23, 0.0 }
 0x2c6   :  { %v1629_v18 = vpop.f32.mrb[44].mxu0 }
 0x2c7   :  { %v1630_v19 = vadd.f32 %v4507_v11, %v1629_v18  ;;  %v1631_v21 = vpop.f32.mrb[45].mxu0 }
 0x2c9   :  { %v1700_v45 = vmax.f32 %v1630_v19, 0.0 }
 0x2cb   :  { %2730 = vmatprep.mubr.f32.mxu1 %v1700_v45 }
 0x2d1   :  { %v1654_v47 = vpop.f32.mrb[6].mxu1 }
 0x2d2   :  { %v1656_v27 = vpop.f32.mrb[7].mxu1  ;;  %v1655_v13 = vadd.f32 %v4507_v11, %v1654_v47 }
 0x2d4   :  { %v1705_v15 = vmax.f32 %v1655_v13, 0.0 }
 0x2d9   :  { %v1634_v5 = vpop.f32.mrb[46].mxu0 }
 0x2da   :  { %v1635_v1 = vadd.f32 %v4507_v11, %v1634_v5  ;;  %v1636_v36 = vpop.f32.mrb[47].mxu0 }
 0x2dc   :  { %v1701_v3 = vmax.f32 %v1635_v1, 0.0 }
 0x2de   :  { %2731 = vmatmul.mubr.f32.gmra.mrb[38].mxu1 %v1701_v3 }
 0x2df   :  { %2733 = vmatprep.mubr.f32.mxu1 %v1702_v16 }
 0x2e2   :  { %2734 = vmatmul.mubr.f32.gmra.mrb[40].mxu1 %v1703_v7 }
 0x2e3   :  { %2736 = vmatprep.mubr.f32.mxu1 %v1704_v30 }
 0x2e6   :  { %2737 = vmatmul.mubr.f32.gmra.mrb[42].mxu1 %v1705_v15 }
 0x2e8   :  { %v1659_v56 = vpop.f32.mrb[8].mxu1 }
 0x2e9   :  { %v1660_v57 = vadd.f32 %v4507_v11, %v1659_v56  ;;  %v1661_v14 = vpop.f32.mrb[9].mxu1 }
 0x2eb   :  { %v1706_v51 = vmax.f32 %v1660_v57, 0.0 }
 0x2ed   :  { %2739 = vmatprep.mubr.f32.mxu1 %v1706_v51 }
 0x2f7   :  { %v1664_v17 = vpop.f32.mrb[10].mxu1 }
 0x2f8   :  { %v1665_v22 = vadd.f32 %v4507_v11, %v1664_v17  ;;  %v1666_v6 = vpop.f32.mrb[11].mxu1 }
 0x2fa   :  { %v1707_v61 = vmax.f32 %v1665_v22, 0.0 }
 0x2fb   :  { %v1669_v31 = vpop.f32.mrb[12].mxu1 }
 0x2fc   :  { %v1670_v37 = vadd.f32 %v4507_v11, %v1669_v31  ;;  %v1671_v29 = vpop.f32.mrb[13].mxu1  ;;  %2740 = vmatmul.mubr.f32.gmra.mrb[44].mxu1 %v1707_v61 }
 0x2fe   :  { %v1708_v33 = vmax.f32 %v1670_v37, 0.0 }
 0x300   :  { %2742 = vmatprep.mubr.f32.mxu1 %v1708_v33 }
 0x30b   :  { %v1674_v39 = vpop.f32.mrb[14].mxu1 }
 0x30c   :  { %v1675_v43 = vadd.f32 %v4507_v11, %v1674_v39  ;;  %v1676_v60 = vpop.f32.mrb[15].mxu1 }
 0x30e   :  { %v1709_v42 = vmax.f32 %v1675_v43, 0.0 }
 0x30f   :  { %v2699_v54 = vpop.f32.mrb[16].mxu1 }
 0x310   :  { %v4569_v34 = vadd.f32 %v2699_v54, %v4566_v32  ;;  %v1799_v10 = vpop.f32.mrb[17].mxu1  ;;  %2743 = vmatmul.mubr.f32.gmra.mrb[46].mxu1 %v1709_v42 }
 0x311   :  { %v4572_v28 = vadd.f32 %v4566_v32, %v1799_v10 }
 0x312   :  { %1960 = vmax.xlane.f32.xlu1 %v4569_v34 }
 0x313   :  { %v2702_v44 = vpop.f32.mrb[18].mxu1  ;;  %1958 = vmax.xlane.f32.xlu0 %v4572_v28 }
 0x314   :  { %v4577_v11 = vadd.f32 %v2702_v44, %v4566_v32  ;;  %v1809_v20 = vpop.f32.mrb[19].mxu1 }
 0x315   :  { %v4581_v2 = vadd.f32 %v4566_v32, %v1809_v20 }
 0x317   :  { %v2705_v41 = vpop.f32.mrb[20].mxu1  ;;  %1964 = vmax.xlane.f32.xlu0 %v4577_v11 }
 0x318   :  { %v1819_v26 = vpop.f32.mrb[21].mxu1  ;;  %v4589_v24 = vadd.f32 %v2705_v41, %v4566_v32 }
 0x319   :  { %v4584_v55 = vadd.f32 %v4566_v32, %v1819_v26 }
 0x31b   :  { %v2708_v58 = vpop.f32.mrb[22].mxu1  ;;  %1966 = vmax.xlane.f32.xlu1 %v4584_v55  ;;  %1962 = vmax.xlane.f32.xlu0 %v4581_v2 }
 0x31c   :  { %v1829_v25 = vpop.f32.mrb[23].mxu1  ;;  %v4597_v46 = vadd.f32 %v2708_v58, %v4566_v32 }
 0x31d   :  { %v4592_v4 = vadd.f32 %v4566_v32, %v1829_v25 }
 0x31f   :  { %v2711_v62 = vpop.f32.mrb[24].mxu1  ;;  %1970 = vmax.xlane.f32.xlu1 %v4592_v4  ;;  %1968 = vmax.xlane.f32.xlu0 %v4589_v24 }
 0x320   :  { %v1839_v59 = vpop.f32.mrb[25].mxu1  ;;  %v4605_v8 = vadd.f32 %v2711_v62, %v4566_v32 }
 0x321   :  { %v4600_v48 = vadd.f32 %v4566_v32, %v1839_v59 }
 0x323   :  { %v2714_v53 = vpop.f32.mrb[26].mxu1  ;;  %1974 = vmax.xlane.f32.xlu1 %v4600_v48  ;;  %1972 = vmax.xlane.f32.xlu0 %v4597_v46 }
 0x324   :  { %v1849_v50 = vpop.f32.mrb[27].mxu1  ;;  %v4613_v40 = vadd.f32 %v2714_v53, %v4566_v32 }
 0x325   :  { %v4608_v63 = vadd.f32 %v4566_v32, %v1849_v50 }
 0x327   :  { %v2717_v9 = vpop.f32.mrb[28].mxu1  ;;  %1978 = vmax.xlane.f32.xlu1 %v4608_v63  ;;  %1976 = vmax.xlane.f32.xlu0 %v4605_v8 }
 0x328   :  { %v1859_v12 = vpop.f32.mrb[29].mxu1  ;;  %v4621_v18 = vadd.f32 %v2717_v9, %v4566_v32 }
 0x329   :  { %v4616_v49 = vadd.f32 %v4566_v32, %v1859_v12 }
 0x32b   :  { %v2720_v35 = vpop.f32.mrb[30].mxu1  ;;  %1982 = vmax.xlane.f32.xlu1 %v4616_v49  ;;  %1980 = vmax.xlane.f32.xlu0 %v4613_v40 }
 0x32c   :  { %v1869_v38 = vpop.f32.mrb[31].mxu1  ;;  %v4629_v21 = vadd.f32 %v2720_v35, %v4566_v32 }
 0x32d   :  { %v4624_v19 = vadd.f32 %v4566_v32, %v1869_v38 }
 0x32f   :  { %1986 = vmax.xlane.f32.xlu1 %v4624_v19  ;;  %1984 = vmax.xlane.f32.xlu0 %v4621_v18 }
 0x333   :  { %1988 = vmax.xlane.f32.xlu0 %v4629_v21 }
 0x335   :  { %v2723_v45 = vpop.f32.mrb[32].mxu1 }
 0x336   :  { %v4633_v47 = vadd.f32 %v2723_v45, %v4566_v32  ;;  %v1879_v27 = vpop.f32.mrb[33].mxu1 }
 0x337   :  { %v4636_v52 = vadd.f32 %v4566_v32, %v1879_v27 }
 0x338   :  { %4925 = vst [vmem:[#allocation8_spill] sm:$0xff] %v4633_v47  ;;  %1992 = vmax.xlane.f32.xlu0 %v4633_v47 }
 0x339   :  { %4926 = vst [vmem:[#allocation9_spill] sm:$0xff] %v4636_v52  ;;  %1990 = vmax.xlane.f32.xlu1 %v4636_v52 }
 0x346   :  { %v2726_v5 = vpop.f32.mrb[34].mxu1 }
 0x347   :  { %v4641_v1 = vadd.f32 %v2726_v5, %v4566_v32  ;;  %v1889_v36 = vpop.f32.mrb[35].mxu1 }
 0x348   :  { %v4644_v0 = vadd.f32 %v4566_v32, %v1889_v36 }
 0x349   :  { %1996 = vmax.xlane.f32.xlu0 %v4641_v1 }
 0x34a   :  { %4927 = vst [vmem:[#allocation10_spill] sm:$0xff] %v4644_v0  ;;  %1994 = vmax.xlane.f32.xlu1 %v4644_v0 }
 0x36e   :  { %v2729_v3 = vpop.f32.mrb[36].mxu1 }
 0x36f   :  { %v4649_v16 = vadd.f32 %v2729_v3, %v4566_v32  ;;  %v1899_v23 = vpop.f32.mrb[37].mxu1 }
 0x370   :  { %v4652_v7 = vadd.f32 %v4566_v32, %v1899_v23 }
 0x371   :  { %2000 = vmax.xlane.f32.xlu0 %v4649_v16 }
 0x372   :  { %4928 = vst [vmem:[#allocation11_spill] sm:$0xff] %v4652_v7  ;;  %1998 = vmax.xlane.f32.xlu1 %v4652_v7 }
 0x39f   :  { %v4686_v39 = vpop.xlane.xlu1 %1960 }
 0x3a0   :  { %v4680_v37 = vpop.xlane.xlu0 %1958  ;;  %v2023_v41 = vsub.f32 %v4569_v34, %v4686_v39 }
 0x3a1   :  { %v2022_v26 = vsub.f32 %v4572_v28, %v4680_v37 }
 0x3a2   :  { %v2056_v25 = vmul.f32 1.442695, %v2023_v41 }
 0x3a3   :  { %v2054_v59 = vmul.f32 1.442695, %v2022_v26 }
 0x3a4   :  { %v4682_v29 = vpop.xlane.xlu0 %1964  ;;  %2954 = vpow2.f32 %v2056_v25 }
 0x3a5   :  { %v2025_v62 = vsub.f32 %v4577_v11, %v4682_v29  ;;  %2956 = vpow2.f32 %v2054_v59 }
 0x3a7   :  { %v2060_v9 = vmul.f32 1.442695, %v2025_v62 }
 0x3a8   :  { %v4684_v33 = vpop.xlane.xlu0 %1962  ;;  %v4697_v44 = vpop.xlane.xlu1 %1966 }
 0x3a9   :  { %v2024_v53 = vsub.f32 %v4581_v2, %v4684_v33  ;;  %v2026_v38 = vsub.f32 %v4584_v55, %v4697_v44  ;;  %2958 = vpow2.f32 %v2060_v9 }
 0x3ab   :  { %v2058_v45 = vmul.f32 1.442695, %v2024_v53  ;;  %v2062_v23 = vmul.f32 1.442695, %v2026_v38 }
 0x3ac   :  { %v4688_v60 = vpop.xlane.xlu0 %1968  ;;  %v4706_v58 = vpop.xlane.xlu1 %1970 }
 0x3ad   :  { %v2027_v12 = vsub.f32 %v4589_v24, %v4688_v60  ;;  %2960 = vpow2.f32 %v2058_v45 }
 0x3ae   :  { %v2955_v25 = vpop.eup %2954 }
 0x3af   :  { %v2064_v5 = vmul.f32 1.442695, %v2027_v12  ;;  %v2957_v62 = vpop.eup %2956 }
 0x3b0   :  { %v4700_v20 = vpop.xlane.xlu0 %1972  ;;  %v4716_v35 = vpop.xlane.xlu1 %1974 }
 0x3b1   :  { %v2732_v13 = vpop.f32.mrb[38].mxu1  ;;  %v2029_v36 = vsub.f32 %v4597_v46, %v4700_v20  ;;  %2962 = vpow2.f32 %v2064_v5  ;;  %v2030_v41 = vsub.f32 %v4600_v48, %v4716_v35 }
 0x3b2   :  { %v4657_v30 = vadd.f32 %v2732_v13, %v4566_v32  ;;  %v1909_v15 = vpop.f32.mrb[39].mxu1  ;;  %v2028_v13 = vsub.f32 %v4592_v4, %v4706_v58  ;;  %2964 = vpow2.f32 %v2062_v23 }
 0x3b3   :  { %v4660_v56 = vadd.f32 %v4566_v32, %v1909_v15  ;;  %v2070_v9 = vmul.f32 1.442695, %v2030_v41  ;;  %v2959_v38 = vpop.eup %2958 }
 0x3b4   :  { %2004 = vmax.xlane.f32.xlu0 %v4657_v30  ;;  %v4712_v50 = vpop.xlane.xlu0 %1976 }
 0x3b5   :  { %v2735_v57 = vpop.f32.mrb[40].mxu1  ;;  %2002 = vmax.xlane.f32.xlu1 %v4660_v56 }
 0x3b6   :  { %v4665_v14 = vadd.f32 %v2735_v57, %v4566_v32  ;;  %v1919_v51 = vpop.f32.mrb[41].mxu1 }
 0x3b7   :  { %v4668_v17 = vadd.f32 %v4566_v32, %v1919_v51  ;;  %v4729_v51 = vpop.xlane.xlu1 %1978  ;;  %v2961_v45 = vpop.eup %2960 }
 0x3b8   :  { %4929 = vst [vmem:[#allocation12_spill] sm:$0xff] %v4665_v14  ;;  %2008 = vmax.xlane.f32.xlu0 %v4665_v14  ;;  %v4720_v27 = vpop.xlane.xlu0 %1980  ;;  %v2032_v12 = vsub.f32 %v4608_v63, %v4729_v51 }
 0x3b9   :  { %4930 = vst [vmem:[#allocation13_spill] sm:$0xff] %v4668_v17  ;;  %v2738_v22 = vpop.f32.mrb[42].mxu1  ;;  %2006 = vmax.xlane.f32.xlu1 %v4668_v17  ;;  %v2033_v53 = vsub.f32 %v4613_v40, %v4720_v27 }
 0x3ba   :  { %v4673_v6 = vadd.f32 %v2738_v22, %v4566_v32  ;;  %v1929_v61 = vpop.f32.mrb[43].mxu1  ;;  %v2074_v23 = vmul.f32 1.442695, %v2032_v12 }
 0x3bb   :  { %v4676_v31 = vadd.f32 %v4566_v32, %v1929_v61  ;;  %v2068_v61 = vmul.f32 1.442695, %v2029_v36  ;;  %v4742_v59 = vpop.xlane.xlu1 %1982  ;;  %v2076_v36 = vmul.f32 1.442695, %v2033_v53 }
 0x3bc   :  { %4931 = vst [vmem:[#allocation14_spill] sm:$0xff] %v4673_v6  ;;  %2012 = vmax.xlane.f32.xlu0 %v4673_v6  ;;  %v4740_v26 = vpop.xlane.xlu0 %1984 }
 0x3bd   :  { %4932 = vst [vmem:[#allocation15_spill] sm:$0xff] %v4676_v31  ;;  %2010 = vmax.xlane.f32.xlu1 %v4676_v31  ;;  %2966 = vpow2.f32 %v2068_v61 }
 0x3bf   :  { %v4754_v61 = vpop.xlane.xlu1 %1986 }
 0x3c0   :  { %v4748_v5 = vpop.xlane.xlu0 %1988 }
 0x3c1   :  { %v2037_v41 = vsub.f32 %v4629_v21, %v4748_v5 }
 0x3cf   :  { %v2741_v43 = vpop.f32.mrb[44].mxu1 }
 0x3d0   :  { %v4691_v42 = vadd.f32 %v2741_v43, %v4566_v32  ;;  %v1939_v54 = vpop.f32.mrb[45].mxu1  ;;  %v2031_v43 = vsub.f32 %v4605_v8, %v4712_v50 }
 0x3d1   :  { %v4694_v10 = vadd.f32 %v4566_v32, %v1939_v54  ;;  %v2066_v54 = vmul.f32 1.442695, %v2028_v13  ;;  %v2034_v13 = vsub.f32 %v4616_v49, %v4742_v59 }
 0x3d2   :  { %4933 = vst [vmem:[#allocation16_spill] sm:$0xff] %v4691_v42  ;;  %2016 = vmax.xlane.f32.xlu0 %v4691_v42 }
 0x3d3   :  { %4934 = vst [vmem:[#allocation17_spill] sm:$0xff] %v4694_v10  ;;  %2014 = vmax.xlane.f32.xlu1 %v4694_v10  ;;  %2968 = vpow2.f32 %v2066_v54 }
 0x3e3   :  { %v2744_v3 = vpop.f32.mrb[46].mxu1 }
 0x3e4   :  { %v4727_v15 = vadd.f32 %v2744_v3, %v4566_v32  ;;  %v1949_v57 = vpop.f32.mrb[47].mxu1  ;;  %v2035_v3 = vsub.f32 %v4621_v18, %v4740_v26 }
 0x3e5   :  { %v4732_v22 = vadd.f32 %v4566_v32, %v1949_v57  ;;  %v2072_v32 = vmul.f32 1.442695, %v2031_v43  ;;  %v2963_v57 = vpop.eup %2962 }
 0x3e6   :  { %4935 = vst [vmem:[#allocation18_spill] sm:$0xff] %v4727_v15  ;;  %2020 = vmax.xlane.f32.xlu0 %v4727_v15  ;;  %v2965_v43 = vpop.eup %2964  ;;  %v2080_v54 = vmul.f32 1.442695, %v2035_v3 }
 0x3e7   :  { %4936 = vst [vmem:[#allocation19_spill] sm:$0xff] %v4732_v22  ;;  %2018 = vmax.xlane.f32.xlu1 %v4732_v22  ;;  %2970 = vpow2.f32 %v2072_v32  ;;  %v4760_v32 = vpop.xlane.xlu0 %1992  ;;  %v2967_v53 = vpop.eup %2966 }
 0x3e8   :  { %2972 = vpow2.f32 %v2070_v9  ;;  %v4762_v9 = vpop.xlane.xlu1 %1990  ;;  %v2969_v12 = vpop.eup %2968 }
 0x3e9   :  { %2974 = vpow2.f32 %v2076_v36  ;;  %v2038_v3 = vsub.f32 %v4636_v52, %v4762_v9 }
 0x3ea   :  { %2120 = vadd.xlane.f32.xlu0 %v2955_v25  ;;  %2976 = vpow2.f32 %v2074_v23  ;;  %v2078_v25 = vmul.f32 1.442695, %v2034_v13 }
 0x3eb   :  { %2118 = vadd.xlane.f32.xlu1 %v2957_v62  ;;  %v2036_v62 = vsub.f32 %v4624_v19, %v4754_v61  ;;  %2978 = vpow2.f32 %v2080_v54  ;;  %v4768_v23 = vpop.xlane.xlu0 %1996 }
 0x3ec   :  { %2980 = vpow2.f32 %v2078_v25  ;;  %v2041_v54 = vsub.f32 %v4641_v1, %v4768_v23 }
 0x3ed   :  { %v2082_v36 = vmul.f32 1.442695, %v2036_v62 }
 0x3ee   :  { %2124 = vadd.xlane.f32.xlu0 %v2959_v38  ;;  %v2084_v38 = vmul.f32 1.442695, %v2037_v41  ;;  %v2086_v41 = vmul.f32 1.442695, %v2038_v3 }
 0x3ef   :  { %2122 = vadd.xlane.f32.xlu1 %v2961_v45  ;;  %v2039_v45 = vsub.f32 %v4633_v47, %v4760_v32  ;;  %v2092_v47 = vmul.f32 1.442695, %v2041_v54 }
 0x3f0   :  { %2982 = vpow2.f32 %v2084_v38 }
 0x3f1   :  { %v2971_v13 = vpop.eup %2970  ;;  %2984 = vpow2.f32 %v2082_v36 }
 0x3f2   :  { %2128 = vadd.xlane.f32.xlu0 %v2963_v57  ;;  %v4770_v57 = vpop.xlane.xlu1 %1994 }
 0x3f3   :  { %2126 = vadd.xlane.f32.xlu1 %v2965_v43  ;;  %v2973_v43 = vpop.eup %2972  ;;  %v2040_v25 = vsub.f32 %v4644_v0, %v4770_v57 }
 0x3f4   :  { %v2975_v62 = vpop.eup %2974 }
 0x3f6   :  { %2132 = vadd.xlane.f32.xlu0 %v2967_v53  ;;  %v2088_v53 = vmul.f32 1.442695, %v2039_v45 }
 0x3f7   :  { %2130 = vadd.xlane.f32.xlu1 %v2969_v12  ;;  %v2977_v12 = vpop.eup %2976 }
 0x3f8   :  { %2986 = vpow2.f32 %v2088_v53  ;;  %v2979_v3 = vpop.eup %2978 }
 0x3f9   :  { %2988 = vpow2.f32 %v2086_v41 }
 0x3fa   :  { %2136 = vadd.xlane.f32.xlu0 %v2971_v13  ;;  %v2090_v13 = vmul.f32 1.442695, %v2040_v25  ;;  %2990 = vpow2.f32 %v2092_v47 }
 0x3fb   :  { %2134 = vadd.xlane.f32.xlu1 %v2973_v43  ;;  %v2981_v43 = vpop.eup %2980 }
 0x3fc   :  { %2992 = vpow2.f32 %v2090_v13  ;;  %v2983_v54 = vpop.eup %2982 }
 0x3fe   :  { %v4776_v52 = vpop.xlane.xlu0 %2000  ;;  %2140 = vadd.xlane.f32.xlu0 %v2975_v62  ;;  %v2985_v62 = vpop.eup %2984 }
 0x3ff   :  { %v2043_v38 = vsub.f32 %v4649_v16, %v4776_v52  ;;  %v4780_v45 = vpop.xlane.xlu1 %1998  ;;  %2138 = vadd.xlane.f32.xlu1 %v2977_v12 }
 0x400   :  { %v2042_v36 = vsub.f32 %v4652_v7, %v4780_v45 }
 0x401   :  { %v2096_v0 = vmul.f32 1.442695, %v2043_v38 }
 0x402   :  { %2144 = vadd.xlane.f32.xlu0 %v2979_v3  ;;  %v2094_v53 = vmul.f32 1.442695, %v2042_v36  ;;  %v2987_v12 = vpop.eup %2986 }
 0x403   :  { %2142 = vadd.xlane.f32.xlu1 %v2981_v43  ;;  %2994 = vpow2.f32 %v2096_v0  ;;  %v2989_v41 = vpop.eup %2988 }
 0x404   :  { %2996 = vpow2.f32 %v2094_v53  ;;  %v2991_v25 = vpop.eup %2990 }
 0x406   :  { %2148 = vadd.xlane.f32.xlu0 %v2983_v54  ;;  %v2993_v7 = vpop.eup %2992 }
 0x407   :  { %2146 = vadd.xlane.f32.xlu1 %v2985_v62 }
 0x40a   :  { %2152 = vadd.xlane.f32.xlu0 %v2987_v12 }
 0x40b   :  { %2150 = vadd.xlane.f32.xlu1 %v2989_v41 }
 0x40d   :  { %v2995_v3 = vpop.eup %2994 }
 0x40e   :  { %2156 = vadd.xlane.f32.xlu0 %v2991_v25  ;;  %v2997_v47 = vpop.eup %2996 }
 0x40f   :  { %2154 = vadd.xlane.f32.xlu1 %v2993_v7 }
 0x412   :  { %2160 = vadd.xlane.f32.xlu0 %v2995_v3 }
 0x413   :  { %2158 = vadd.xlane.f32.xlu1 %v2997_v47 }
 0x441   :  { %v4784_v38 = vpop.xlane.xlu0 %2004 }
 0x442   :  { %v2045_v13 = vsub.f32 %v4657_v30, %v4784_v38  ;;  %v4788_v0 = vpop.xlane.xlu1 %2002 }
 0x443   :  { %v2044_v36 = vsub.f32 %v4660_v56, %v4788_v0 }
 0x444   :  { %v2100_v43 = vmul.f32 1.442695, %v2045_v13 }
 0x445   :  { %v2098_v53 = vmul.f32 1.442695, %v2044_v36  ;;  %v4792_v54 = vpop.xlane.xlu0 %2008 }
 0x446   :  { %2998 = vpow2.f32 %v2100_v43  ;;  %v2047_v7 = vsub.f32 %v4665_v14, %v4792_v54  ;;  %v4796_v62 = vpop.xlane.xlu1 %2006 }
 0x447   :  { %3000 = vpow2.f32 %v2098_v53  ;;  %v2046_v12 = vsub.f32 %v4668_v17, %v4796_v62 }
 0x448   :  { %v2104_v41 = vmul.f32 1.442695, %v2047_v7 }
 0x449   :  { %v2102_v25 = vmul.f32 1.442695, %v2046_v12  ;;  %v4800_v3 = vpop.xlane.xlu0 %2012 }
 0x44a   :  { %3002 = vpow2.f32 %v2104_v41  ;;  %v2049_v47 = vsub.f32 %v4673_v6, %v4800_v3  ;;  %v4804_v13 = vpop.xlane.xlu1 %2010 }
 0x44b   :  { %3004 = vpow2.f32 %v2102_v25  ;;  %v2048_v36 = vsub.f32 %v4676_v31, %v4804_v13 }
 0x44c   :  { %v2108_v43 = vmul.f32 1.442695, %v2049_v47 }
 0x44d   :  { %v2106_v14 = vmul.f32 1.442695, %v2048_v36 }
 0x44e   :  { %3006 = vpow2.f32 %v2108_v43 }
 0x44f   :  { %3008 = vpow2.f32 %v2106_v14 }
 0x450   :  { %v2999_v53 = vpop.eup %2998 }
 0x451   :  { %v3001_v17 = vpop.eup %3000  ;;  %2164 = vadd.xlane.f32.xlu0 %v2999_v53 }
 0x452   :  { %2162 = vadd.xlane.f32.xlu1 %v3001_v17 }
 0x454   :  { %v3003_v7 = vpop.eup %3002 }
 0x455   :  { %v3005_v12 = vpop.eup %3004  ;;  %2168 = vadd.xlane.f32.xlu0 %v3003_v7 }
 0x456   :  { %2166 = vadd.xlane.f32.xlu1 %v3005_v12 }
 0x458   :  { %v3007_v41 = vpop.eup %3006 }
 0x459   :  { %v3009_v6 = vpop.eup %3008  ;;  %2172 = vadd.xlane.f32.xlu0 %v3007_v41 }
 0x45a   :  { %2170 = vadd.xlane.f32.xlu1 %v3009_v6 }
 0x45f   :  { %v4808_v25 = vpop.xlane.xlu0 %2016 }
 0x460   :  { %4937 = vst [vmem:[#allocation20_spill] sm:$0xff] %v4808_v25  ;;  %v2051_v47 = vsub.f32 %v4691_v42, %v4808_v25  ;;  %v4812_v36 = vpop.xlane.xlu1 %2014 }
 0x461   :  { %4938 = vst [vmem:[#allocation21_spill] sm:$0xff] %v4812_v36  ;;  %v2050_v14 = vsub.f32 %v4694_v10, %v4812_v36 }
 0x462   :  { %v2112_v43 = vmul.f32 1.442695, %v2051_v47 }
 0x463   :  { %v2110_v17 = vmul.f32 1.442695, %v2050_v14 }
 0x464   :  { %3010 = vpow2.f32 %v2112_v43 }
 0x465   :  { %3012 = vpow2.f32 %v2110_v17 }
 0x46e   :  { %v3011_v53 = vpop.eup %3010 }
 0x46f   :  { %v3013_v7 = vpop.eup %3012  ;;  %2176 = vadd.xlane.f32.xlu0 %v3011_v53 }
 0x470   :  { %2174 = vadd.xlane.f32.xlu1 %v3013_v7 }
 0x473   :  { %v4816_v12 = vpop.xlane.xlu0 %2020 }
 0x474   :  { %4939 = vst [vmem:[#allocation22_spill] sm:$0xff] %v4816_v12  ;;  %v2053_v6 = vsub.f32 %v4727_v15, %v4816_v12  ;;  %v4820_v41 = vpop.xlane.xlu1 %2018 }
 0x475   :  { %4940 = vst [vmem:[#allocation23_spill] sm:$0xff] %v4820_v41  ;;  %v2052_v42 = vsub.f32 %v4732_v22, %v4820_v41 }
 0x476   :  { %v2116_v25 = vmul.f32 1.442695, %v2053_v6 }
 0x477   :  { %v2114_v10 = vmul.f32 1.442695, %v2052_v42  ;;  %v2121_v47 = vpop.xlane.xlu0 %2120 }
 0x478   :  { %3014 = vpow2.f32 %v2116_v25  ;;  %v2119_v14 = vpop.xlane.xlu1 %2118 }
 0x479   :  { %3016 = vpow2.f32 %v2114_v10 }
 0x47a   :  { %3018 = vlog2.f32 %v2121_v47 }
 0x47b   :  { %3020 = vlog2.f32 %v2119_v14  ;;  %v2125_v43 = vpop.xlane.xlu0 %2124 }
 0x47c   :  { %3022 = vlog2.f32 %v2125_v43  ;;  %v2123_v17 = vpop.xlane.xlu1 %2122 }
 0x47d   :  { %3024 = vlog2.f32 %v2123_v17 }
 0x47f   :  { %v2129_v53 = vpop.xlane.xlu0 %2128 }
 0x480   :  { %3026 = vlog2.f32 %v2129_v53  ;;  %v2127_v7 = vpop.xlane.xlu1 %2126 }
 0x481   :  { %3028 = vlog2.f32 %v2127_v7 }
 0x482   :  { %v3015_v15 = vpop.eup %3014 }
 0x483   :  { %v3017_v12 = vpop.eup %3016  ;;  %2180 = vadd.xlane.f32.xlu0 %v3015_v15  ;;  %v2133_v22 = vpop.xlane.xlu0 %2132 }
 0x484   :  { %v3019_v6 = vpop.eup %3018  ;;  %3030 = vlog2.f32 %v2133_v22  ;;  %2178 = vadd.xlane.f32.xlu1 %v3017_v12  ;;  %v2131_v42 = vpop.xlane.xlu1 %2130 }
 0x485   :  { %v3021_v25 = vpop.eup %3020  ;;  %v2185_v10 = vmul.f32 0.6931472, %v3019_v6  ;;  %3032 = vlog2.f32 %v2131_v42 }
 0x486   :  { %v3023_v47 = vpop.eup %3022  ;;  %v2183_v14 = vmul.f32 0.6931472, %v3021_v25 }
 0x487   :  { %v3025_v43 = vpop.eup %3024  ;;  %v2247_v17 = vadd.f32 %v2185_v10, %v4686_v39  ;;  %v2189_v41 = vmul.f32 0.6931472, %v3023_v47  ;;  %v2137_v53 = vpop.xlane.xlu0 %2136 }
 0x488   :  { %v2246_v7 = vadd.f32 %v2183_v14, %v4680_v37  ;;  %v2187_v36 = vmul.f32 0.6931472, %v3025_v43  ;;  %3034 = vlog2.f32 %v2137_v53  ;;  %v2135_v15 = vpop.xlane.xlu1 %2134 }
 0x489   :  { %v2279_v31 = vsub.f32 %v4569_v34, %v2247_v17  ;;  %v2249_v22 = vadd.f32 %v2189_v41, %v4682_v29  ;;  %3036 = vlog2.f32 %v2135_v15 }
 0x48a   :  { %v3027_v12 = vpop.eup %3026  ;;  %v2278_v6 = vsub.f32 %v4572_v28, %v2246_v7  ;;  %v2248_v42 = vadd.f32 %v2187_v36, %v4684_v33 }
 0x48b   :  { %v3029_v25 = vpop.eup %3028  ;;  %2311 = vst [vmem:[#allocation5 + $0x8] sm:$0xff] %v2279_v31  ;;  %v2281_v39 = vsub.f32 %v4577_v11, %v2249_v22  ;;  %v2193_v10 = vmul.f32 0.6931472, %v3027_v12  ;;  %v2141_v47 = vpop.xlane.xlu0 %2140 }
 0x48c   :  { %2310 = vst [vmem:[#allocation5] sm:$0xff] %v2278_v6  ;;  %v2280_v37 = vsub.f32 %v4581_v2, %v2248_v42  ;;  %v2191_v14 = vmul.f32 0.6931472, %v3029_v25  ;;  %3038 = vlog2.f32 %v2141_v47  ;;  %v2139_v34 = vpop.xlane.xlu1 %2138 }
 0x48d   :  { %2313 = vst [vmem:[#allocation5 + $0x18] sm:$0xff] %v2281_v39  ;;  %v2251_v29 = vadd.f32 %v2193_v10, %v4688_v60  ;;  %3040 = vlog2.f32 %v2139_v34 }
 0x48e   :  { %v3031_v41 = vpop.eup %3030  ;;  %2312 = vst [vmem:[#allocation5 + $0x10] sm:$0xff] %v2280_v37  ;;  %v2250_v28 = vadd.f32 %v2191_v14, %v4697_v44 }
 0x48f   :  { %v3033_v33 = vpop.eup %3032  ;;  %v2283_v31 = vsub.f32 %v4589_v24, %v2251_v29  ;;  %v2197_v11 = vmul.f32 0.6931472, %v3031_v41  ;;  %v2145_v36 = vpop.xlane.xlu0 %2144 }
 0x490   :  { %v2282_v43 = vsub.f32 %v4584_v55, %v2250_v28  ;;  %v2195_v17 = vmul.f32 0.6931472, %v3033_v33  ;;  %3042 = vlog2.f32 %v2145_v36  ;;  %v2143_v2 = vpop.xlane.xlu1 %2142 }
 0x491   :  { %2315 = vst [vmem:[#allocation5 + $0x28] sm:$0xff] %v2283_v31  ;;  %v2253_v53 = vadd.f32 %v2197_v11, %v4700_v20  ;;  %3044 = vlog2.f32 %v2143_v2 }
 0x492   :  { %v3035_v60 = vpop.eup %3034  ;;  %2314 = vst [vmem:[#allocation5 + $0x20] sm:$0xff] %v2282_v43  ;;  %v2252_v7 = vadd.f32 %v2195_v17, %v4706_v58 }
 0x493   :  { %v3037_v15 = vpop.eup %3036  ;;  %v2285_v44 = vsub.f32 %v4597_v46, %v2253_v53  ;;  %v2201_v22 = vmul.f32 0.6931472, %v3035_v60  ;;  %v2149_v24 = vpop.xlane.xlu0 %2148 }
 0x494   :  { %v2284_v12 = vsub.f32 %v4592_v4, %v2252_v7  ;;  %v2199_v6 = vmul.f32 0.6931472, %v3037_v15  ;;  %3046 = vlog2.f32 %v2149_v24  ;;  %v2147_v55 = vpop.xlane.xlu1 %2146 }
 0x495   :  { %2317 = vst [vmem:[#allocation5 + $0x38] sm:$0xff] %v2285_v44  ;;  %v2255_v42 = vadd.f32 %v2201_v22, %v4712_v50  ;;  %3048 = vlog2.f32 %v2147_v55 }
 0x496   :  { %v3039_v20 = vpop.eup %3038  ;;  %2316 = vst [vmem:[#allocation5 + $0x30] sm:$0xff] %v2284_v12  ;;  %v2254_v25 = vadd.f32 %v2199_v6, %v4716_v35  ;;  %v4941_v12 = vld [vmem:[#allocation8_spill] sm:$0xff] }
 0x497   :  { %v3041_v39 = vpop.eup %3040  ;;  %v2287_v58 = vsub.f32 %v4605_v8, %v2255_v42  ;;  %v2205_v10 = vmul.f32 0.6931472, %v3039_v20  ;;  %v2153_v46 = vpop.xlane.xlu0 %2152  ;;  %v4942_v42 = vld [vmem:[#allocation9_spill] sm:$0xff] }
 0x498   :  { %v2286_v47 = vsub.f32 %v4600_v48, %v2254_v25  ;;  %v2203_v37 = vmul.f32 0.6931472, %v3041_v39  ;;  %3050 = vlog2.f32 %v2153_v46  ;;  %v2151_v4 = vpop.xlane.xlu1 %2150 }
 0x499   :  { %2319 = vst [vmem:[#allocation5 + $0x48] sm:$0xff] %v2287_v58  ;;  %v2257_v14 = vadd.f32 %v2205_v10, %v4720_v27  ;;  %3052 = vlog2.f32 %v2151_v4  ;;  %v4943_v10 = vld [vmem:[#allocation10_spill] sm:$0xff] }
 0x49a   :  { %v3043_v50 = vpop.eup %3042  ;;  %2318 = vst [vmem:[#allocation5 + $0x40] sm:$0xff] %v2286_v47  ;;  %v2256_v34 = vadd.f32 %v2203_v37, %v4729_v51 }
 0x49b   :  { %v3045_v29 = vpop.eup %3044  ;;  %v2289_v35 = vsub.f32 %v4613_v40, %v2257_v14  ;;  %v2209_v41 = vmul.f32 0.6931472, %v3043_v50  ;;  %v2157_v8 = vpop.xlane.xlu0 %2156 }
 0x49c   :  { %v2288_v28 = vsub.f32 %v4608_v63, %v2256_v34  ;;  %v2207_v33 = vmul.f32 0.6931472, %v3045_v29  ;;  %3054 = vlog2.f32 %v2157_v8  ;;  %v2155_v48 = vpop.xlane.xlu1 %2154 }
 0x49d   :  { %2321 = vst [vmem:[#allocation5 + $0x58] sm:$0xff] %v2289_v35  ;;  %v2259_v31 = vadd.f32 %v2209_v41, %v4740_v26  ;;  %3056 = vlog2.f32 %v2155_v48 }
 0x49e   :  { %v3047_v27 = vpop.eup %3046  ;;  %2320 = vst [vmem:[#allocation5 + $0x50] sm:$0xff] %v2288_v28  ;;  %v2258_v11 = vadd.f32 %v2207_v33, %v4742_v59 }
 0x49f   :  { %v3049_v36 = vpop.eup %3048  ;;  %v2291_v51 = vsub.f32 %v4621_v18, %v2259_v31  ;;  %v2213_v43 = vmul.f32 0.6931472, %v3047_v27  ;;  %v2161_v40 = vpop.xlane.xlu0 %2160 }
 0x4a0   :  { %v2290_v17 = vsub.f32 %v4616_v49, %v2258_v11  ;;  %v2211_v2 = vmul.f32 0.6931472, %v3049_v36  ;;  %3058 = vlog2.f32 %v2161_v40  ;;  %v2159_v63 = vpop.xlane.xlu1 %2158 }
 0x4a1   :  { %2323 = vst [vmem:[#allocation5 + $0x68] sm:$0xff] %v2291_v51  ;;  %v2261_v53 = vadd.f32 %v2213_v43, %v4748_v5  ;;  %3060 = vlog2.f32 %v2159_v63 }
 0x4a2   :  { %v3051_v26 = vpop.eup %3050  ;;  %2322 = vst [vmem:[#allocation5 + $0x60] sm:$0xff] %v2290_v17  ;;  %v2260_v60 = vadd.f32 %v2211_v2, %v4754_v61  ;;  %v4945_v2 = vld [vmem:[#allocation12_spill] sm:$0xff] }
 0x4a3   :  { %v3053_v7 = vpop.eup %3052  ;;  %v2293_v59 = vsub.f32 %v4629_v21, %v2261_v53  ;;  %v2217_v15 = vmul.f32 0.6931472, %v3051_v26  ;;  %v4946_v53 = vld [vmem:[#allocation13_spill] sm:$0xff] }
 0x4a4   :  { %v2292_v18 = vsub.f32 %v4624_v19, %v2260_v60  ;;  %v2215_v44 = vmul.f32 0.6931472, %v3053_v7  ;;  %v4947_v60 = vld [vmem:[#allocation14_spill] sm:$0xff] }
 0x4a5   :  { %2325 = vst [vmem:[#allocation5 + $0x78] sm:$0xff] %v2293_v59  ;;  %v2263_v49 = vadd.f32 %v2217_v15, %v4760_v32 }
 0x4a6   :  { %v3055_v22 = vpop.eup %3054  ;;  %2324 = vst [vmem:[#allocation5 + $0x70] sm:$0xff] %v2292_v18  ;;  %v2262_v24 = vadd.f32 %v2215_v44, %v4762_v9 }
 0x4a7   :  { %v3057_v5 = vpop.eup %3056  ;;  %v2295_v6 = vsub.f32 %v4941_v12, %v2263_v49  ;;  %v2221_v55 = vmul.f32 0.6931472, %v3055_v22 }
 0x4a8   :  { %v2294_v61 = vsub.f32 %v4942_v42, %v2262_v24  ;;  %v2219_v20 = vmul.f32 0.6931472, %v3057_v5  ;;  %v4949_v24 = vld [vmem:[#allocation20_spill] sm:$0xff] }
 0x4a9   :  { %2327 = vst [vmem:[#allocation5 + $0x88] sm:$0xff] %v2295_v6  ;;  %v2265_v21 = vadd.f32 %v2221_v55, %v4768_v23  ;;  %v4944_v23 = vld [vmem:[#allocation11_spill] sm:$0xff]  ;;  %v4951_v6 = vld [vmem:[#allocation16_spill] sm:$0xff]  ;;  %v4952_v55 = vld [vmem:[#allocation17_spill] sm:$0xff] }
 0x4aa   :  { %v3059_v25 = vpop.eup %3058  ;;  %2326 = vst [vmem:[#allocation5 + $0x80] sm:$0xff] %v2294_v61  ;;  %v2264_v19 = vadd.f32 %v2219_v20, %v4770_v57 }
 0x4ab   :  { %v3061_v39 = vpop.eup %3060  ;;  %v2297_v32 = vsub.f32 %v4641_v1, %v2265_v21  ;;  %v2225_v58 = vmul.f32 0.6931472, %v3059_v25 }
 0x4ac   :  { %v2296_v9 = vsub.f32 %v4943_v10, %v2264_v19  ;;  %v2223_v46 = vmul.f32 0.6931472, %v3061_v39  ;;  %v4954_v10 = vld [vmem:[#allocation23_spill] sm:$0xff] }
 0x4ad   :  { %2329 = vst [vmem:[#allocation5 + $0x98] sm:$0xff] %v2297_v32  ;;  %v2267_v47 = vadd.f32 %v2225_v58, %v4776_v52  ;;  %v4953_v32 = vld [vmem:[#allocation22_spill] sm:$0xff] }
 0x4ae   :  { %2328 = vst [vmem:[#allocation5 + $0x90] sm:$0xff] %v2296_v9  ;;  %v2266_v37 = vadd.f32 %v2223_v46, %v4780_v45  ;;  %v4955_v46 = vld [vmem:[#allocation18_spill] sm:$0xff] }
 0x4af   :  { %v2299_v4 = vsub.f32 %v4649_v16, %v2267_v47 }
 0x4b0   :  { %v2298_v14 = vsub.f32 %v4944_v23, %v2266_v37  ;;  %v4956_v37 = vld [vmem:[#allocation19_spill] sm:$0xff] }
 0x4b1   :  { %2331 = vst [vmem:[#allocation5 + $0xa8] sm:$0xff] %v2299_v4 }
 0x4b2   :  { %2330 = vst [vmem:[#allocation5 + $0xa0] sm:$0xff] %v2298_v14 }
 0x4de   :  { %v2165_v57 = vpop.xlane.xlu0 %2164 }
 0x4df   :  { %3062 = vlog2.f32 %v2165_v57  ;;  %v2163_v50 = vpop.xlane.xlu1 %2162 }
 0x4e0   :  { %3064 = vlog2.f32 %v2163_v50 }
 0x4e2   :  { %v2169_v1 = vpop.xlane.xlu0 %2168 }
 0x4e3   :  { %3066 = vlog2.f32 %v2169_v1  ;;  %v2167_v34 = vpop.xlane.xlu1 %2166 }
 0x4e4   :  { %3068 = vlog2.f32 %v2167_v34 }
 0x4e6   :  { %v2173_v29 = vpop.xlane.xlu0 %2172 }
 0x4e7   :  { %3070 = vlog2.f32 %v2173_v29  ;;  %v2171_v52 = vpop.xlane.xlu1 %2170 }
 0x4e8   :  { %3072 = vlog2.f32 %v2171_v52 }
 0x4e9   :  { %v3063_v35 = vpop.eup %3062 }
 0x4ea   :  { %v3065_v45 = vpop.eup %3064  ;;  %v2229_v41 = vmul.f32 0.6931472, %v3063_v35 }
 0x4eb   :  { %v2227_v16 = vmul.f32 0.6931472, %v3065_v45 }
 0x4ec   :  { %v2269_v8 = vadd.f32 %v2229_v41, %v4784_v38 }
 0x4ed   :  { %v3067_v28 = vpop.eup %3066  ;;  %v2268_v33 = vadd.f32 %v2227_v16, %v4788_v0 }
 0x4ee   :  { %v3069_v48 = vpop.eup %3068  ;;  %v2301_v31 = vsub.f32 %v4657_v30, %v2269_v8  ;;  %v2233_v27 = vmul.f32 0.6931472, %v3067_v28 }
 0x4ef   :  { %v2300_v11 = vsub.f32 %v4660_v56, %v2268_v33  ;;  %v2231_v36 = vmul.f32 0.6931472, %v3069_v48 }
 0x4f0   :  { %2333 = vst [vmem:[#allocation5 + $0xb8] sm:$0xff] %v2301_v31  ;;  %v2271_v51 = vadd.f32 %v2233_v27, %v4792_v54  ;;  %v4948_v54 = vld [vmem:[#allocation15_spill] sm:$0xff] }
 0x4f1   :  { %v3071_v43 = vpop.eup %3070  ;;  %2332 = vst [vmem:[#allocation5 + $0xb0] sm:$0xff] %v2300_v11  ;;  %v2270_v40 = vadd.f32 %v2231_v36, %v4796_v62 }
 0x4f2   :  { %v3073_v17 = vpop.eup %3072  ;;  %v2303_v38 = vsub.f32 %v4945_v2, %v2271_v51  ;;  %v2237_v63 = vmul.f32 0.6931472, %v3071_v43 }
 0x4f3   :  { %v2302_v0 = vsub.f32 %v4946_v53, %v2270_v40  ;;  %v2235_v26 = vmul.f32 0.6931472, %v3073_v17 }
 0x4f4   :  { %2335 = vst [vmem:[#allocation5 + $0xc8] sm:$0xff] %v2303_v38  ;;  %v2273_v30 = vadd.f32 %v2237_v63, %v4800_v3  ;;  %v4950_v3 = vld [vmem:[#allocation21_spill] sm:$0xff] }
 0x4f5   :  { %2334 = vst [vmem:[#allocation5 + $0xc0] sm:$0xff] %v2302_v0  ;;  %v2272_v56 = vadd.f32 %v2235_v26, %v4804_v13 }
 0x4f6   :  { %v2305_v7 = vsub.f32 %v4947_v60, %v2273_v30 }
 0x4f7   :  { %v2304_v59 = vsub.f32 %v4948_v54, %v2272_v56 }
 0x4f8   :  { %2337 = vst [vmem:[#allocation5 + $0xd8] sm:$0xff] %v2305_v7 }
 0x4f9   :  { %2336 = vst [vmem:[#allocation5 + $0xd0] sm:$0xff] %v2304_v59 }
 0x4fc   :  { %v2177_v62 = vpop.xlane.xlu0 %2176 }
 0x4fd   :  { %3074 = vlog2.f32 %v2177_v62  ;;  %v2175_v15 = vpop.xlane.xlu1 %2174 }
 0x4fe   :  { %3076 = vlog2.f32 %v2175_v15 }
 0x507   :  { %v3075_v18 = vpop.eup %3074 }
 0x508   :  { %v3077_v44 = vpop.eup %3076  ;;  %v2241_v49 = vmul.f32 0.6931472, %v3075_v18 }
 0x509   :  { %v2239_v22 = vmul.f32 0.6931472, %v3077_v44 }
 0x50a   :  { %v2275_v5 = vadd.f32 %v2241_v49, %v4949_v24 }
 0x50b   :  { %v2274_v12 = vadd.f32 %v2239_v22, %v4950_v3 }
 0x50c   :  { %v2307_v13 = vsub.f32 %v4951_v6, %v2275_v5 }
 0x50d   :  { %v2306_v42 = vsub.f32 %v4952_v55, %v2274_v12 }
 0x50e   :  { %2339 = vst [vmem:[#allocation5 + $0xe8] sm:$0xff] %v2307_v13 }
 0x50f   :  { %2338 = vst [vmem:[#allocation5 + $0xe0] sm:$0xff] %v2306_v42 }
 0x510   :  { %v2181_v61 = vpop.xlane.xlu0 %2180 }
 0x511   :  { %3078 = vlog2.f32 %v2181_v61  ;;  %v2179_v20 = vpop.xlane.xlu1 %2178 }
 0x512   :  { %3080 = vlog2.f32 %v2179_v20 }
 0x51b   :  { %v3079_v21 = vpop.eup %3078 }
 0x51c   :  { %v3081_v25 = vpop.eup %3080  ;;  %v2245_v19 = vmul.f32 0.6931472, %v3079_v21 }
 0x51d   :  { %v2243_v39 = vmul.f32 0.6931472, %v3081_v25 }
 0x51e   :  { %v2277_v58 = vadd.f32 %v2245_v19, %v4953_v32 }
 0x51f   :  { %v2276_v9 = vadd.f32 %v2243_v39, %v4954_v10 }
 0x520   :  { %v2309_v47 = vsub.f32 %v4955_v46, %v2277_v58 }
 0x521   :  { %v2308_v4 = vsub.f32 %v4956_v37, %v2276_v9 }
 0x522   :  { %2341 = vst [vmem:[#allocation5 + $0xf8] sm:$0xff] %v2309_v47 }
 0x523   :  { %2340 = vst [vmem:[#allocation5 + $0xf0] sm:$0xff] %v2308_v4 }
 0x524   :  { %3121 = shalt.err (!%p3118_p12)
}
 0x525   :  { %s3122_s6 = scalar_lea.hbm %s4908_s5, 4096 }
 0x526   :  { %p3123_p13 = scmp.ne.s32.totalorder %s4908_s5, %s3122_s6  ;;  %p3126_p0 = scmp.lt.u32.totalorder %s3122_s6, %s4908_s5 }
 0x528   :  { %p3128_p1 = pnand %p3126_p0, %p3123_p13 }
 0x52a   :  { %3131 = shalt.err (!%p3128_p1)
}
 0x52b   :  { %2353 = dma.vmem_to_hbm [thread:$0]  %s2348_s1, 4096, %s4908_s5, [#allocation4], %s3137_s28, %s3137_s28, %s3138_s29  }
 0x52c   :  { %3134 = dma.done.wait [#allocation4], 4096  }
 0x52d   :  { %3135 = vsyncadd [#allocation4], 4294963200 }
 0x52e   :  { %2357 = vsyncpa [#allocation3], 1 }
 0x52f   :  { %2358 = vsyncpa [#allocation4], 1 }

</bundles_post_ra>
